<compile_context>
chip_gen: v7x
topology: tpu7x:2x2x1
jax: 0.10.0
libtpu: 0.0.40
codegen_flags: <defaults>
</compile_context>

<pallas_src>
import functools

import jax
import jax.numpy as jnp
from jax.experimental import pallas as pl
from jax.experimental.pallas import tpu as pltpu


_COMPILER_PARAMS = pltpu.CompilerParams(dimension_semantics=("parallel",))


# ----------------------------------------------------------------------------
# In-kernel helpers (pure functions on VMEM-resident values)
# ----------------------------------------------------------------------------

def _attention(x_q, x_kv, wq, bq, wk, bk, wv, bv, wo, bo, *, num_heads, causal):
    """Multi-head attention for one batch element.

    x_q:  (Tq, D) f32          x_kv: (Tk, D) f32
    wq/wk/wv: (H, D, dh) bf16   bq/bk/bv: (H, 1, dh) f32
    wo: (H, dh, D) bf16         bo: (1, D) f32
    """
    Tq, D = x_q.shape
    Tk = x_kv.shape[0]
    dh = D // num_heads
    scale = 1.0 / float(dh) ** 0.5

    xq = jnp.broadcast_to(x_q.astype(jnp.bfloat16)[None], (num_heads, Tq, D))
    xkv = jnp.broadcast_to(x_kv.astype(jnp.bfloat16)[None], (num_heads, Tk, D))

    nn_dims = (((2,), (1,)), ((0,), (0,)))   # batched  A[b,m,k] @ B[b,k,n]
    nt_dims = (((2,), (2,)), ((0,), (0,)))   # batched  A[b,m,k] @ B[b,n,k]^T

    q = jax.lax.dot_general(xq, wq, nn_dims,
                            preferred_element_type=jnp.float32) + bq   # (H,Tq,dh)
    k = jax.lax.dot_general(xkv, wk, nn_dims,
                            preferred_element_type=jnp.float32) + bk   # (H,Tk,dh)
    v = jax.lax.dot_general(xkv, wv, nn_dims,
                            preferred_element_type=jnp.float32) + bv   # (H,Tk,dh)

    s = jax.lax.dot_general(q.astype(jnp.bfloat16), k.astype(jnp.bfloat16),
                            nt_dims, preferred_element_type=jnp.float32)
    s = s * scale                                                      # (H,Tq,Tk)

    if causal:
        row = jax.lax.broadcasted_iota(jnp.int32, (Tq, Tk), 0)
        col = jax.lax.broadcasted_iota(jnp.int32, (Tq, Tk), 1)
        s = s + jnp.where(row >= col, 0.0, -1e9).astype(jnp.float32)[None]

    s = s - jnp.max(s, axis=-1, keepdims=True)
    p = jnp.exp(s)
    p = p * pl.reciprocal(jnp.sum(p, axis=-1, keepdims=True), approx=True)

    o = jax.lax.dot_general(p.astype(jnp.bfloat16), v.astype(jnp.bfloat16),
                            nn_dims, preferred_element_type=jnp.float32)  # (H,Tq,dh)
    ctx = jax.lax.dot_general(o.astype(jnp.bfloat16), wo, nn_dims,
                              preferred_element_type=jnp.float32)         # (H,Tq,D)
    return jnp.sum(ctx, axis=0) + bo                                      # (Tq,D)


def _add_norm(x, residual, gamma, beta):
    """y = LayerNorm(x + residual), f32 math, eps = torch default 1e-5."""
    y = x + residual
    mean = jnp.mean(y, axis=-1, keepdims=True)
    var = jnp.mean(jnp.square(y - mean), axis=-1, keepdims=True)
    return (y - mean) * jax.lax.rsqrt(var + 1e-5) * gamma + beta


def _ffn(x, w1, b1, w2, b2):
    """relu(x @ W1 + b1) @ W2 + b2, bf16 matmuls with f32 accumulation."""
    h = jnp.dot(x.astype(jnp.bfloat16), w1, preferred_element_type=jnp.float32) + b1
    h = jnp.maximum(h, 0.0)
    return jnp.dot(h.astype(jnp.bfloat16), w2, preferred_element_type=jnp.float32) + b2


# ----------------------------------------------------------------------------
# Fused layer kernel bodies (grid over batch, one batch element per step)
# ----------------------------------------------------------------------------

def _encoder_layer_kernel(x_ref,
                          wq_ref, bq_ref, wk_ref, bk_ref, wv_ref, bv_ref,
                          wo_ref, bo_ref,
                          g1_ref, be1_ref,
                          w1_ref, b1_ref, w2_ref, b2_ref,
                          g2_ref, be2_ref,
                          out_ref, *, num_heads):
    x = x_ref[0]                                                      # (S, D)
    attn = _attention(x, x,
                      wq_ref[...], bq_ref[...], wk_ref[...], bk_ref[...],
                      wv_ref[...], bv_ref[...], wo_ref[...], bo_ref[...],
                      num_heads=num_heads, causal=False)
    x1 = _add_norm(attn, x, g1_ref[...], be1_ref[...])
    ff = _ffn(x1, w1_ref[...], b1_ref[...], w2_ref[...], b2_ref[...])
    out_ref[0] = _add_norm(ff, x1, g2_ref[...], be2_ref[...])


def _decoder_layer_kernel(x_ref, enc_ref,
                          swq_ref, sbq_ref, swk_ref, sbk_ref, swv_ref, sbv_ref,
                          swo_ref, sbo_ref,
                          g1_ref, be1_ref,
                          cwq_ref, cbq_ref, cwk_ref, cbk_ref, cwv_ref, cbv_ref,
                          cwo_ref, cbo_ref,
                          g2_ref, be2_ref,
                          w1_ref, b1_ref, w2_ref, b2_ref,
                          g3_ref, be3_ref,
                          out_ref, *, num_heads):
    x = x_ref[0]                                                      # (T, D)
    e = enc_ref[0]                                                    # (S, D)
    sa = _attention(x, x,
                    swq_ref[...], sbq_ref[...], swk_ref[...], sbk_ref[...],
                    swv_ref[...], sbv_ref[...], swo_ref[...], sbo_ref[...],
                    num_heads=num_heads, causal=True)
    x1 = _add_norm(sa, x, g1_ref[...], be1_ref[...])
    ca = _attention(x1, e,
                    cwq_ref[...], cbq_ref[...], cwk_ref[...], cbk_ref[...],
                    cwv_ref[...], cbv_ref[...], cwo_ref[...], cbo_ref[...],
                    num_heads=num_heads, causal=False)
    x2 = _add_norm(ca, x1, g2_ref[...], be2_ref[...])
    ff = _ffn(x2, w1_ref[...], b1_ref[...], w2_ref[...], b2_ref[...])
    out_ref[0] = _add_norm(ff, x2, g3_ref[...], be3_ref[...])


def _proj_kernel(x_ref, w_ref, b_ref, out_ref):
    """Final projection to the (128-padded) vocab dimension."""
    out_ref[0] = jnp.dot(x_ref[0].astype(jnp.bfloat16), w_ref[...],
                         preferred_element_type=jnp.float32) + b_ref[...]


# ----------------------------------------------------------------------------
# pallas_call wrappers
# ----------------------------------------------------------------------------

def _bspec(shape):
    rest = tuple(shape[1:])
    nrest = len(rest)
    return pl.BlockSpec((1,) + rest, lambda b, _n=nrest: (b,) + (0,) * _n)


def _cspec(shape):
    ndim = len(shape)
    return pl.BlockSpec(tuple(shape), lambda b, _n=ndim: (0,) * _n)


def encoder_layer(x, p, num_heads):
    B, S, D = x.shape
    a, n1, f, n2 = p["attn"], p["ln1"], p["ffn"], p["ln2"]
    args = [x,
            a["wq"], a["bq"], a["wk"], a["bk"], a["wv"], a["bv"], a["wo"], a["bo"],
            n1["gamma"], n1["beta"],
            f["w1"], f["b1"], f["w2"], f["b2"],
            n2["gamma"], n2["beta"]]
    in_specs = [_bspec(x.shape)] + [_cspec(t.shape) for t in args[1:]]
    return pl.pallas_call(
        functools.partial(_encoder_layer_kernel, num_heads=num_heads),
        out_shape=jax.ShapeDtypeStruct((B, S, D), jnp.float32),
        grid=(B,),
        in_specs=in_specs,
        out_specs=_bspec((B, S, D)),
        compiler_params=_COMPILER_PARAMS,
    )(*args)


def decoder_layer(x, enc_out, p, num_heads):
    B, T, D = x.shape
    sa, n1 = p["self_attn"], p["ln1"]
    ca, n2 = p["cross_attn"], p["ln2"]
    f, n3 = p["ffn"], p["ln3"]
    args = [x, enc_out,
            sa["wq"], sa["bq"], sa["wk"], sa["bk"], sa["wv"], sa["bv"],
            sa["wo"], sa["bo"],
            n1["gamma"], n1["beta"],
            ca["wq"], ca["bq"], ca["wk"], ca["bk"], ca["wv"], ca["bv"],
            ca["wo"], ca["bo"],
            n2["gamma"], n2["beta"],
            f["w1"], f["b1"], f["w2"], f["b2"],
            n3["gamma"], n3["beta"]]
    in_specs = [_bspec(x.shape), _bspec(enc_out.shape)] + \
               [_cspec(t.shape) for t in args[2:]]
    return pl.pallas_call(
        functools.partial(_decoder_layer_kernel, num_heads=num_heads),
        out_shape=jax.ShapeDtypeStruct((B, T, D), jnp.float32),
        grid=(B,),
        in_specs=in_specs,
        out_specs=_bspec((B, T, D)),
        compiler_params=_COMPILER_PARAMS,
    )(*args)


def final_proj(x, p):
    B, T, D = x.shape
    Vp = p["w"].shape[1]
    return pl.pallas_call(
        _proj_kernel,
        out_shape=jax.ShapeDtypeStruct((B, T, Vp), jnp.float32),
        grid=(B,),
        in_specs=[_bspec(x.shape), _cspec(p["w"].shape), _cspec(p["b"].shape)],
        out_specs=_bspec((B, T, Vp)),
        compiler_params=_COMPILER_PARAMS,
    )(x, p["w"], p["b"])


# ----------------------------------------------------------------------------
# Model assembly
# ----------------------------------------------------------------------------

def transformer_mt_forward(enc_input, dec_input, params, *, num_heads, vocab):
    """Mirrors Transformer_MT.forward: enc stack -> dec stack -> reshape(-1, 204)."""
    x = enc_input
    for lp in params["encoder"]:
        x = encoder_layer(x, lp, num_heads)
    enc_out = x

    y = dec_input
    for lp in params["decoder"]:
        y = decoder_layer(y, enc_out, lp, num_heads)

    logits = final_proj(y, params["proj"])          # (B, T, Vpad)
    logits = logits[..., :vocab]                    # drop lane padding -> (B, T, 204)
    return logits.reshape(-1, vocab)                # (B*T, 204)


# ----------------------------------------------------------------------------
# Parameter init (raw f32, torch-style layout) + kernel-layout preparation
# ----------------------------------------------------------------------------

def _dense(key, fan_in, fan_out):
    w = jax.random.normal(key, (fan_in, fan_out), jnp.float32) / jnp.sqrt(
        jnp.float32(fan_in))
    b = jnp.zeros((1, fan_out), jnp.float32)
    return w, b


def _attn_params(key, d_model):
    ks = jax.random.split(key, 4)
    wq, bq = _dense(ks[0], d_model, d_model)
    wk, bk = _dense(ks[1], d_model, d_model)
    wv, bv = _dense(ks[2], d_model, d_model)
    wo, bo = _dense(ks[3], d_model, d_model)
    return dict(wq=wq, bq=bq, wk=wk, bk=bk, wv=wv, bv=bv, wo=wo, bo=bo)


def _ln_params(d_model):
    return dict(gamma=jnp.ones((1, d_model), jnp.float32),
                beta=jnp.zeros((1, d_model), jnp.float32))


def _ffn_params(key, d_model, d_ff):
    k1, k2 = jax.random.split(key)
    w1, b1 = _dense(k1, d_model, d_ff)
    w2, b2 = _dense(k2, d_ff, d_model)
    return dict(w1=w1, b1=b1, w2=w2, b2=b2)


def init_params(key, n_layers, d_model, d_ff, vocab):
    enc_layers, dec_layers = [], []
    for _ in range(n_layers):
        key, ka, kf = jax.random.split(key, 3)
        enc_layers.append(dict(attn=_attn_params(ka, d_model),
                               ln1=_ln_params(d_model),
                               ffn=_ffn_params(kf, d_model, d_ff),
                               ln2=_ln_params(d_model)))
    for _ in range(n_layers):
        key, ks, kc, kf = jax.random.split(key, 4)
        dec_layers.append(dict(self_attn=_attn_params(ks, d_model),
                               ln1=_ln_params(d_model),
                               cross_attn=_attn_params(kc, d_model),
                               ln2=_ln_params(d_model),
                               ffn=_ffn_params(kf, d_model, d_ff),
                               ln3=_ln_params(d_model)))
    key, kp = jax.random.split(key)
    wp, bp = _dense(kp, d_model, vocab)
    return dict(encoder=enc_layers, decoder=dec_layers, proj=dict(w=wp, b=bp))


def _prep_attn(p, num_heads):
    """Split (D,D) QKV/O weights into per-head slabs and cast matmul weights bf16."""
    D = p["wq"].shape[0]
    dh = D // num_heads

    def w_in(w):   # (D, D) -> (H, D, dh)
        return jnp.transpose(w.reshape(D, num_heads, dh), (1, 0, 2)).astype(jnp.bfloat16)

    def b_in(b):   # (1, D) -> (H, 1, dh)
        return jnp.transpose(b.reshape(1, num_heads, dh), (1, 0, 2))

    return dict(wq=w_in(p["wq"]), bq=b_in(p["bq"]),
                wk=w_in(p["wk"]), bk=b_in(p["bk"]),
                wv=w_in(p["wv"]), bv=b_in(p["bv"]),
                wo=p["wo"].reshape(num_heads, dh, D).astype(jnp.bfloat16),
                bo=p["bo"])


def _prep_ffn(p):
    return dict(w1=p["w1"].astype(jnp.bfloat16), b1=p["b1"],
                w2=p["w2"].astype(jnp.bfloat16), b2=p["b2"])


def _prep_proj(p):
    """Pad the vocab dim to a multiple of 128 for lane-dense stores."""
    w, b = p["w"], p["b"]
    v = w.shape[1]
    v_pad = ((v + 127) // 128) * 128
    pad = v_pad - v
    return dict(w=jnp.pad(w, ((0, 0), (0, pad))).astype(jnp.bfloat16),
                b=jnp.pad(b, ((0, 0), (0, pad))))


def prepare_params(raw, num_heads):
    enc = [dict(attn=_prep_attn(lp["attn"], num_heads),
                ln1=lp["ln1"],
                ffn=_prep_ffn(lp["ffn"]),
                ln2=lp["ln2"]) for lp in raw["encoder"]]
    dec = [dict(self_attn=_prep_attn(lp["self_attn"], num_heads),
                ln1=lp["ln1"],
                cross_attn=_prep_attn(lp["cross_attn"], num_heads),
                ln2=lp["ln2"],
                ffn=_prep_ffn(lp["ffn"]),
                ln3=lp["ln3"]) for lp in raw["decoder"]]
    return dict(encoder=enc, decoder=dec, proj=_prep_proj(raw["proj"]))


# ----------------------------------------------------------------------------
# Main
# ----------------------------------------------------------------------------

if __name__ == "__main__":
    # Small shapes consistent with the module structure
    # (module uses 4 layers / 4 heads / d_model=512 / vocab=204; d_model shrunk,
    #  kept lane-dense at 128).
    B, S, T = 2, 8, 8
    D_MODEL, N_HEADS, N_LAYERS, D_FF, VOCAB = 128, 4, 4, 256, 204

    key = jax.random.PRNGKey(0)
    key, kp, ke, kd = jax.random.split(key, 4)
    raw_params = init_params(kp, N_LAYERS, D_MODEL, D_FF, VOCAB)
    params = prepare_params(raw_params, N_HEADS)

    enc_input = jax.random.normal(ke, (B, S, D_MODEL), jnp.float32)
    dec_input = jax.random.normal(kd, (B, T, D_MODEL), jnp.float32)

    fwd = jax.jit(functools.partial(transformer_mt_forward,
                                    num_heads=N_HEADS, vocab=VOCAB))
    out = fwd(enc_input, dec_input, params)
    out = jax.block_until_ready(out)

    assert out.shape == (B * T, VOCAB), out.shape
    assert bool(jnp.all(jnp.isfinite(out)))
    print("KERNEL_OK")
</pallas_src>

<mosaic_0001>
module attributes {stable_mosaic.version = 11 : i64} {
  func.func @_decoder_layer_kernel(%arg0: i32, %arg1: memref<1x8x128xf32, #tpu.memory_space<vmem>>, %arg2: memref<1x8x128xf32, #tpu.memory_space<vmem>>, %arg3: memref<4x128x32xbf16, #tpu.memory_space<vmem>>, %arg4: memref<4x1x32xf32, #tpu.memory_space<vmem>>, %arg5: memref<4x128x32xbf16, #tpu.memory_space<vmem>>, %arg6: memref<4x1x32xf32, #tpu.memory_space<vmem>>, %arg7: memref<4x128x32xbf16, #tpu.memory_space<vmem>>, %arg8: memref<4x1x32xf32, #tpu.memory_space<vmem>>, %arg9: memref<4x32x128xbf16, #tpu.memory_space<vmem>>, %arg10: memref<1x128xf32, #tpu.memory_space<vmem>>, %arg11: memref<1x128xf32, #tpu.memory_space<vmem>>, %arg12: memref<1x128xf32, #tpu.memory_space<vmem>>, %arg13: memref<4x128x32xbf16, #tpu.memory_space<vmem>>, %arg14: memref<4x1x32xf32, #tpu.memory_space<vmem>>, %arg15: memref<4x128x32xbf16, #tpu.memory_space<vmem>>, %arg16: memref<4x1x32xf32, #tpu.memory_space<vmem>>, %arg17: memref<4x128x32xbf16, #tpu.memory_space<vmem>>, %arg18: memref<4x1x32xf32, #tpu.memory_space<vmem>>, %arg19: memref<4x32x128xbf16, #tpu.memory_space<vmem>>, %arg20: memref<1x128xf32, #tpu.memory_space<vmem>>, %arg21: memref<1x128xf32, #tpu.memory_space<vmem>>, %arg22: memref<1x128xf32, #tpu.memory_space<vmem>>, %arg23: memref<128x256xbf16, #tpu.memory_space<vmem>>, %arg24: memref<1x256xf32, #tpu.memory_space<vmem>>, %arg25: memref<256x128xbf16, #tpu.memory_space<vmem>>, %arg26: memref<1x128xf32, #tpu.memory_space<vmem>>, %arg27: memref<1x128xf32, #tpu.memory_space<vmem>>, %arg28: memref<1x128xf32, #tpu.memory_space<vmem>>, %arg29: memref<1x8x128xf32, #tpu.memory_space<vmem>>) attributes {dimension_semantics = [#tpu.dimension_semantics<parallel>], iteration_bounds = array<i64: 2>, scalar_prefetch = 0 : i64, scratch_operands = 0 : i64, tpu.core_type = #tpu.core_type<tc>, window_params = [{transform_indices = @transform_0, window_bounds = array<i64: 1, 8, 128>}, {transform_indices = @transform_1, window_bounds = array<i64: 1, 8, 128>}, {pipeline_mode = #tpu.pipeline_mode<synchronous>, transform_indices = @transform_2, window_bounds = array<i64: 4, 128, 32>}, {pipeline_mode = #tpu.pipeline_mode<synchronous>, transform_indices = @transform_3, window_bounds = array<i64: 4, 1, 32>}, {pipeline_mode = #tpu.pipeline_mode<synchronous>, transform_indices = @transform_4, window_bounds = array<i64: 4, 128, 32>}, {pipeline_mode = #tpu.pipeline_mode<synchronous>, transform_indices = @transform_5, window_bounds = array<i64: 4, 1, 32>}, {pipeline_mode = #tpu.pipeline_mode<synchronous>, transform_indices = @transform_6, window_bounds = array<i64: 4, 128, 32>}, {pipeline_mode = #tpu.pipeline_mode<synchronous>, transform_indices = @transform_7, window_bounds = array<i64: 4, 1, 32>}, {pipeline_mode = #tpu.pipeline_mode<synchronous>, transform_indices = @transform_8, window_bounds = array<i64: 4, 32, 128>}, {pipeline_mode = #tpu.pipeline_mode<synchronous>, transform_indices = @transform_9, window_bounds = array<i64: 1, 128>}, {pipeline_mode = #tpu.pipeline_mode<synchronous>, transform_indices = @transform_10, window_bounds = array<i64: 1, 128>}, {pipeline_mode = #tpu.pipeline_mode<synchronous>, transform_indices = @transform_11, window_bounds = array<i64: 1, 128>}, {pipeline_mode = #tpu.pipeline_mode<synchronous>, transform_indices = @transform_12, window_bounds = array<i64: 4, 128, 32>}, {pipeline_mode = #tpu.pipeline_mode<synchronous>, transform_indices = @transform_13, window_bounds = array<i64: 4, 1, 32>}, {pipeline_mode = #tpu.pipeline_mode<synchronous>, transform_indices = @transform_14, window_bounds = array<i64: 4, 128, 32>}, {pipeline_mode = #tpu.pipeline_mode<synchronous>, transform_indices = @transform_15, window_bounds = array<i64: 4, 1, 32>}, {pipeline_mode = #tpu.pipeline_mode<synchronous>, transform_indices = @transform_16, window_bounds = array<i64: 4, 128, 32>}, {pipeline_mode = #tpu.pipeline_mode<synchronous>, transform_indices = @transform_17, window_bounds = array<i64: 4, 1, 32>}, {pipeline_mode = #tpu.pipeline_mode<synchronous>, transform_indices = @transform_18, window_bounds = array<i64: 4, 32, 128>}, {pipeline_mode = #tpu.pipeline_mode<synchronous>, transform_indices = @transform_19, window_bounds = array<i64: 1, 128>}, {pipeline_mode = #tpu.pipeline_mode<synchronous>, transform_indices = @transform_20, window_bounds = array<i64: 1, 128>}, {pipeline_mode = #tpu.pipeline_mode<synchronous>, transform_indices = @transform_21, window_bounds = array<i64: 1, 128>}, {pipeline_mode = #tpu.pipeline_mode<synchronous>, transform_indices = @transform_22, window_bounds = array<i64: 128, 256>}, {pipeline_mode = #tpu.pipeline_mode<synchronous>, transform_indices = @transform_23, window_bounds = array<i64: 1, 256>}, {pipeline_mode = #tpu.pipeline_mode<synchronous>, transform_indices = @transform_24, window_bounds = array<i64: 256, 128>}, {pipeline_mode = #tpu.pipeline_mode<synchronous>, transform_indices = @transform_25, window_bounds = array<i64: 1, 128>}, {pipeline_mode = #tpu.pipeline_mode<synchronous>, transform_indices = @transform_26, window_bounds = array<i64: 1, 128>}, {pipeline_mode = #tpu.pipeline_mode<synchronous>, transform_indices = @transform_27, window_bounds = array<i64: 1, 128>}, {transform_indices = @transform_28, window_bounds = array<i64: 1, 8, 128>}]} {
    %c0 = arith.constant 0 : index
    %c0_0 = arith.constant 0 : index
    %c0_1 = arith.constant 0 : index
    %0 = vector.load %arg1[%c0, %c0_0, %c0_1] : memref<1x8x128xf32, #tpu.memory_space<vmem>>, vector<1x8x128xf32>
    %1 = vector.shape_cast %0 : vector<1x8x128xf32> to vector<8x128xf32>
    %c0_2 = arith.constant 0 : index
    %c0_3 = arith.constant 0 : index
    %c0_4 = arith.constant 0 : index
    %2 = vector.load %arg2[%c0_2, %c0_3, %c0_4] : memref<1x8x128xf32, #tpu.memory_space<vmem>>, vector<1x8x128xf32>
    %3 = vector.shape_cast %2 : vector<1x8x128xf32> to vector<8x128xf32>
    %c0_5 = arith.constant 0 : index
    %c0_6 = arith.constant 0 : index
    %c0_7 = arith.constant 0 : index
    %4 = vector.load %arg3[%c0_5, %c0_6, %c0_7] : memref<4x128x32xbf16, #tpu.memory_space<vmem>>, vector<4x128x32xbf16>
    %c0_8 = arith.constant 0 : index
    %c0_9 = arith.constant 0 : index
    %c0_10 = arith.constant 0 : index
    %5 = vector.load %arg4[%c0_8, %c0_9, %c0_10] : memref<4x1x32xf32, #tpu.memory_space<vmem>>, vector<4x1x32xf32>
    %c0_11 = arith.constant 0 : index
    %c0_12 = arith.constant 0 : index
    %c0_13 = arith.constant 0 : index
    %6 = vector.load %arg5[%c0_11, %c0_12, %c0_13] : memref<4x128x32xbf16, #tpu.memory_space<vmem>>, vector<4x128x32xbf16>
    %c0_14 = arith.constant 0 : index
    %c0_15 = arith.constant 0 : index
    %c0_16 = arith.constant 0 : index
    %7 = vector.load %arg6[%c0_14, %c0_15, %c0_16] : memref<4x1x32xf32, #tpu.memory_space<vmem>>, vector<4x1x32xf32>
    %c0_17 = arith.constant 0 : index
    %c0_18 = arith.constant 0 : index
    %c0_19 = arith.constant 0 : index
    %8 = vector.load %arg7[%c0_17, %c0_18, %c0_19] : memref<4x128x32xbf16, #tpu.memory_space<vmem>>, vector<4x128x32xbf16>
    %c0_20 = arith.constant 0 : index
    %c0_21 = arith.constant 0 : index
    %c0_22 = arith.constant 0 : index
    %9 = vector.load %arg8[%c0_20, %c0_21, %c0_22] : memref<4x1x32xf32, #tpu.memory_space<vmem>>, vector<4x1x32xf32>
    %c0_23 = arith.constant 0 : index
    %c0_24 = arith.constant 0 : index
    %c0_25 = arith.constant 0 : index
    %10 = vector.load %arg9[%c0_23, %c0_24, %c0_25] : memref<4x32x128xbf16, #tpu.memory_space<vmem>>, vector<4x32x128xbf16>
    %c0_26 = arith.constant 0 : index
    %c0_27 = arith.constant 0 : index
    %11 = vector.load %arg10[%c0_26, %c0_27] : memref<1x128xf32, #tpu.memory_space<vmem>>, vector<1x128xf32>
    %12 = arith.truncf %1 : vector<8x128xf32> to vector<8x128xbf16>
    %13 = vector.shape_cast %12 : vector<8x128xbf16> to vector<1x8x128xbf16>
    %14 = vector.shape_cast %13 : vector<1x8x128xbf16> to vector<1x8x128xbf16>
    %15 = vector.broadcast %14 : vector<1x8x128xbf16> to vector<4x8x128xbf16>
    %16 = arith.truncf %1 : vector<8x128xf32> to vector<8x128xbf16>
    %17 = vector.shape_cast %16 : vector<8x128xbf16> to vector<1x8x128xbf16>
    %18 = vector.shape_cast %17 : vector<1x8x128xbf16> to vector<1x8x128xbf16>
    %19 = vector.broadcast %18 : vector<1x8x128xbf16> to vector<4x8x128xbf16>
    %cst = arith.constant dense<0.000000e+00> : vector<4x8x32xf32>
    %20 = tpu.matmul %15, %4, %cst {dimension_numbers = #tpu.dot_dimension_numbers<[2], [1], [1], [2], [0, 0, 0, 1, 1, 2], [0], [0]>} : vector<4x8x128xbf16>, vector<4x128x32xbf16>, vector<4x8x32xf32> -> vector<4x8x32xf32>
    %21 = vector.broadcast %5 : vector<4x1x32xf32> to vector<4x8x32xf32>
    %22 = arith.addf %20, %21 : vector<4x8x32xf32>
    %cst_28 = arith.constant dense<0.000000e+00> : vector<4x8x32xf32>
    %23 = tpu.matmul %19, %6, %cst_28 {dimension_numbers = #tpu.dot_dimension_numbers<[2], [1], [1], [2], [0, 0, 0, 1, 1, 2], [0], [0]>} : vector<4x8x128xbf16>, vector<4x128x32xbf16>, vector<4x8x32xf32> -> vector<4x8x32xf32>
    %24 = vector.broadcast %7 : vector<4x1x32xf32> to vector<4x8x32xf32>
    %25 = arith.addf %23, %24 : vector<4x8x32xf32>
    %cst_29 = arith.constant dense<0.000000e+00> : vector<4x8x32xf32>
    %26 = tpu.matmul %19, %8, %cst_29 {dimension_numbers = #tpu.dot_dimension_numbers<[2], [1], [1], [2], [0, 0, 0, 1, 1, 2], [0], [0]>} : vector<4x8x128xbf16>, vector<4x128x32xbf16>, vector<4x8x32xf32> -> vector<4x8x32xf32>
    %27 = vector.broadcast %9 : vector<4x1x32xf32> to vector<4x8x32xf32>
    %28 = arith.addf %26, %27 : vector<4x8x32xf32>
    %29 = arith.truncf %22 : vector<4x8x32xf32> to vector<4x8x32xbf16>
    %30 = arith.truncf %25 : vector<4x8x32xf32> to vector<4x8x32xbf16>
    %cst_30 = arith.constant dense<0.000000e+00> : vector<4x8x8xf32>
    %31 = tpu.matmul %29, %30, %cst_30 {dimension_numbers = #tpu.dot_dimension_numbers<[2], [2], [1], [1], [0, 0, 0, 1, 1, 1], [0], [0]>} : vector<4x8x32xbf16>, vector<4x8x32xbf16>, vector<4x8x8xf32> -> vector<4x8x8xf32>
    %cst_31 = arith.constant 0.176776692 : f32
    %32 = vector.broadcast %cst_31 : f32 to vector<4x8x8xf32>
    %33 = arith.mulf %31, %32 : vector<4x8x8xf32>
    %34 = tpu.iota {dimensions = array<i32: 0>} : vector<8x8xi32>
    %35 = tpu.iota {dimensions = array<i32: 1>} : vector<8x8xi32>
    %36 = arith.cmpi sge, %34, %35 : vector<8x8xi32>
    %cst_32 = arith.constant 0.000000e+00 : f32
    %cst_33 = arith.constant -1.000000e+09 : f32
    %37 = vector.broadcast %cst_32 : f32 to vector<8x8xf32>
    %38 = vector.broadcast %cst_33 : f32 to vector<8x8xf32>
    %39 = arith.select %36, %37, %38 : vector<8x8xi1>, vector<8x8xf32>
    %40 = vector.shape_cast %39 : vector<8x8xf32> to vector<1x8x8xf32>
    %41 = vector.broadcast %40 : vector<1x8x8xf32> to vector<4x8x8xf32>
    %42 = arith.addf %33, %41 : vector<4x8x8xf32>
    %cst_34 = arith.constant dense<0xFF800000> : vector<4x8xf32>
    %43 = vector.multi_reduction <maximumf>, %42, %cst_34 [2] : vector<4x8x8xf32> to vector<4x8xf32>
    %44 = vector.shape_cast %43 : vector<4x8xf32> to vector<4x8x1xf32>
    %45 = vector.broadcast %44 : vector<4x8x1xf32> to vector<4x8x8xf32>
    %46 = arith.subf %42, %45 : vector<4x8x8xf32>
    %47 = math.exp %46 : vector<4x8x8xf32>
    %cst_35 = arith.constant dense<0.000000e+00> : vector<4x8xf32>
    %48 = vector.multi_reduction <add>, %47, %cst_35 [2] : vector<4x8x8xf32> to vector<4x8xf32>
    %49 = vector.shape_cast %48 : vector<4x8xf32> to vector<4x8x1xf32>
    %50 = tpu.reciprocal %49 {approx = true} : vector<4x8x1xf32> -> vector<4x8x1xf32>
    %51 = vector.broadcast %50 : vector<4x8x1xf32> to vector<4x8x8xf32>
    %52 = arith.mulf %47, %51 : vector<4x8x8xf32>
    %53 = arith.truncf %52 : vector<4x8x8xf32> to vector<4x8x8xbf16>
    %54 = arith.truncf %28 : vector<4x8x32xf32> to vector<4x8x32xbf16>
    %cst_36 = arith.constant dense<0.000000e+00> : vector<4x8x32xf32>
    %55 = tpu.matmul %53, %54, %cst_36 {dimension_numbers = #tpu.dot_dimension_numbers<[2], [1], [1], [2], [0, 0, 0, 1, 1, 2], [0], [0]>} : vector<4x8x8xbf16>, vector<4x8x32xbf16>, vector<4x8x32xf32> -> vector<4x8x32xf32>
    %56 = arith.truncf %55 : vector<4x8x32xf32> to vector<4x8x32xbf16>
    %cst_37 = arith.constant dense<0.000000e+00> : vector<4x8x128xf32>
    %57 = tpu.matmul %56, %10, %cst_37 {dimension_numbers = #tpu.dot_dimension_numbers<[2], [1], [1], [2], [0, 0, 0, 1, 1, 2], [0], [0]>} : vector<4x8x32xbf16>, vector<4x32x128xbf16>, vector<4x8x128xf32> -> vector<4x8x128xf32>
    %cst_38 = arith.constant dense<0.000000e+00> : vector<8x128xf32>
    %58 = vector.multi_reduction <add>, %57, %cst_38 [0] : vector<4x8x128xf32> to vector<8x128xf32>
    %59 = vector.broadcast %11 : vector<1x128xf32> to vector<8x128xf32>
    %60 = arith.addf %58, %59 : vector<8x128xf32>
    %c0_39 = arith.constant 0 : index
    %c0_40 = arith.constant 0 : index
    %61 = vector.load %arg11[%c0_39, %c0_40] : memref<1x128xf32, #tpu.memory_space<vmem>>, vector<1x128xf32>
    %c0_41 = arith.constant 0 : index
    %c0_42 = arith.constant 0 : index
    %62 = vector.load %arg12[%c0_41, %c0_42] : memref<1x128xf32, #tpu.memory_space<vmem>>, vector<1x128xf32>
    %63 = arith.addf %60, %1 : vector<8x128xf32>
    %cst_43 = arith.constant dense<0.000000e+00> : vector<8xf32>
    %64 = vector.multi_reduction <add>, %63, %cst_43 [1] : vector<8x128xf32> to vector<8xf32>
    %65 = vector.shape_cast %64 : vector<8xf32> to vector<8x1xf32>
    %cst_44 = arith.constant 1.280000e+02 : f32
    %66 = vector.broadcast %cst_44 : f32 to vector<8x1xf32>
    %67 = arith.divf %65, %66 : vector<8x1xf32>
    %68 = vector.broadcast %67 : vector<8x1xf32> to vector<8x128xf32>
    %69 = arith.subf %63, %68 : vector<8x128xf32>
    %70 = arith.mulf %69, %69 : vector<8x128xf32>
    %cst_45 = arith.constant dense<0.000000e+00> : vector<8xf32>
    %71 = vector.multi_reduction <add>, %70, %cst_45 [1] : vector<8x128xf32> to vector<8xf32>
    %72 = vector.shape_cast %71 : vector<8xf32> to vector<8x1xf32>
    %cst_46 = arith.constant 1.280000e+02 : f32
    %73 = vector.broadcast %cst_46 : f32 to vector<8x1xf32>
    %74 = arith.divf %72, %73 : vector<8x1xf32>
    %75 = vector.broadcast %67 : vector<8x1xf32> to vector<8x128xf32>
    %76 = arith.subf %63, %75 : vector<8x128xf32>
    %cst_47 = arith.constant 9.99999974E-6 : f32
    %77 = vector.broadcast %cst_47 : f32 to vector<8x1xf32>
    %78 = arith.addf %74, %77 : vector<8x1xf32>
    %79 = math.rsqrt %78 : vector<8x1xf32>
    %80 = vector.broadcast %79 : vector<8x1xf32> to vector<8x128xf32>
    %81 = arith.mulf %76, %80 : vector<8x128xf32>
    %82 = vector.broadcast %61 : vector<1x128xf32> to vector<8x128xf32>
    %83 = arith.mulf %81, %82 : vector<8x128xf32>
    %84 = vector.broadcast %62 : vector<1x128xf32> to vector<8x128xf32>
    %85 = arith.addf %83, %84 : vector<8x128xf32>
    %c0_48 = arith.constant 0 : index
    %c0_49 = arith.constant 0 : index
    %c0_50 = arith.constant 0 : index
    %86 = vector.load %arg13[%c0_48, %c0_49, %c0_50] : memref<4x128x32xbf16, #tpu.memory_space<vmem>>, vector<4x128x32xbf16>
    %c0_51 = arith.constant 0 : index
    %c0_52 = arith.constant 0 : index
    %c0_53 = arith.constant 0 : index
    %87 = vector.load %arg14[%c0_51, %c0_52, %c0_53] : memref<4x1x32xf32, #tpu.memory_space<vmem>>, vector<4x1x32xf32>
    %c0_54 = arith.constant 0 : index
    %c0_55 = arith.constant 0 : index
    %c0_56 = arith.constant 0 : index
    %88 = vector.load %arg15[%c0_54, %c0_55, %c0_56] : memref<4x128x32xbf16, #tpu.memory_space<vmem>>, vector<4x128x32xbf16>
    %c0_57 = arith.constant 0 : index
    %c0_58 = arith.constant 0 : index
    %c0_59 = arith.constant 0 : index
    %89 = vector.load %arg16[%c0_57, %c0_58, %c0_59] : memref<4x1x32xf32, #tpu.memory_space<vmem>>, vector<4x1x32xf32>
    %c0_60 = arith.constant 0 : index
    %c0_61 = arith.constant 0 : index
    %c0_62 = arith.constant 0 : index
    %90 = vector.load %arg17[%c0_60, %c0_61, %c0_62] : memref<4x128x32xbf16, #tpu.memory_space<vmem>>, vector<4x128x32xbf16>
    %c0_63 = arith.constant 0 : index
    %c0_64 = arith.constant 0 : index
    %c0_65 = arith.constant 0 : index
    %91 = vector.load %arg18[%c0_63, %c0_64, %c0_65] : memref<4x1x32xf32, #tpu.memory_space<vmem>>, vector<4x1x32xf32>
    %c0_66 = arith.constant 0 : index
    %c0_67 = arith.constant 0 : index
    %c0_68 = arith.constant 0 : index
    %92 = vector.load %arg19[%c0_66, %c0_67, %c0_68] : memref<4x32x128xbf16, #tpu.memory_space<vmem>>, vector<4x32x128xbf16>
    %c0_69 = arith.constant 0 : index
    %c0_70 = arith.constant 0 : index
    %93 = vector.load %arg20[%c0_69, %c0_70] : memref<1x128xf32, #tpu.memory_space<vmem>>, vector<1x128xf32>
    %94 = arith.truncf %85 : vector<8x128xf32> to vector<8x128xbf16>
    %95 = vector.shape_cast %94 : vector<8x128xbf16> to vector<1x8x128xbf16>
    %96 = vector.shape_cast %95 : vector<1x8x128xbf16> to vector<1x8x128xbf16>
    %97 = vector.broadcast %96 : vector<1x8x128xbf16> to vector<4x8x128xbf16>
    %98 = arith.truncf %3 : vector<8x128xf32> to vector<8x128xbf16>
    %99 = vector.shape_cast %98 : vector<8x128xbf16> to vector<1x8x128xbf16>
    %100 = vector.shape_cast %99 : vector<1x8x128xbf16> to vector<1x8x128xbf16>
    %101 = vector.broadcast %100 : vector<1x8x128xbf16> to vector<4x8x128xbf16>
    %cst_71 = arith.constant dense<0.000000e+00> : vector<4x8x32xf32>
    %102 = tpu.matmul %97, %86, %cst_71 {dimension_numbers = #tpu.dot_dimension_numbers<[2], [1], [1], [2], [0, 0, 0, 1, 1, 2], [0], [0]>} : vector<4x8x128xbf16>, vector<4x128x32xbf16>, vector<4x8x32xf32> -> vector<4x8x32xf32>
    %103 = vector.broadcast %87 : vector<4x1x32xf32> to vector<4x8x32xf32>
    %104 = arith.addf %102, %103 : vector<4x8x32xf32>
    %cst_72 = arith.constant dense<0.000000e+00> : vector<4x8x32xf32>
    %105 = tpu.matmul %101, %88, %cst_72 {dimension_numbers = #tpu.dot_dimension_numbers<[2], [1], [1], [2], [0, 0, 0, 1, 1, 2], [0], [0]>} : vector<4x8x128xbf16>, vector<4x128x32xbf16>, vector<4x8x32xf32> -> vector<4x8x32xf32>
    %106 = vector.broadcast %89 : vector<4x1x32xf32> to vector<4x8x32xf32>
    %107 = arith.addf %105, %106 : vector<4x8x32xf32>
    %cst_73 = arith.constant dense<0.000000e+00> : vector<4x8x32xf32>
    %108 = tpu.matmul %101, %90, %cst_73 {dimension_numbers = #tpu.dot_dimension_numbers<[2], [1], [1], [2], [0, 0, 0, 1, 1, 2], [0], [0]>} : vector<4x8x128xbf16>, vector<4x128x32xbf16>, vector<4x8x32xf32> -> vector<4x8x32xf32>
    %109 = vector.broadcast %91 : vector<4x1x32xf32> to vector<4x8x32xf32>
    %110 = arith.addf %108, %109 : vector<4x8x32xf32>
    %111 = arith.truncf %104 : vector<4x8x32xf32> to vector<4x8x32xbf16>
    %112 = arith.truncf %107 : vector<4x8x32xf32> to vector<4x8x32xbf16>
    %cst_74 = arith.constant dense<0.000000e+00> : vector<4x8x8xf32>
    %113 = tpu.matmul %111, %112, %cst_74 {dimension_numbers = #tpu.dot_dimension_numbers<[2], [2], [1], [1], [0, 0, 0, 1, 1, 1], [0], [0]>} : vector<4x8x32xbf16>, vector<4x8x32xbf16>, vector<4x8x8xf32> -> vector<4x8x8xf32>
    %cst_75 = arith.constant 0.176776692 : f32
    %114 = vector.broadcast %cst_75 : f32 to vector<4x8x8xf32>
    %115 = arith.mulf %113, %114 : vector<4x8x8xf32>
    %cst_76 = arith.constant dense<0xFF800000> : vector<4x8xf32>
    %116 = vector.multi_reduction <maximumf>, %115, %cst_76 [2] : vector<4x8x8xf32> to vector<4x8xf32>
    %117 = vector.shape_cast %116 : vector<4x8xf32> to vector<4x8x1xf32>
    %118 = vector.broadcast %117 : vector<4x8x1xf32> to vector<4x8x8xf32>
    %119 = arith.subf %115, %118 : vector<4x8x8xf32>
    %120 = math.exp %119 : vector<4x8x8xf32>
    %cst_77 = arith.constant dense<0.000000e+00> : vector<4x8xf32>
    %121 = vector.multi_reduction <add>, %120, %cst_77 [2] : vector<4x8x8xf32> to vector<4x8xf32>
    %122 = vector.shape_cast %121 : vector<4x8xf32> to vector<4x8x1xf32>
    %123 = tpu.reciprocal %122 {approx = true} : vector<4x8x1xf32> -> vector<4x8x1xf32>
    %124 = vector.broadcast %123 : vector<4x8x1xf32> to vector<4x8x8xf32>
    %125 = arith.mulf %120, %124 : vector<4x8x8xf32>
    %126 = arith.truncf %125 : vector<4x8x8xf32> to vector<4x8x8xbf16>
    %127 = arith.truncf %110 : vector<4x8x32xf32> to vector<4x8x32xbf16>
    %cst_78 = arith.constant dense<0.000000e+00> : vector<4x8x32xf32>
    %128 = tpu.matmul %126, %127, %cst_78 {dimension_numbers = #tpu.dot_dimension_numbers<[2], [1], [1], [2], [0, 0, 0, 1, 1, 2], [0], [0]>} : vector<4x8x8xbf16>, vector<4x8x32xbf16>, vector<4x8x32xf32> -> vector<4x8x32xf32>
    %129 = arith.truncf %128 : vector<4x8x32xf32> to vector<4x8x32xbf16>
    %cst_79 = arith.constant dense<0.000000e+00> : vector<4x8x128xf32>
    %130 = tpu.matmul %129, %92, %cst_79 {dimension_numbers = #tpu.dot_dimension_numbers<[2], [1], [1], [2], [0, 0, 0, 1, 1, 2], [0], [0]>} : vector<4x8x32xbf16>, vector<4x32x128xbf16>, vector<4x8x128xf32> -> vector<4x8x128xf32>
    %cst_80 = arith.constant dense<0.000000e+00> : vector<8x128xf32>
    %131 = vector.multi_reduction <add>, %130, %cst_80 [0] : vector<4x8x128xf32> to vector<8x128xf32>
    %132 = vector.broadcast %93 : vector<1x128xf32> to vector<8x128xf32>
    %133 = arith.addf %131, %132 : vector<8x128xf32>
    %c0_81 = arith.constant 0 : index
    %c0_82 = arith.constant 0 : index
    %134 = vector.load %arg21[%c0_81, %c0_82] : memref<1x128xf32, #tpu.memory_space<vmem>>, vector<1x128xf32>
    %c0_83 = arith.constant 0 : index
    %c0_84 = arith.constant 0 : index
    %135 = vector.load %arg22[%c0_83, %c0_84] : memref<1x128xf32, #tpu.memory_space<vmem>>, vector<1x128xf32>
    %136 = arith.addf %133, %85 : vector<8x128xf32>
    %cst_85 = arith.constant dense<0.000000e+00> : vector<8xf32>
    %137 = vector.multi_reduction <add>, %136, %cst_85 [1] : vector<8x128xf32> to vector<8xf32>
    %138 = vector.shape_cast %137 : vector<8xf32> to vector<8x1xf32>
    %cst_86 = arith.constant 1.280000e+02 : f32
    %139 = vector.broadcast %cst_86 : f32 to vector<8x1xf32>
    %140 = arith.divf %138, %139 : vector<8x1xf32>
    %141 = vector.broadcast %140 : vector<8x1xf32> to vector<8x128xf32>
    %142 = arith.subf %136, %141 : vector<8x128xf32>
    %143 = arith.mulf %142, %142 : vector<8x128xf32>
    %cst_87 = arith.constant dense<0.000000e+00> : vector<8xf32>
    %144 = vector.multi_reduction <add>, %143, %cst_87 [1] : vector<8x128xf32> to vector<8xf32>
    %145 = vector.shape_cast %144 : vector<8xf32> to vector<8x1xf32>
    %cst_88 = arith.constant 1.280000e+02 : f32
    %146 = vector.broadcast %cst_88 : f32 to vector<8x1xf32>
    %147 = arith.divf %145, %146 : vector<8x1xf32>
    %148 = vector.broadcast %140 : vector<8x1xf32> to vector<8x128xf32>
    %149 = arith.subf %136, %148 : vector<8x128xf32>
    %cst_89 = arith.constant 9.99999974E-6 : f32
    %150 = vector.broadcast %cst_89 : f32 to vector<8x1xf32>
    %151 = arith.addf %147, %150 : vector<8x1xf32>
    %152 = math.rsqrt %151 : vector<8x1xf32>
    %153 = vector.broadcast %152 : vector<8x1xf32> to vector<8x128xf32>
    %154 = arith.mulf %149, %153 : vector<8x128xf32>
    %155 = vector.broadcast %134 : vector<1x128xf32> to vector<8x128xf32>
    %156 = arith.mulf %154, %155 : vector<8x128xf32>
    %157 = vector.broadcast %135 : vector<1x128xf32> to vector<8x128xf32>
    %158 = arith.addf %156, %157 : vector<8x128xf32>
    %c0_90 = arith.constant 0 : index
    %c0_91 = arith.constant 0 : index
    %159 = vector.load %arg23[%c0_90, %c0_91] : memref<128x256xbf16, #tpu.memory_space<vmem>>, vector<128x256xbf16>
    %c0_92 = arith.constant 0 : index
    %c0_93 = arith.constant 0 : index
    %160 = vector.load %arg24[%c0_92, %c0_93] : memref<1x256xf32, #tpu.memory_space<vmem>>, vector<1x256xf32>
    %c0_94 = arith.constant 0 : index
    %c0_95 = arith.constant 0 : index
    %161 = vector.load %arg25[%c0_94, %c0_95] : memref<256x128xbf16, #tpu.memory_space<vmem>>, vector<256x128xbf16>
    %c0_96 = arith.constant 0 : index
    %c0_97 = arith.constant 0 : index
    %162 = vector.load %arg26[%c0_96, %c0_97] : memref<1x128xf32, #tpu.memory_space<vmem>>, vector<1x128xf32>
    %163 = arith.truncf %158 : vector<8x128xf32> to vector<8x128xbf16>
    %cst_98 = arith.constant dense<0.000000e+00> : vector<8x256xf32>
    %164 = tpu.matmul %163, %159, %cst_98 {dimension_numbers = #tpu.dot_dimension_numbers<[1], [0], [0], [1], [0, 0, 1, 1], [], []>} : vector<8x128xbf16>, vector<128x256xbf16>, vector<8x256xf32> -> vector<8x256xf32>
    %165 = vector.broadcast %160 : vector<1x256xf32> to vector<8x256xf32>
    %166 = arith.addf %164, %165 : vector<8x256xf32>
    %cst_99 = arith.constant 0.000000e+00 : f32
    %167 = vector.broadcast %cst_99 : f32 to vector<8x256xf32>
    %168 = arith.maximumf %166, %167 : vector<8x256xf32>
    %169 = arith.truncf %168 : vector<8x256xf32> to vector<8x256xbf16>
    %cst_100 = arith.constant dense<0.000000e+00> : vector<8x128xf32>
    %170 = tpu.matmul %169, %161, %cst_100 {dimension_numbers = #tpu.dot_dimension_numbers<[1], [0], [0], [1], [0, 0, 1, 1], [], []>} : vector<8x256xbf16>, vector<256x128xbf16>, vector<8x128xf32> -> vector<8x128xf32>
    %171 = vector.broadcast %162 : vector<1x128xf32> to vector<8x128xf32>
    %172 = arith.addf %170, %171 : vector<8x128xf32>
    %c0_101 = arith.constant 0 : index
    %c0_102 = arith.constant 0 : index
    %173 = vector.load %arg27[%c0_101, %c0_102] : memref<1x128xf32, #tpu.memory_space<vmem>>, vector<1x128xf32>
    %c0_103 = arith.constant 0 : index
    %c0_104 = arith.constant 0 : index
    %174 = vector.load %arg28[%c0_103, %c0_104] : memref<1x128xf32, #tpu.memory_space<vmem>>, vector<1x128xf32>
    %175 = arith.addf %172, %158 : vector<8x128xf32>
    %cst_105 = arith.constant dense<0.000000e+00> : vector<8xf32>
    %176 = vector.multi_reduction <add>, %175, %cst_105 [1] : vector<8x128xf32> to vector<8xf32>
    %177 = vector.shape_cast %176 : vector<8xf32> to vector<8x1xf32>
    %cst_106 = arith.constant 1.280000e+02 : f32
    %178 = vector.broadcast %cst_106 : f32 to vector<8x1xf32>
    %179 = arith.divf %177, %178 : vector<8x1xf32>
    %180 = vector.broadcast %179 : vector<8x1xf32> to vector<8x128xf32>
    %181 = arith.subf %175, %180 : vector<8x128xf32>
    %182 = arith.mulf %181, %181 : vector<8x128xf32>
    %cst_107 = arith.constant dense<0.000000e+00> : vector<8xf32>
    %183 = vector.multi_reduction <add>, %182, %cst_107 [1] : vector<8x128xf32> to vector<8xf32>
    %184 = vector.shape_cast %183 : vector<8xf32> to vector<8x1xf32>
    %cst_108 = arith.constant 1.280000e+02 : f32
    %185 = vector.broadcast %cst_108 : f32 to vector<8x1xf32>
    %186 = arith.divf %184, %185 : vector<8x1xf32>
    %187 = vector.broadcast %179 : vector<8x1xf32> to vector<8x128xf32>
    %188 = arith.subf %175, %187 : vector<8x128xf32>
    %cst_109 = arith.constant 9.99999974E-6 : f32
    %189 = vector.broadcast %cst_109 : f32 to vector<8x1xf32>
    %190 = arith.addf %186, %189 : vector<8x1xf32>
    %191 = math.rsqrt %190 : vector<8x1xf32>
    %192 = vector.broadcast %191 : vector<8x1xf32> to vector<8x128xf32>
    %193 = arith.mulf %188, %192 : vector<8x128xf32>
    %194 = vector.broadcast %173 : vector<1x128xf32> to vector<8x128xf32>
    %195 = arith.mulf %193, %194 : vector<8x128xf32>
    %196 = vector.broadcast %174 : vector<1x128xf32> to vector<8x128xf32>
    %197 = arith.addf %195, %196 : vector<8x128xf32>
    %c0_110 = arith.constant 0 : index
    %c0_111 = arith.constant 0 : index
    %c0_112 = arith.constant 0 : index
    %198 = vector.load %arg29[%c0_110, %c0_111, %c0_112] : memref<1x8x128xf32, #tpu.memory_space<vmem>>, vector<1x8x128xf32>
    %199 = vector.shape_cast %198 : vector<1x8x128xf32> to vector<8x128xf32>
    %200 = vector.shape_cast %197 : vector<8x128xf32> to vector<1x8x128xf32>
    tpu.vector_store %arg29[%c0_110, %c0_111, %c0_112], %200 {strides = array<i32>} : memref<1x8x128xf32, #tpu.memory_space<vmem>>, vector<1x8x128xf32>,
    return
  }
  func.func @transform_0(%arg0: i32) -> (i32, i32, i32) {
    %c0_i32 = arith.constant 0 : i32
    %c0_i32_0 = arith.constant 0 : i32
    %c0_i32_1 = arith.constant 0 : i32
    return %arg0, %c0_i32, %c0_i32_0 : i32, i32, i32
  }
  func.func @transform_1(%arg0: i32) -> (i32, i32, i32) {
    %c0_i32 = arith.constant 0 : i32
    %c0_i32_0 = arith.constant 0 : i32
    %c0_i32_1 = arith.constant 0 : i32
    return %arg0, %c0_i32, %c0_i32_0 : i32, i32, i32
  }
  func.func @transform_2(%arg0: i32) -> (i32, i32, i32) {
    %c0_i32 = arith.constant 0 : i32
    %c0_i32_0 = arith.constant 0 : i32
    %c0_i32_1 = arith.constant 0 : i32
    %c0_i32_2 = arith.constant 0 : i32
    return %c0_i32, %c0_i32_0, %c0_i32_1 : i32, i32, i32
  }
  func.func @transform_3(%arg0: i32) -> (i32, i32, i32) {
    %c0_i32 = arith.constant 0 : i32
    %c0_i32_0 = arith.constant 0 : i32
    %c0_i32_1 = arith.constant 0 : i32
    %c0_i32_2 = arith.constant 0 : i32
    return %c0_i32, %c0_i32_0, %c0_i32_1 : i32, i32, i32
  }
  func.func @transform_4(%arg0: i32) -> (i32, i32, i32) {
    %c0_i32 = arith.constant 0 : i32
    %c0_i32_0 = arith.constant 0 : i32
    %c0_i32_1 = arith.constant 0 : i32
    %c0_i32_2 = arith.constant 0 : i32
    return %c0_i32, %c0_i32_0, %c0_i32_1 : i32, i32, i32
  }
  func.func @transform_5(%arg0: i32) -> (i32, i32, i32) {
    %c0_i32 = arith.constant 0 : i32
    %c0_i32_0 = arith.constant 0 : i32
    %c0_i32_1 = arith.constant 0 : i32
    %c0_i32_2 = arith.constant 0 : i32
    return %c0_i32, %c0_i32_0, %c0_i32_1 : i32, i32, i32
  }
  func.func @transform_6(%arg0: i32) -> (i32, i32, i32) {
    %c0_i32 = arith.constant 0 : i32
    %c0_i32_0 = arith.constant 0 : i32
    %c0_i32_1 = arith.constant 0 : i32
    %c0_i32_2 = arith.constant 0 : i32
    return %c0_i32, %c0_i32_0, %c0_i32_1 : i32, i32, i32
  }
  func.func @transform_7(%arg0: i32) -> (i32, i32, i32) {
    %c0_i32 = arith.constant 0 : i32
    %c0_i32_0 = arith.constant 0 : i32
    %c0_i32_1 = arith.constant 0 : i32
    %c0_i32_2 = arith.constant 0 : i32
    return %c0_i32, %c0_i32_0, %c0_i32_1 : i32, i32, i32
  }
  func.func @transform_8(%arg0: i32) -> (i32, i32, i32) {
    %c0_i32 = arith.constant 0 : i32
    %c0_i32_0 = arith.constant 0 : i32
    %c0_i32_1 = arith.constant 0 : i32
    %c0_i32_2 = arith.constant 0 : i32
    return %c0_i32, %c0_i32_0, %c0_i32_1 : i32, i32, i32
  }
  func.func @transform_9(%arg0: i32) -> (i32, i32) {
    %c0_i32 = arith.constant 0 : i32
    %c0_i32_0 = arith.constant 0 : i32
    %c0_i32_1 = arith.constant 0 : i32
    return %c0_i32, %c0_i32_0 : i32, i32
  }
  func.func @transform_10(%arg0: i32) -> (i32, i32) {
    %c0_i32 = arith.constant 0 : i32
    %c0_i32_0 = arith.constant 0 : i32
    %c0_i32_1 = arith.constant 0 : i32
    return %c0_i32, %c0_i32_0 : i32, i32
  }
  func.func @transform_11(%arg0: i32) -> (i32, i32) {
    %c0_i32 = arith.constant 0 : i32
    %c0_i32_0 = arith.constant 0 : i32
    %c0_i32_1 = arith.constant 0 : i32
    return %c0_i32, %c0_i32_0 : i32, i32
  }
  func.func @transform_12(%arg0: i32) -> (i32, i32, i32) {
    %c0_i32 = arith.constant 0 : i32
    %c0_i32_0 = arith.constant 0 : i32
    %c0_i32_1 = arith.constant 0 : i32
    %c0_i32_2 = arith.constant 0 : i32
    return %c0_i32, %c0_i32_0, %c0_i32_1 : i32, i32, i32
  }
  func.func @transform_13(%arg0: i32) -> (i32, i32, i32) {
    %c0_i32 = arith.constant 0 : i32
    %c0_i32_0 = arith.constant 0 : i32
    %c0_i32_1 = arith.constant 0 : i32
    %c0_i32_2 = arith.constant 0 : i32
    return %c0_i32, %c0_i32_0, %c0_i32_1 : i32, i32, i32
  }
  func.func @transform_14(%arg0: i32) -> (i32, i32, i32) {
    %c0_i32 = arith.constant 0 : i32
    %c0_i32_0 = arith.constant 0 : i32
    %c0_i32_1 = arith.constant 0 : i32
    %c0_i32_2 = arith.constant 0 : i32
    return %c0_i32, %c0_i32_0, %c0_i32_1 : i32, i32, i32
  }
  func.func @transform_15(%arg0: i32) -> (i32, i32, i32) {
    %c0_i32 = arith.constant 0 : i32
    %c0_i32_0 = arith.constant 0 : i32
    %c0_i32_1 = arith.constant 0 : i32
    %c0_i32_2 = arith.constant 0 : i32
    return %c0_i32, %c0_i32_0, %c0_i32_1 : i32, i32, i32
  }
  func.func @transform_16(%arg0: i32) -> (i32, i32, i32) {
    %c0_i32 = arith.constant 0 : i32
    %c0_i32_0 = arith.constant 0 : i32
    %c0_i32_1 = arith.constant 0 : i32
    %c0_i32_2 = arith.constant 0 : i32
    return %c0_i32, %c0_i32_0, %c0_i32_1 : i32, i32, i32
  }
  func.func @transform_17(%arg0: i32) -> (i32, i32, i32) {
    %c0_i32 = arith.constant 0 : i32
    %c0_i32_0 = arith.constant 0 : i32
    %c0_i32_1 = arith.constant 0 : i32
    %c0_i32_2 = arith.constant 0 : i32
    return %c0_i32, %c0_i32_0, %c0_i32_1 : i32, i32, i32
  }
  func.func @transform_18(%arg0: i32) -> (i32, i32, i32) {
    %c0_i32 = arith.constant 0 : i32
    %c0_i32_0 = arith.constant 0 : i32
    %c0_i32_1 = arith.constant 0 : i32
    %c0_i32_2 = arith.constant 0 : i32
    return %c0_i32, %c0_i32_0, %c0_i32_1 : i32, i32, i32
  }
  func.func @transform_19(%arg0: i32) -> (i32, i32) {
    %c0_i32 = arith.constant 0 : i32
    %c0_i32_0 = arith.constant 0 : i32
    %c0_i32_1 = arith.constant 0 : i32
    return %c0_i32, %c0_i32_0 : i32, i32
  }
  func.func @transform_20(%arg0: i32) -> (i32, i32) {
    %c0_i32 = arith.constant 0 : i32
    %c0_i32_0 = arith.constant 0 : i32
    %c0_i32_1 = arith.constant 0 : i32
    return %c0_i32, %c0_i32_0 : i32, i32
  }
  func.func @transform_21(%arg0: i32) -> (i32, i32) {
    %c0_i32 = arith.constant 0 : i32
    %c0_i32_0 = arith.constant 0 : i32
    %c0_i32_1 = arith.constant 0 : i32
    return %c0_i32, %c0_i32_0 : i32, i32
  }
  func.func @transform_22(%arg0: i32) -> (i32, i32) {
    %c0_i32 = arith.constant 0 : i32
    %c0_i32_0 = arith.constant 0 : i32
    %c0_i32_1 = arith.constant 0 : i32
    return %c0_i32, %c0_i32_0 : i32, i32
  }
  func.func @transform_23(%arg0: i32) -> (i32, i32) {
    %c0_i32 = arith.constant 0 : i32
    %c0_i32_0 = arith.constant 0 : i32
    %c0_i32_1 = arith.constant 0 : i32
    return %c0_i32, %c0_i32_0 : i32, i32
  }
  func.func @transform_24(%arg0: i32) -> (i32, i32) {
    %c0_i32 = arith.constant 0 : i32
    %c0_i32_0 = arith.constant 0 : i32
    %c0_i32_1 = arith.constant 0 : i32
    return %c0_i32, %c0_i32_0 : i32, i32
  }
  func.func @transform_25(%arg0: i32) -> (i32, i32) {
    %c0_i32 = arith.constant 0 : i32
    %c0_i32_0 = arith.constant 0 : i32
    %c0_i32_1 = arith.constant 0 : i32
    return %c0_i32, %c0_i32_0 : i32, i32
  }
  func.func @transform_26(%arg0: i32) -> (i32, i32) {
    %c0_i32 = arith.constant 0 : i32
    %c0_i32_0 = arith.constant 0 : i32
    %c0_i32_1 = arith.constant 0 : i32
    return %c0_i32, %c0_i32_0 : i32, i32
  }
  func.func @transform_27(%arg0: i32) -> (i32, i32) {
    %c0_i32 = arith.constant 0 : i32
    %c0_i32_0 = arith.constant 0 : i32
    %c0_i32_1 = arith.constant 0 : i32
    return %c0_i32, %c0_i32_0 : i32, i32
  }
  func.func @transform_28(%arg0: i32) -> (i32, i32, i32) {
    %c0_i32 = arith.constant 0 : i32
    %c0_i32_0 = arith.constant 0 : i32
    %c0_i32_1 = arith.constant 0 : i32
    return %arg0, %c0_i32, %c0_i32_0 : i32, i32, i32
  }
}

module attributes {stable_mosaic.version = 11 : i64} {
  func.func @_encoder_layer_kernel(%arg0: i32, %arg1: memref<1x8x128xf32, #tpu.memory_space<vmem>>, %arg2: memref<4x128x32xbf16, #tpu.memory_space<vmem>>, %arg3: memref<4x1x32xf32, #tpu.memory_space<vmem>>, %arg4: memref<4x128x32xbf16, #tpu.memory_space<vmem>>, %arg5: memref<4x1x32xf32, #tpu.memory_space<vmem>>, %arg6: memref<4x128x32xbf16, #tpu.memory_space<vmem>>, %arg7: memref<4x1x32xf32, #tpu.memory_space<vmem>>, %arg8: memref<4x32x128xbf16, #tpu.memory_space<vmem>>, %arg9: memref<1x128xf32, #tpu.memory_space<vmem>>, %arg10: memref<1x128xf32, #tpu.memory_space<vmem>>, %arg11: memref<1x128xf32, #tpu.memory_space<vmem>>, %arg12: memref<128x256xbf16, #tpu.memory_space<vmem>>, %arg13: memref<1x256xf32, #tpu.memory_space<vmem>>, %arg14: memref<256x128xbf16, #tpu.memory_space<vmem>>, %arg15: memref<1x128xf32, #tpu.memory_space<vmem>>, %arg16: memref<1x128xf32, #tpu.memory_space<vmem>>, %arg17: memref<1x128xf32, #tpu.memory_space<vmem>>, %arg18: memref<1x8x128xf32, #tpu.memory_space<vmem>>) attributes {dimension_semantics = [#tpu.dimension_semantics<parallel>], iteration_bounds = array<i64: 2>, scalar_prefetch = 0 : i64, scratch_operands = 0 : i64, tpu.core_type = #tpu.core_type<tc>, window_params = [{transform_indices = @transform_0, window_bounds = array<i64: 1, 8, 128>}, {pipeline_mode = #tpu.pipeline_mode<synchronous>, transform_indices = @transform_1, window_bounds = array<i64: 4, 128, 32>}, {pipeline_mode = #tpu.pipeline_mode<synchronous>, transform_indices = @transform_2, window_bounds = array<i64: 4, 1, 32>}, {pipeline_mode = #tpu.pipeline_mode<synchronous>, transform_indices = @transform_3, window_bounds = array<i64: 4, 128, 32>}, {pipeline_mode = #tpu.pipeline_mode<synchronous>, transform_indices = @transform_4, window_bounds = array<i64: 4, 1, 32>}, {pipeline_mode = #tpu.pipeline_mode<synchronous>, transform_indices = @transform_5, window_bounds = array<i64: 4, 128, 32>}, {pipeline_mode = #tpu.pipeline_mode<synchronous>, transform_indices = @transform_6, window_bounds = array<i64: 4, 1, 32>}, {pipeline_mode = #tpu.pipeline_mode<synchronous>, transform_indices = @transform_7, window_bounds = array<i64: 4, 32, 128>}, {pipeline_mode = #tpu.pipeline_mode<synchronous>, transform_indices = @transform_8, window_bounds = array<i64: 1, 128>}, {pipeline_mode = #tpu.pipeline_mode<synchronous>, transform_indices = @transform_9, window_bounds = array<i64: 1, 128>}, {pipeline_mode = #tpu.pipeline_mode<synchronous>, transform_indices = @transform_10, window_bounds = array<i64: 1, 128>}, {pipeline_mode = #tpu.pipeline_mode<synchronous>, transform_indices = @transform_11, window_bounds = array<i64: 128, 256>}, {pipeline_mode = #tpu.pipeline_mode<synchronous>, transform_indices = @transform_12, window_bounds = array<i64: 1, 256>}, {pipeline_mode = #tpu.pipeline_mode<synchronous>, transform_indices = @transform_13, window_bounds = array<i64: 256, 128>}, {pipeline_mode = #tpu.pipeline_mode<synchronous>, transform_indices = @transform_14, window_bounds = array<i64: 1, 128>}, {pipeline_mode = #tpu.pipeline_mode<synchronous>, transform_indices = @transform_15, window_bounds = array<i64: 1, 128>}, {pipeline_mode = #tpu.pipeline_mode<synchronous>, transform_indices = @transform_16, window_bounds = array<i64: 1, 128>}, {transform_indices = @transform_17, window_bounds = array<i64: 1, 8, 128>}]} {
    %c0 = arith.constant 0 : index
    %c0_0 = arith.constant 0 : index
    %c0_1 = arith.constant 0 : index
    %0 = vector.load %arg1[%c0, %c0_0, %c0_1] : memref<1x8x128xf32, #tpu.memory_space<vmem>>, vector<1x8x128xf32>
    %1 = vector.shape_cast %0 : vector<1x8x128xf32> to vector<8x128xf32>
    %c0_2 = arith.constant 0 : index
    %c0_3 = arith.constant 0 : index
    %c0_4 = arith.constant 0 : index
    %2 = vector.load %arg2[%c0_2, %c0_3, %c0_4] : memref<4x128x32xbf16, #tpu.memory_space<vmem>>, vector<4x128x32xbf16>
    %c0_5 = arith.constant 0 : index
    %c0_6 = arith.constant 0 : index
    %c0_7 = arith.constant 0 : index
    %3 = vector.load %arg3[%c0_5, %c0_6, %c0_7] : memref<4x1x32xf32, #tpu.memory_space<vmem>>, vector<4x1x32xf32>
    %c0_8 = arith.constant 0 : index
    %c0_9 = arith.constant 0 : index
    %c0_10 = arith.constant 0 : index
    %4 = vector.load %arg4[%c0_8, %c0_9, %c0_10] : memref<4x128x32xbf16, #tpu.memory_space<vmem>>, vector<4x128x32xbf16>
    %c0_11 = arith.constant 0 : index
    %c0_12 = arith.constant 0 : index
    %c0_13 = arith.constant 0 : index
    %5 = vector.load %arg5[%c0_11, %c0_12, %c0_13] : memref<4x1x32xf32, #tpu.memory_space<vmem>>, vector<4x1x32xf32>
    %c0_14 = arith.constant 0 : index
    %c0_15 = arith.constant 0 : index
    %c0_16 = arith.constant 0 : index
    %6 = vector.load %arg6[%c0_14, %c0_15, %c0_16] : memref<4x128x32xbf16, #tpu.memory_space<vmem>>, vector<4x128x32xbf16>
    %c0_17 = arith.constant 0 : index
    %c0_18 = arith.constant 0 : index
    %c0_19 = arith.constant 0 : index
    %7 = vector.load %arg7[%c0_17, %c0_18, %c0_19] : memref<4x1x32xf32, #tpu.memory_space<vmem>>, vector<4x1x32xf32>
    %c0_20 = arith.constant 0 : index
    %c0_21 = arith.constant 0 : index
    %c0_22 = arith.constant 0 : index
    %8 = vector.load %arg8[%c0_20, %c0_21, %c0_22] : memref<4x32x128xbf16, #tpu.memory_space<vmem>>, vector<4x32x128xbf16>
    %c0_23 = arith.constant 0 : index
    %c0_24 = arith.constant 0 : index
    %9 = vector.load %arg9[%c0_23, %c0_24] : memref<1x128xf32, #tpu.memory_space<vmem>>, vector<1x128xf32>
    %10 = arith.truncf %1 : vector<8x128xf32> to vector<8x128xbf16>
    %11 = vector.shape_cast %10 : vector<8x128xbf16> to vector<1x8x128xbf16>
    %12 = vector.shape_cast %11 : vector<1x8x128xbf16> to vector<1x8x128xbf16>
    %13 = vector.broadcast %12 : vector<1x8x128xbf16> to vector<4x8x128xbf16>
    %14 = arith.truncf %1 : vector<8x128xf32> to vector<8x128xbf16>
    %15 = vector.shape_cast %14 : vector<8x128xbf16> to vector<1x8x128xbf16>
    %16 = vector.shape_cast %15 : vector<1x8x128xbf16> to vector<1x8x128xbf16>
    %17 = vector.broadcast %16 : vector<1x8x128xbf16> to vector<4x8x128xbf16>
    %cst = arith.constant dense<0.000000e+00> : vector<4x8x32xf32>
    %18 = tpu.matmul %13, %2, %cst {dimension_numbers = #tpu.dot_dimension_numbers<[2], [1], [1], [2], [0, 0, 0, 1, 1, 2], [0], [0]>} : vector<4x8x128xbf16>, vector<4x128x32xbf16>, vector<4x8x32xf32> -> vector<4x8x32xf32>
    %19 = vector.broadcast %3 : vector<4x1x32xf32> to vector<4x8x32xf32>
    %20 = arith.addf %18, %19 : vector<4x8x32xf32>
    %cst_25 = arith.constant dense<0.000000e+00> : vector<4x8x32xf32>
    %21 = tpu.matmul %17, %4, %cst_25 {dimension_numbers = #tpu.dot_dimension_numbers<[2], [1], [1], [2], [0, 0, 0, 1, 1, 2], [0], [0]>} : vector<4x8x128xbf16>, vector<4x128x32xbf16>, vector<4x8x32xf32> -> vector<4x8x32xf32>
    %22 = vector.broadcast %5 : vector<4x1x32xf32> to vector<4x8x32xf32>
    %23 = arith.addf %21, %22 : vector<4x8x32xf32>
    %cst_26 = arith.constant dense<0.000000e+00> : vector<4x8x32xf32>
    %24 = tpu.matmul %17, %6, %cst_26 {dimension_numbers = #tpu.dot_dimension_numbers<[2], [1], [1], [2], [0, 0, 0, 1, 1, 2], [0], [0]>} : vector<4x8x128xbf16>, vector<4x128x32xbf16>, vector<4x8x32xf32> -> vector<4x8x32xf32>
    %25 = vector.broadcast %7 : vector<4x1x32xf32> to vector<4x8x32xf32>
    %26 = arith.addf %24, %25 : vector<4x8x32xf32>
    %27 = arith.truncf %20 : vector<4x8x32xf32> to vector<4x8x32xbf16>
    %28 = arith.truncf %23 : vector<4x8x32xf32> to vector<4x8x32xbf16>
    %cst_27 = arith.constant dense<0.000000e+00> : vector<4x8x8xf32>
    %29 = tpu.matmul %27, %28, %cst_27 {dimension_numbers = #tpu.dot_dimension_numbers<[2], [2], [1], [1], [0, 0, 0, 1, 1, 1], [0], [0]>} : vector<4x8x32xbf16>, vector<4x8x32xbf16>, vector<4x8x8xf32> -> vector<4x8x8xf32>
    %cst_28 = arith.constant 0.176776692 : f32
    %30 = vector.broadcast %cst_28 : f32 to vector<4x8x8xf32>
    %31 = arith.mulf %29, %30 : vector<4x8x8xf32>
    %cst_29 = arith.constant dense<0xFF800000> : vector<4x8xf32>
    %32 = vector.multi_reduction <maximumf>, %31, %cst_29 [2] : vector<4x8x8xf32> to vector<4x8xf32>
    %33 = vector.shape_cast %32 : vector<4x8xf32> to vector<4x8x1xf32>
    %34 = vector.broadcast %33 : vector<4x8x1xf32> to vector<4x8x8xf32>
    %35 = arith.subf %31, %34 : vector<4x8x8xf32>
    %36 = math.exp %35 : vector<4x8x8xf32>
    %cst_30 = arith.constant dense<0.000000e+00> : vector<4x8xf32>
    %37 = vector.multi_reduction <add>, %36, %cst_30 [2] : vector<4x8x8xf32> to vector<4x8xf32>
    %38 = vector.shape_cast %37 : vector<4x8xf32> to vector<4x8x1xf32>
    %39 = tpu.reciprocal %38 {approx = true} : vector<4x8x1xf32> -> vector<4x8x1xf32>
    %40 = vector.broadcast %39 : vector<4x8x1xf32> to vector<4x8x8xf32>
    %41 = arith.mulf %36, %40 : vector<4x8x8xf32>
    %42 = arith.truncf %41 : vector<4x8x8xf32> to vector<4x8x8xbf16>
    %43 = arith.truncf %26 : vector<4x8x32xf32> to vector<4x8x32xbf16>
    %cst_31 = arith.constant dense<0.000000e+00> : vector<4x8x32xf32>
    %44 = tpu.matmul %42, %43, %cst_31 {dimension_numbers = #tpu.dot_dimension_numbers<[2], [1], [1], [2], [0, 0, 0, 1, 1, 2], [0], [0]>} : vector<4x8x8xbf16>, vector<4x8x32xbf16>, vector<4x8x32xf32> -> vector<4x8x32xf32>
    %45 = arith.truncf %44 : vector<4x8x32xf32> to vector<4x8x32xbf16>
    %cst_32 = arith.constant dense<0.000000e+00> : vector<4x8x128xf32>
    %46 = tpu.matmul %45, %8, %cst_32 {dimension_numbers = #tpu.dot_dimension_numbers<[2], [1], [1], [2], [0, 0, 0, 1, 1, 2], [0], [0]>} : vector<4x8x32xbf16>, vector<4x32x128xbf16>, vector<4x8x128xf32> -> vector<4x8x128xf32>
    %cst_33 = arith.constant dense<0.000000e+00> : vector<8x128xf32>
    %47 = vector.multi_reduction <add>, %46, %cst_33 [0] : vector<4x8x128xf32> to vector<8x128xf32>
    %48 = vector.broadcast %9 : vector<1x128xf32> to vector<8x128xf32>
    %49 = arith.addf %47, %48 : vector<8x128xf32>
    %c0_34 = arith.constant 0 : index
    %c0_35 = arith.constant 0 : index
    %50 = vector.load %arg10[%c0_34, %c0_35] : memref<1x128xf32, #tpu.memory_space<vmem>>, vector<1x128xf32>
    %c0_36 = arith.constant 0 : index
    %c0_37 = arith.constant 0 : index
    %51 = vector.load %arg11[%c0_36, %c0_37] : memref<1x128xf32, #tpu.memory_space<vmem>>, vector<1x128xf32>
    %52 = arith.addf %49, %1 : vector<8x128xf32>
    %cst_38 = arith.constant dense<0.000000e+00> : vector<8xf32>
    %53 = vector.multi_reduction <add>, %52, %cst_38 [1] : vector<8x128xf32> to vector<8xf32>
    %54 = vector.shape_cast %53 : vector<8xf32> to vector<8x1xf32>
    %cst_39 = arith.constant 1.280000e+02 : f32
    %55 = vector.broadcast %cst_39 : f32 to vector<8x1xf32>
    %56 = arith.divf %54, %55 : vector<8x1xf32>
    %57 = vector.broadcast %56 : vector<8x1xf32> to vector<8x128xf32>
    %58 = arith.subf %52, %57 : vector<8x128xf32>
    %59 = arith.mulf %58, %58 : vector<8x128xf32>
    %cst_40 = arith.constant dense<0.000000e+00> : vector<8xf32>
    %60 = vector.multi_reduction <add>, %59, %cst_40 [1] : vector<8x128xf32> to vector<8xf32>
    %61 = vector.shape_cast %60 : vector<8xf32> to vector<8x1xf32>
    %cst_41 = arith.constant 1.280000e+02 : f32
    %62 = vector.broadcast %cst_41 : f32 to vector<8x1xf32>
    %63 = arith.divf %61, %62 : vector<8x1xf32>
    %64 = vector.broadcast %56 : vector<8x1xf32> to vector<8x128xf32>
    %65 = arith.subf %52, %64 : vector<8x128xf32>
    %cst_42 = arith.constant 9.99999974E-6 : f32
    %66 = vector.broadcast %cst_42 : f32 to vector<8x1xf32>
    %67 = arith.addf %63, %66 : vector<8x1xf32>
    %68 = math.rsqrt %67 : vector<8x1xf32>
    %69 = vector.broadcast %68 : vector<8x1xf32> to vector<8x128xf32>
    %70 = arith.mulf %65, %69 : vector<8x128xf32>
    %71 = vector.broadcast %50 : vector<1x128xf32> to vector<8x128xf32>
    %72 = arith.mulf %70, %71 : vector<8x128xf32>
    %73 = vector.broadcast %51 : vector<1x128xf32> to vector<8x128xf32>
    %74 = arith.addf %72, %73 : vector<8x128xf32>
    %c0_43 = arith.constant 0 : index
    %c0_44 = arith.constant 0 : index
    %75 = vector.load %arg12[%c0_43, %c0_44] : memref<128x256xbf16, #tpu.memory_space<vmem>>, vector<128x256xbf16>
    %c0_45 = arith.constant 0 : index
    %c0_46 = arith.constant 0 : index
    %76 = vector.load %arg13[%c0_45, %c0_46] : memref<1x256xf32, #tpu.memory_space<vmem>>, vector<1x256xf32>
    %c0_47 = arith.constant 0 : index
    %c0_48 = arith.constant 0 : index
    %77 = vector.load %arg14[%c0_47, %c0_48] : memref<256x128xbf16, #tpu.memory_space<vmem>>, vector<256x128xbf16>
    %c0_49 = arith.constant 0 : index
    %c0_50 = arith.constant 0 : index
    %78 = vector.load %arg15[%c0_49, %c0_50] : memref<1x128xf32, #tpu.memory_space<vmem>>, vector<1x128xf32>
    %79 = arith.truncf %74 : vector<8x128xf32> to vector<8x128xbf16>
    %cst_51 = arith.constant dense<0.000000e+00> : vector<8x256xf32>
    %80 = tpu.matmul %79, %75, %cst_51 {dimension_numbers = #tpu.dot_dimension_numbers<[1], [0], [0], [1], [0, 0, 1, 1], [], []>} : vector<8x128xbf16>, vector<128x256xbf16>, vector<8x256xf32> -> vector<8x256xf32>
    %81 = vector.broadcast %76 : vector<1x256xf32> to vector<8x256xf32>
    %82 = arith.addf %80, %81 : vector<8x256xf32>
    %cst_52 = arith.constant 0.000000e+00 : f32
    %83 = vector.broadcast %cst_52 : f32 to vector<8x256xf32>
    %84 = arith.maximumf %82, %83 : vector<8x256xf32>
    %85 = arith.truncf %84 : vector<8x256xf32> to vector<8x256xbf16>
    %cst_53 = arith.constant dense<0.000000e+00> : vector<8x128xf32>
    %86 = tpu.matmul %85, %77, %cst_53 {dimension_numbers = #tpu.dot_dimension_numbers<[1], [0], [0], [1], [0, 0, 1, 1], [], []>} : vector<8x256xbf16>, vector<256x128xbf16>, vector<8x128xf32> -> vector<8x128xf32>
    %87 = vector.broadcast %78 : vector<1x128xf32> to vector<8x128xf32>
    %88 = arith.addf %86, %87 : vector<8x128xf32>
    %c0_54 = arith.constant 0 : index
    %c0_55 = arith.constant 0 : index
    %89 = vector.load %arg16[%c0_54, %c0_55] : memref<1x128xf32, #tpu.memory_space<vmem>>, vector<1x128xf32>
    %c0_56 = arith.constant 0 : index
    %c0_57 = arith.constant 0 : index
    %90 = vector.load %arg17[%c0_56, %c0_57] : memref<1x128xf32, #tpu.memory_space<vmem>>, vector<1x128xf32>
    %91 = arith.addf %88, %74 : vector<8x128xf32>
    %cst_58 = arith.constant dense<0.000000e+00> : vector<8xf32>
    %92 = vector.multi_reduction <add>, %91, %cst_58 [1] : vector<8x128xf32> to vector<8xf32>
    %93 = vector.shape_cast %92 : vector<8xf32> to vector<8x1xf32>
    %cst_59 = arith.constant 1.280000e+02 : f32
    %94 = vector.broadcast %cst_59 : f32 to vector<8x1xf32>
    %95 = arith.divf %93, %94 : vector<8x1xf32>
    %96 = vector.broadcast %95 : vector<8x1xf32> to vector<8x128xf32>
    %97 = arith.subf %91, %96 : vector<8x128xf32>
    %98 = arith.mulf %97, %97 : vector<8x128xf32>
    %cst_60 = arith.constant dense<0.000000e+00> : vector<8xf32>
    %99 = vector.multi_reduction <add>, %98, %cst_60 [1] : vector<8x128xf32> to vector<8xf32>
    %100 = vector.shape_cast %99 : vector<8xf32> to vector<8x1xf32>
    %cst_61 = arith.constant 1.280000e+02 : f32
    %101 = vector.broadcast %cst_61 : f32 to vector<8x1xf32>
    %102 = arith.divf %100, %101 : vector<8x1xf32>
    %103 = vector.broadcast %95 : vector<8x1xf32> to vector<8x128xf32>
    %104 = arith.subf %91, %103 : vector<8x128xf32>
    %cst_62 = arith.constant 9.99999974E-6 : f32
    %105 = vector.broadcast %cst_62 : f32 to vector<8x1xf32>
    %106 = arith.addf %102, %105 : vector<8x1xf32>
    %107 = math.rsqrt %106 : vector<8x1xf32>
    %108 = vector.broadcast %107 : vector<8x1xf32> to vector<8x128xf32>
    %109 = arith.mulf %104, %108 : vector<8x128xf32>
    %110 = vector.broadcast %89 : vector<1x128xf32> to vector<8x128xf32>
    %111 = arith.mulf %109, %110 : vector<8x128xf32>
    %112 = vector.broadcast %90 : vector<1x128xf32> to vector<8x128xf32>
    %113 = arith.addf %111, %112 : vector<8x128xf32>
    %c0_63 = arith.constant 0 : index
    %c0_64 = arith.constant 0 : index
    %c0_65 = arith.constant 0 : index
    %114 = vector.load %arg18[%c0_63, %c0_64, %c0_65] : memref<1x8x128xf32, #tpu.memory_space<vmem>>, vector<1x8x128xf32>
    %115 = vector.shape_cast %114 : vector<1x8x128xf32> to vector<8x128xf32>
    %116 = vector.shape_cast %113 : vector<8x128xf32> to vector<1x8x128xf32>
    tpu.vector_store %arg18[%c0_63, %c0_64, %c0_65], %116 {strides = array<i32>} : memref<1x8x128xf32, #tpu.memory_space<vmem>>, vector<1x8x128xf32>,
    return
  }
  func.func @transform_0(%arg0: i32) -> (i32, i32, i32) {
    %c0_i32 = arith.constant 0 : i32
    %c0_i32_0 = arith.constant 0 : i32
    %c0_i32_1 = arith.constant 0 : i32
    return %arg0, %c0_i32, %c0_i32_0 : i32, i32, i32
  }
  func.func @transform_1(%arg0: i32) -> (i32, i32, i32) {
    %c0_i32 = arith.constant 0 : i32
    %c0_i32_0 = arith.constant 0 : i32
    %c0_i32_1 = arith.constant 0 : i32
    %c0_i32_2 = arith.constant 0 : i32
    return %c0_i32, %c0_i32_0, %c0_i32_1 : i32, i32, i32
  }
  func.func @transform_2(%arg0: i32) -> (i32, i32, i32) {
    %c0_i32 = arith.constant 0 : i32
    %c0_i32_0 = arith.constant 0 : i32
    %c0_i32_1 = arith.constant 0 : i32
    %c0_i32_2 = arith.constant 0 : i32
    return %c0_i32, %c0_i32_0, %c0_i32_1 : i32, i32, i32
  }
  func.func @transform_3(%arg0: i32) -> (i32, i32, i32) {
    %c0_i32 = arith.constant 0 : i32
    %c0_i32_0 = arith.constant 0 : i32
    %c0_i32_1 = arith.constant 0 : i32
    %c0_i32_2 = arith.constant 0 : i32
    return %c0_i32, %c0_i32_0, %c0_i32_1 : i32, i32, i32
  }
  func.func @transform_4(%arg0: i32) -> (i32, i32, i32) {
    %c0_i32 = arith.constant 0 : i32
    %c0_i32_0 = arith.constant 0 : i32
    %c0_i32_1 = arith.constant 0 : i32
    %c0_i32_2 = arith.constant 0 : i32
    return %c0_i32, %c0_i32_0, %c0_i32_1 : i32, i32, i32
  }
  func.func @transform_5(%arg0: i32) -> (i32, i32, i32) {
    %c0_i32 = arith.constant 0 : i32
    %c0_i32_0 = arith.constant 0 : i32
    %c0_i32_1 = arith.constant 0 : i32
    %c0_i32_2 = arith.constant 0 : i32
    return %c0_i32, %c0_i32_0, %c0_i32_1 : i32, i32, i32
  }
  func.func @transform_6(%arg0: i32) -> (i32, i32, i32) {
    %c0_i32 = arith.constant 0 : i32
    %c0_i32_0 = arith.constant 0 : i32
    %c0_i32_1 = arith.constant 0 : i32
    %c0_i32_2 = arith.constant 0 : i32
    return %c0_i32, %c0_i32_0, %c0_i32_1 : i32, i32, i32
  }
  func.func @transform_7(%arg0: i32) -> (i32, i32, i32) {
    %c0_i32 = arith.constant 0 : i32
    %c0_i32_0 = arith.constant 0 : i32
    %c0_i32_1 = arith.constant 0 : i32
    %c0_i32_2 = arith.constant 0 : i32
    return %c0_i32, %c0_i32_0, %c0_i32_1 : i32, i32, i32
  }
  func.func @transform_8(%arg0: i32) -> (i32, i32) {
    %c0_i32 = arith.constant 0 : i32
    %c0_i32_0 = arith.constant 0 : i32
    %c0_i32_1 = arith.constant 0 : i32
    return %c0_i32, %c0_i32_0 : i32, i32
  }
  func.func @transform_9(%arg0: i32) -> (i32, i32) {
    %c0_i32 = arith.constant 0 : i32
    %c0_i32_0 = arith.constant 0 : i32
    %c0_i32_1 = arith.constant 0 : i32
    return %c0_i32, %c0_i32_0 : i32, i32
  }
  func.func @transform_10(%arg0: i32) -> (i32, i32) {
    %c0_i32 = arith.constant 0 : i32
    %c0_i32_0 = arith.constant 0 : i32
    %c0_i32_1 = arith.constant 0 : i32
    return %c0_i32, %c0_i32_0 : i32, i32
  }
  func.func @transform_11(%arg0: i32) -> (i32, i32) {
    %c0_i32 = arith.constant 0 : i32
    %c0_i32_0 = arith.constant 0 : i32
    %c0_i32_1 = arith.constant 0 : i32
    return %c0_i32, %c0_i32_0 : i32, i32
  }
  func.func @transform_12(%arg0: i32) -> (i32, i32) {
    %c0_i32 = arith.constant 0 : i32
    %c0_i32_0 = arith.constant 0 : i32
    %c0_i32_1 = arith.constant 0 : i32
    return %c0_i32, %c0_i32_0 : i32, i32
  }
  func.func @transform_13(%arg0: i32) -> (i32, i32) {
    %c0_i32 = arith.constant 0 : i32
    %c0_i32_0 = arith.constant 0 : i32
    %c0_i32_1 = arith.constant 0 : i32
    return %c0_i32, %c0_i32_0 : i32, i32
  }
  func.func @transform_14(%arg0: i32) -> (i32, i32) {
    %c0_i32 = arith.constant 0 : i32
    %c0_i32_0 = arith.constant 0 : i32
    %c0_i32_1 = arith.constant 0 : i32
    return %c0_i32, %c0_i32_0 : i32, i32
  }
  func.func @transform_15(%arg0: i32) -> (i32, i32) {
    %c0_i32 = arith.constant 0 : i32
    %c0_i32_0 = arith.constant 0 : i32
    %c0_i32_1 = arith.constant 0 : i32
    return %c0_i32, %c0_i32_0 : i32, i32
  }
  func.func @transform_16(%arg0: i32) -> (i32, i32) {
    %c0_i32 = arith.constant 0 : i32
    %c0_i32_0 = arith.constant 0 : i32
    %c0_i32_1 = arith.constant 0 : i32
    return %c0_i32, %c0_i32_0 : i32, i32
  }
  func.func @transform_17(%arg0: i32) -> (i32, i32, i32) {
    %c0_i32 = arith.constant 0 : i32
    %c0_i32_0 = arith.constant 0 : i32
    %c0_i32_1 = arith.constant 0 : i32
    return %arg0, %c0_i32, %c0_i32_0 : i32, i32, i32
  }
}

module attributes {stable_mosaic.version = 11 : i64} {
  func.func @_proj_kernel(%arg0: i32, %arg1: memref<1x8x128xf32, #tpu.memory_space<vmem>>, %arg2: memref<128x256xbf16, #tpu.memory_space<vmem>>, %arg3: memref<1x256xf32, #tpu.memory_space<vmem>>, %arg4: memref<1x8x256xf32, #tpu.memory_space<vmem>>) attributes {dimension_semantics = [#tpu.dimension_semantics<parallel>], iteration_bounds = array<i64: 2>, scalar_prefetch = 0 : i64, scratch_operands = 0 : i64, tpu.core_type = #tpu.core_type<tc>, window_params = [{transform_indices = @transform_0, window_bounds = array<i64: 1, 8, 128>}, {pipeline_mode = #tpu.pipeline_mode<synchronous>, transform_indices = @transform_1, window_bounds = array<i64: 128, 256>}, {pipeline_mode = #tpu.pipeline_mode<synchronous>, transform_indices = @transform_2, window_bounds = array<i64: 1, 256>}, {transform_indices = @transform_3, window_bounds = array<i64: 1, 8, 256>}]} {
    %c0 = arith.constant 0 : index
    %c0_0 = arith.constant 0 : index
    %c0_1 = arith.constant 0 : index
    %0 = vector.load %arg1[%c0, %c0_0, %c0_1] : memref<1x8x128xf32, #tpu.memory_space<vmem>>, vector<1x8x128xf32>
    %1 = vector.shape_cast %0 : vector<1x8x128xf32> to vector<8x128xf32>
    %2 = arith.truncf %1 : vector<8x128xf32> to vector<8x128xbf16>
    %c0_2 = arith.constant 0 : index
    %c0_3 = arith.constant 0 : index
    %3 = vector.load %arg2[%c0_2, %c0_3] : memref<128x256xbf16, #tpu.memory_space<vmem>>, vector<128x256xbf16>
    %cst = arith.constant dense<0.000000e+00> : vector<8x256xf32>
    %4 = tpu.matmul %2, %3, %cst {dimension_numbers = #tpu.dot_dimension_numbers<[1], [0], [0], [1], [0, 0, 1, 1], [], []>} : vector<8x128xbf16>, vector<128x256xbf16>, vector<8x256xf32> -> vector<8x256xf32>
    %c0_4 = arith.constant 0 : index
    %c0_5 = arith.constant 0 : index
    %5 = vector.load %arg3[%c0_4, %c0_5] : memref<1x256xf32, #tpu.memory_space<vmem>>, vector<1x256xf32>
    %6 = vector.broadcast %5 : vector<1x256xf32> to vector<8x256xf32>
    %7 = arith.addf %4, %6 : vector<8x256xf32>
    %c0_6 = arith.constant 0 : index
    %c0_7 = arith.constant 0 : index
    %c0_8 = arith.constant 0 : index
    %8 = vector.load %arg4[%c0_6, %c0_7, %c0_8] : memref<1x8x256xf32, #tpu.memory_space<vmem>>, vector<1x8x256xf32>
    %9 = vector.shape_cast %8 : vector<1x8x256xf32> to vector<8x256xf32>
    %10 = vector.shape_cast %7 : vector<8x256xf32> to vector<1x8x256xf32>
    tpu.vector_store %arg4[%c0_6, %c0_7, %c0_8], %10 {strides = array<i32>} : memref<1x8x256xf32, #tpu.memory_space<vmem>>, vector<1x8x256xf32>,
    return
  }
  func.func @transform_0(%arg0: i32) -> (i32, i32, i32) {
    %c0_i32 = arith.constant 0 : i32
    %c0_i32_0 = arith.constant 0 : i32
    %c0_i32_1 = arith.constant 0 : i32
    return %arg0, %c0_i32, %c0_i32_0 : i32, i32, i32
  }
  func.func @transform_1(%arg0: i32) -> (i32, i32) {
    %c0_i32 = arith.constant 0 : i32
    %c0_i32_0 = arith.constant 0 : i32
    %c0_i32_1 = arith.constant 0 : i32
    return %c0_i32, %c0_i32_0 : i32, i32
  }
  func.func @transform_2(%arg0: i32) -> (i32, i32) {
    %c0_i32 = arith.constant 0 : i32
    %c0_i32_0 = arith.constant 0 : i32
    %c0_i32_1 = arith.constant 0 : i32
    return %c0_i32, %c0_i32_0 : i32, i32
  }
  func.func @transform_3(%arg0: i32) -> (i32, i32, i32) {
    %c0_i32 = arith.constant 0 : i32
    %c0_i32_0 = arith.constant 0 : i32
    %c0_i32_1 = arith.constant 0 : i32
    return %arg0, %c0_i32, %c0_i32_0 : i32, i32, i32
  }
}

</mosaic_0001>

<bundles_post_ra>
// kernel: transformer_mt_forward.17
= control target key start
LH: loop header
LB: loop body
LE: loop exit
PB: predicated region body
PF: predicated region fallthrough
CT: control target
= control target key end

     0   :  { %s466_s12 = smov 0   ;;  %s534_s0 = inlined_call_operand.vmem [shape: f32[2,8,128], index: 0, kind: input, shape index: {}]   ;;  %s535_s1 = inlined_call_operand.vmem [shape: bf16[128,256], index: 1, kind: input, shape index: {}]   ;;  %s536_s2 = inlined_call_operand.vmem [shape: f32[1,256], index: 2, kind: input, shape index: {}]   ;;  %s537_s3 = inlined_call_operand.vmem [shape: f32[2,8,256], index: 3, kind: output, shape index: {}]  }
   0x1 LB: > { %s377_s13 = sadd.s32 4294967295, %s443_s12   ;;  %p381_p0 = scmp.ge.s32.totalorder %s443_s12, 1  ;;  %s443_s12 = sphi %s466_s12, %s13_s12  }
   0x2   : > { %p136_p1 = scmp.lt.s32.totalorder %s443_s12, 3 }
   0x4   : > { %p137_p2 = pnand %p381_p0, %p136_p1 }
   0x5   : > { %v413_v0 = vld [vmem:[%s535_s1 + $0x4] ss:$8 sps:$4 sm:$0xff] (!%p137_p2)   ;;  %v415_v1 = vld [vmem:[%s535_s1] ss:$8 sps:$4 sm:$0xff] (!%p137_p2)   ;;  %v445_v2 = vmov (!%p137_p2), 0   ;;  %p159_p3 = scmp.lt.s32.totalorder (!%p137_p2), %s377_s13, 1  ;;  %v189_v19 = vlaneseq (!%p137_p2) }
   0x6   : > { %140 = sbr.rel (%p137_p2) target bundleno = 254 (0xfe), region = 32  ;;  %311 = vmatprep.mubr.bf16.mxu0 (!%p137_p2), %v445_v2  ;;  %279 = vmatprep.subr.bf16.mxu0 (!%p137_p2), %v413_v0  ;;  %v416_v3 = vld [vmem:[%s535_s1 + $0x14] ss:$8 sps:$4 sm:$0xff] (!%p137_p2)   ;;  %v418_v4 = vld [vmem:[%s535_s1 + $0x10] ss:$8 sps:$4 sm:$0xff] (!%p137_p2)  }
   0x7   : > { %280 = vmatpush1.bf16.msra.mxu0 (!%p137_p2), %v415_v1  ;;  %v419_v5 = vld [vmem:[%s535_s1 + $0x24] ss:$8 sps:$4 sm:$0xff] (!%p137_p2)   ;;  %v421_v6 = vld [vmem:[%s535_s1 + $0x20] ss:$8 sps:$4 sm:$0xff] (!%p137_p2)   ;;  %v422_v7 = vld [vmem:[%s535_s1 + $0x34] ss:$8 sps:$4 sm:$0xff] (!%p137_p2)  }
   0x8   : > { %281 = vmatprep.subr.bf16.mxu0 (!%p137_p2), %v416_v3  ;;  %v424_v8 = vld [vmem:[%s535_s1 + $0x30] ss:$8 sps:$4 sm:$0xff] (!%p137_p2)   ;;  %v425_v9 = vld [vmem:[%s535_s1 + $0x44] ss:$8 sps:$4 sm:$0xff] (!%p137_p2)   ;;  %v427_v10 = vld [vmem:[%s535_s1 + $0x40] ss:$8 sps:$4 sm:$0xff] (!%p137_p2)  }
   0x9   : > { %v428_v11 = vld [vmem:[%s535_s1 + $0x54] ss:$8 sps:$4 sm:$0xff] (!%p137_p2)   ;;  %v430_v12 = vld [vmem:[%s535_s1 + $0x50] ss:$8 sps:$4 sm:$0xff] (!%p137_p2)   ;;  %v431_v13 = vld [vmem:[%s535_s1 + $0x64] ss:$8 sps:$4 sm:$0xff] (!%p137_p2)  }
   0xa   : > { %v433_v14 = vld [vmem:[%s535_s1 + $0x60] ss:$8 sps:$4 sm:$0xff] (!%p137_p2)   ;;  %v434_v15 = vld [vmem:[%s535_s1 + $0x74] ss:$8 sps:$4 sm:$0xff] (!%p137_p2)   ;;  %v436_v16 = vld [vmem:[%s535_s1 + $0x70] ss:$8 sps:$4 sm:$0xff] (!%p137_p2)  }
   0xb   : > { %282 = vmatpush1.bf16.msra.mxu0 (!%p137_p2), %v418_v4  ;;  %v190_v20 = vshrl.u32 (!%p137_p2), %v189_v19, 7  ;;  %v187_v22 = vld [vmem:[%s536_s2] sm:$0x3] (!%p137_p2) }
   0xc   : > { %283 = vmatprep.subr.bf16.mxu0 (!%p137_p2), %v419_v5 }
   0xd   : > { %s539_s13 = smov (!%p159_p3, %s377_s13), 1  ;;  %v191_v21 = vsub.s32 0, %v190_v20  ;;  %v195_v23 = vsub.s32 1, %v190_v20 }
   0xe   : > { %s382_s15 = sshll.u32 %s539_s13, 3  ;;  %s403_s27 = sshll.u32 %s539_s13, 4 }
   0xf   : > { %284 = vmatpush1.bf16.msra.mxu0 %v421_v6  ;;  %s162_s22 = scalar_lea.vmem %s534_s0, %s382_s15  ;;  %v192_v24 = vrot.slane %v187_v22, %v191_v21  ;;  %v196_v25 = vrot.slane %v187_v22, %v195_v23  ;;  %s167_s30 = scalar_lea.vmem %s537_s3, %s403_s27 }
  0x10   : > { %285 = vmatprep.subr.bf16.mxu0 %v422_v7  ;;  %v169_v17 = vld [vmem:[%s162_s22] sm:$0xff] }
  0x11   : > { %v170_v18 = vpack.c.bf16 %v169_v17, %v169_v17 }
  0x13   : > { %286 = vmatpush1.bf16.msra.mxu0 %v424_v8 }
  0x14   : > { %287 = vmatprep.subr.bf16.mxu0 %v425_v9 }
  0x17   : > { %288 = vmatpush1.bf16.msra.mxu0 %v427_v10 }
  0x18   : > { %289 = vmatprep.subr.bf16.mxu0 %v428_v11 }
  0x1b   : > { %290 = vmatpush1.bf16.msra.mxu0 %v430_v12 }
  0x1c   : > { %291 = vmatprep.subr.bf16.mxu0 %v431_v13 }
  0x1f   : > { %292 = vmatpush1.bf16.msra.mxu0 %v433_v14 }
  0x20   : > { %293 = vmatprep.subr.bf16.mxu0 %v434_v15 }
  0x23   : > { %294 = vmatpush1.bf16.msra.mxu0 %v436_v16 }
  0x26   : > { %312 = vmatmul.mubr.bf16.vlgmr.msra.gmra.mrb[0].mxu0 %v170_v18 }
  0xf9   : > { %v313_v26 = vpop.f32.mrb[0].mxu0 }
  0xfa   : > { %v314_v27 = vadd.f32 %v313_v26, %v192_v24  ;;  %v315_v28 = vpop.f32.mrb[1].mxu0 }
  0xfb   : > { %v316_v29 = vadd.f32 %v315_v28, %v196_v25  ;;  %v317_v30 = vpop.f32.mrb[2].mxu0 }
  0xfc   : > { %320 = vst [vmem:[%s167_s30] sm:$0xff] %v314_v27  ;;  %v318_v31 = vpop.f32.mrb[3].mxu0 }
  0xfd   : > { %321 = vst [vmem:[%s167_s30 + $0x8] sm:$0xff] %v316_v29 }
  0xfe PF: > { %s13_s12 = sadd.s32 1, %s443_s12  }
  0xff   : > { %p10_p4 = scmp.ge.s32.totalorder %s13_s12, 4  }
 0x101   :  { %12 = sbr.rel (!%p10_p4) target bundleno = 1 (0x1), region = 62 }

// kernel: transformer_mt_forward.9
= control target key start
LH: loop header
LB: loop body
LE: loop exit
PB: predicated region body
PF: predicated region fallthrough
CT: control target
= control target key end

     0   :  { %s3935_s24 = smov 0   ;;  %s4640_s0 = inlined_call_operand.vmem [shape: f32[2,8,128], index: 0, kind: input, shape index: {}]   ;;  %s4641_s1 = inlined_call_operand.vmem [shape: bf16[4,128,32], index: 1, kind: input, shape index: {}]   ;;  %s4642_s2 = inlined_call_operand.vmem [shape: f32[4,1,32], index: 2, kind: input, shape index: {}]   ;;  %s4643_s3 = inlined_call_operand.vmem [shape: bf16[4,128,32], index: 3, kind: input, shape index: {}]   ;;  %s4644_s4 = inlined_call_operand.vmem [shape: f32[4,1,32], index: 4, kind: input, shape index: {}]   ;;  %s4645_s5 = inlined_call_operand.vmem [shape: bf16[4,128,32], index: 5, kind: input, shape index: {}]   ;;  %s4646_s6 = inlined_call_operand.vmem [shape: f32[4,1,32], index: 6, kind: input, shape index: {}]   ;;  %s4647_s7 = inlined_call_operand.vmem [shape: bf16[4,32,128], index: 7, kind: input, shape index: {}]   ;;  %s4648_s8 = inlined_call_operand.vmem [shape: f32[1,128], index: 8, kind: input, shape index: {}]   ;;  %s4649_s9 = inlined_call_operand.vmem [shape: f32[1,128], index: 9, kind: input, shape index: {}]   ;;  %s4650_s10 = inlined_call_operand.vmem [shape: f32[1,128], index: 10, kind: input, shape index: {}]   ;;  %s4651_s11 = inlined_call_operand.vmem [shape: bf16[128,256], index: 11, kind: input, shape index: {}]   ;;  %s4652_s12 = inlined_call_operand.vmem [shape: f32[1,256], index: 12, kind: input, shape index: {}]   ;;  %s4653_s13 = inlined_call_operand.vmem [shape: bf16[256,128], index: 13, kind: input, shape index: {}]   ;;  %s4654_s14 = inlined_call_operand.vmem [shape: f32[1,128], index: 14, kind: input, shape index: {}]   ;;  %s4655_s15 = inlined_call_operand.vmem [shape: f32[1,128], index: 15, kind: input, shape index: {}]   ;;  %s4656_s16 = inlined_call_operand.vmem [shape: f32[1,128], index: 16, kind: input, shape index: {}]   ;;  %s4657_s17 = inlined_call_operand.vmem [shape: f32[2,8,128], index: 17, kind: output, shape index: {}]  }
   0x1   :  { %4659 = sst [smem:[#allocation2_spill]] %s4640_s0 }
   0x2   :  { %4660 = sst [smem:[#allocation3_spill]] %s4641_s1 }
   0x3 LB: > { %s3005_s25 = sadd.s32 4294967295, %s3840_s24   ;;  %p3009_p0 = scmp.ge.s32.totalorder %s3840_s24, 1  ;;  %s3840_s24 = sphi %s3935_s24, %s27_s24  }
   0x4   : > { %p486_p1 = scmp.lt.s32.totalorder %s3840_s24, 3 }
   0x6   : > { %p487_p2 = pnand %p3009_p0, %p486_p1 }
   0x7   : > { %s4661_s28 = sld [smem:[#allocation3_spill]] (!%p487_p2)  ;;  %v3842_v1 = vmov (!%p487_p2), 0.0   ;;  %vm3843_vm0 = vmmov (!%p487_p2), 0   ;;  %p536_p3 = scmp.lt.s32.totalorder (!%p487_p2), %s3005_s25, 1  ;;  %v3701_v35 = vld [vmem:[%s4643_s3] sm:$0xff] (!%p487_p2)   ;;  %v3703_v37 = vld [vmem:[%s4643_s3 + $0x8] sm:$0xff] (!%p487_p2)  }
   0x8   : > { %490 = sbr.rel (%p487_p2) target bundleno = 2395 (0x95b), region = 88  ;;  %3338 = vmatprep.subr.bf16.mxu0 (!%p487_p2), %v3842_v1  ;;  %3358 = vmatprep.subr.bf16.mxu1 (!%p487_p2), %v3842_v1  ;;  %s4662_s1 = sld [smem:[#allocation2_spill]] (!%p487_p2)  ;;  %v3702_v36 = vld [vmem:[%s4643_s3 + $0x40] sm:$0xff] (!%p487_p2)   ;;  %v3704_v38 = vld [vmem:[%s4643_s3 + $0x48] sm:$0xff] (!%p487_p2)   ;;  %v3705_v39 = vld [vmem:[%s4643_s3 + $0x10] sm:$0xff] (!%p487_p2)   ;;  %vm1904_vm1 = vcmask (!%p487_p2), 261120  }
   0x9   : > { %3354 = vmatprep.mubr.msk.bf16.mxu0 (!%p487_p2), %vm3843_vm0, %v3842_v1  ;;  %3374 = vmatprep.mubr.msk.bf16.mxu1 (!%p487_p2), %vm3843_vm0, %v3842_v1  ;;  %v3706_v40 = vld [vmem:[%s4643_s3 + $0x50] sm:$0xff] (!%p487_p2)   ;;  %v3707_v41 = vld [vmem:[%s4643_s3 + $0x18] sm:$0xff] (!%p487_p2)   ;;  %v3709_v43 = vld [vmem:[%s4643_s3 + $0x20] sm:$0xff] (!%p487_p2)   ;;  %vm2149_vm2 = vcmask (!%p487_p2), 1043456   ;;  %vm2093_vm3 = vcmask (!%p487_p2), 64512  }
   0xa   : > { %v3708_v42 = vld [vmem:[%s4643_s3 + $0x58] sm:$0xff] (!%p487_p2)   ;;  %v3710_v44 = vld [vmem:[%s4643_s3 + $0x60] sm:$0xff] (!%p487_p2)   ;;  %v3711_v45 = vld [vmem:[%s4643_s3 + $0x28] sm:$0xff] (!%p487_p2)  }
   0xb   : > { %v3712_v46 = vld [vmem:[%s4643_s3 + $0x68] sm:$0xff] (!%p487_p2)   ;;  %v3713_v47 = vld [vmem:[%s4643_s3 + $0x30] sm:$0xff] (!%p487_p2)   ;;  %v3715_v49 = vld [vmem:[%s4643_s3 + $0x38] sm:$0xff] (!%p487_p2)  }
   0xc   : > { %v3714_v48 = vld [vmem:[%s4643_s3 + $0x70] sm:$0xff] (!%p487_p2)   ;;  %v3716_v50 = vld [vmem:[%s4643_s3 + $0x78] sm:$0xff] (!%p487_p2)   ;;  %v3717_v51 = vld [vmem:[%s4643_s3 + $0x80] sm:$0xff] (!%p487_p2)  }
   0xd   : > { %v3669_v0 = vld [vmem:[%s4661_s28] sm:$0xff] (!%p487_p2)   ;;  %v3671_v3 = vld [vmem:[%s4661_s28 + $0x8] sm:$0xff] (!%p487_p2)   ;;  %v3673_v5 = vld [vmem:[%s4661_s28 + $0x10] sm:$0xff] (!%p487_p2)  }
   0xe   : > { %v3670_v2 = vld [vmem:[%s4661_s28 + $0x40] sm:$0xff] (!%p487_p2)   ;;  %3339 = vmatpush3.bf16.msra.mxu0 (!%p487_p2), %v3669_v0  ;;  %v3672_v4 = vld [vmem:[%s4661_s28 + $0x48] sm:$0xff] (!%p487_p2)   ;;  %v3674_v6 = vld [vmem:[%s4661_s28 + $0x50] sm:$0xff] (!%p487_p2)  }
   0xf   : > { %3359 = vmatpush3.bf16.msra.mxu1 %v3670_v2  ;;  %3340 = vmatprep.subr.bf16.mxu0 %v3842_v1  ;;  %v3675_v7 = vld [vmem:[%s4661_s28 + $0x18] sm:$0xff]   ;;  %v3677_v9 = vld [vmem:[%s4661_s28 + $0x20] sm:$0xff]   ;;  %s4664_s25 = smov (!%p536_p3, %s3005_s25), 1  ;;  %v3679_v11 = vld [vmem:[%s4661_s28 + $0x28] sm:$0xff]  }
  0x10   : > { %3360 = vmatprep.subr.bf16.mxu1 %v3842_v1  ;;  %v3676_v8 = vld [vmem:[%s4661_s28 + $0x58] sm:$0xff]   ;;  %v3678_v10 = vld [vmem:[%s4661_s28 + $0x60] sm:$0xff]   ;;  %v3680_v12 = vld [vmem:[%s4661_s28 + $0x68] sm:$0xff]   ;;  %s3010_s26 = sshll.u32 %s4664_s25, 3 }
  0x11   : > { %v3681_v13 = vld [vmem:[%s4661_s28 + $0x30] sm:$0xff]   ;;  %s4014_s20 = scalar_lea.vmem %s4662_s1, %s3010_s26  ;;  %v3683_v15 = vld [vmem:[%s4661_s28 + $0x38] sm:$0xff]   ;;  %v3685_v19 = vld [vmem:[%s4661_s28 + $0x80] sm:$0xff]   ;;  %s543_s18 = scalar_lea.vmem %s4657_s17, %s3010_s26 }
  0x12   : > { %3341 = vmatpush3.bf16.msra.mxu0 %v3671_v3  ;;  %v3682_v14 = vld [vmem:[%s4661_s28 + $0x70] sm:$0xff]   ;;  %v545_v16 = vld [vmem:[%s4014_s20] sm:$0xff]  ;;  %v3684_v17 = vld [vmem:[%s4661_s28 + $0x78] sm:$0xff]  }
  0x13   : > { %3361 = vmatpush3.bf16.msra.mxu1 %v3672_v4  ;;  %3342 = vmatprep.subr.bf16.mxu0 %v3842_v1  ;;  %v4026_v18 = vpack.c.bf16 %v545_v16, %v545_v16  ;;  %v3686_v20 = vld [vmem:[%s4661_s28 + $0xc0] sm:$0xff]   ;;  %v3687_v21 = vld [vmem:[%s4661_s28 + $0x88] sm:$0xff]   ;;  %v3689_v23 = vld [vmem:[%s4661_s28 + $0x90] sm:$0xff]  }
  0x14   : > { %3362 = vmatprep.subr.bf16.mxu1 %v3842_v1  ;;  %v3688_v22 = vld [vmem:[%s4661_s28 + $0xc8] sm:$0xff]   ;;  %v3690_v24 = vld [vmem:[%s4661_s28 + $0xd0] sm:$0xff]   ;;  %v3691_v25 = vld [vmem:[%s4661_s28 + $0x98] sm:$0xff]  }
  0x15   : > { %v3692_v26 = vld [vmem:[%s4661_s28 + $0xd8] sm:$0xff]   ;;  %v3693_v27 = vld [vmem:[%s4661_s28 + $0xa0] sm:$0xff]   ;;  %v3695_v29 = vld [vmem:[%s4661_s28 + $0xa8] sm:$0xff]  }
  0x16   : > { %3343 = vmatpush3.bf16.msra.mxu0 %v3673_v5  ;;  %v3694_v28 = vld [vmem:[%s4661_s28 + $0xe0] sm:$0xff]   ;;  %v3696_v30 = vld [vmem:[%s4661_s28 + $0xe8] sm:$0xff]   ;;  %v3697_v31 = vld [vmem:[%s4661_s28 + $0xb0] sm:$0xff]  }
  0x17   : > { %3363 = vmatpush3.bf16.msra.mxu1 %v3674_v6  ;;  %3344 = vmatprep.subr.bf16.mxu0 %v3842_v1  ;;  %v3698_v32 = vld [vmem:[%s4661_s28 + $0xf0] sm:$0xff]   ;;  %v3699_v33 = vld [vmem:[%s4661_s28 + $0xb8] sm:$0xff]   ;;  %v3718_v52 = vld [vmem:[%s4643_s3 + $0xc0] sm:$0xff]  }
  0x18   : > { %3364 = vmatprep.subr.bf16.mxu1 %v3842_v1  ;;  %v3700_v34 = vld [vmem:[%s4661_s28 + $0xf8] sm:$0xff]   ;;  %v3719_v53 = vld [vmem:[%s4643_s3 + $0x88] sm:$0xff]   ;;  %v3721_v55 = vld [vmem:[%s4643_s3 + $0x90] sm:$0xff]  }
  0x19   : > { %v3720_v54 = vld [vmem:[%s4643_s3 + $0xc8] sm:$0xff]   ;;  %v3722_v56 = vld [vmem:[%s4643_s3 + $0xd0] sm:$0xff]   ;;  %v3723_v57 = vld [vmem:[%s4643_s3 + $0x98] sm:$0xff]  }
  0x1a   : > { %3345 = vmatpush3.bf16.msra.mxu0 %v3675_v7  ;;  %v3724_v58 = vld [vmem:[%s4643_s3 + $0xd8] sm:$0xff]   ;;  %v3725_v59 = vld [vmem:[%s4643_s3 + $0xa0] sm:$0xff]   ;;  %v3727_v61 = vld [vmem:[%s4643_s3 + $0xa8] sm:$0xff]  }
  0x1b   : > { %3365 = vmatpush3.bf16.msra.mxu1 %v3676_v8  ;;  %3346 = vmatprep.subr.bf16.mxu0 %v3842_v1  ;;  %v3726_v60 = vld [vmem:[%s4643_s3 + $0xe0] sm:$0xff]   ;;  %v3728_v62 = vld [vmem:[%s4643_s3 + $0xe8] sm:$0xff]   ;;  %v3729_v63 = vld [vmem:[%s4643_s3 + $0xb0] sm:$0xff]  }
  0x1c   : > { %3366 = vmatprep.subr.bf16.mxu1 %v3842_v1  ;;  %v3730_v0 = vld [vmem:[%s4643_s3 + $0xf0] sm:$0xff]   ;;  %v3731_v2 = vld [vmem:[%s4643_s3 + $0xb8] sm:$0xff]   ;;  %v3733_v4 = vld [vmem:[%s4645_s5] sm:$0xff]  }
  0x1d   : > { %v3732_v3 = vld [vmem:[%s4643_s3 + $0xf8] sm:$0xff]   ;;  %v3734_v5 = vld [vmem:[%s4645_s5 + $0x40] sm:$0xff]   ;;  %v3735_v6 = vld [vmem:[%s4645_s5 + $0x8] sm:$0xff]  }
  0x1e   : > { %3347 = vmatpush3.bf16.msra.mxu0 %v3677_v9  ;;  %v3736_v7 = vld [vmem:[%s4645_s5 + $0x48] sm:$0xff]   ;;  %v3737_v8 = vld [vmem:[%s4645_s5 + $0x10] sm:$0xff]  }
  0x1f   : > { %3367 = vmatpush3.bf16.msra.mxu1 %v3678_v10  ;;  %3348 = vmatprep.subr.bf16.mxu0 %v3842_v1  ;;  %v3738_v9 = vld [vmem:[%s4645_s5 + $0x50] sm:$0xff]   ;;  %v3739_v10 = vld [vmem:[%s4645_s5 + $0x18] sm:$0xff]  }
  0x20   : > { %3368 = vmatprep.subr.bf16.mxu1 %v3842_v1  ;;  %v3745_v16 = vld [vmem:[%s4645_s5 + $0x30] sm:$0xff]  }
  0x22   : > { %3349 = vmatpush3.bf16.msra.mxu0 %v3679_v11  ;;  %v3740_v11 = vld [vmem:[%s4645_s5 + $0x58] sm:$0xff]  }
  0x23   : > { %3369 = vmatpush3.bf16.msra.mxu1 %v3680_v12  ;;  %3350 = vmatprep.subr.bf16.mxu0 %v3842_v1  ;;  %v3741_v12 = vld [vmem:[%s4645_s5 + $0x20] sm:$0xff]  }
  0x24   : > { %3370 = vmatprep.subr.bf16.mxu1 %v3842_v1 }
  0x26   : > { %3351 = vmatpush3.bf16.msra.mxu0 %v3681_v13  ;;  %v3742_v13 = vld [vmem:[%s4645_s5 + $0x60] sm:$0xff]  }
  0x27   : > { %3371 = vmatpush3.bf16.msra.mxu1 %v3682_v14  ;;  %3352 = vmatprep.subr.bf16.mxu0 %v3842_v1  ;;  %v3743_v14 = vld [vmem:[%s4645_s5 + $0x28] sm:$0xff]  }
  0x28   : > { %3372 = vmatprep.subr.bf16.mxu1 %v3842_v1 }
  0x2a   : > { %3353 = vmatpush3.bf16.msra.mxu0 %v3683_v15  ;;  %v3744_v15 = vld [vmem:[%s4645_s5 + $0x68] sm:$0xff]  }
  0x2b   : > { %3373 = vmatpush3.bf16.msra.mxu1 %v3684_v17  ;;  %3378 = vmatprep.subr.bf16.mxu0 %v3842_v1  ;;  %v3746_v17 = vld [vmem:[%s4645_s5 + $0x70] sm:$0xff]  }
  0x2c   : > { %3398 = vmatprep.subr.bf16.mxu1 %v3842_v1 }
  0x2d   : > { %3355 = vmatmul.mubr.bf16.vlgmr.msra.gmra.mrb[0].mxu0 %v4026_v18 }
  0x2e   : > { %3375 = vmatmul.mubr.bf16.vlgmr.msra.gmra.mrb[0].mxu1 %v4026_v18  ;;  %3379 = vmatpush3.bf16.msra.mxu0 %v3685_v19  ;;  %v3747_v19 = vld [vmem:[%s4645_s5 + $0x38] sm:$0xff]  }
  0x2f   : > { %3399 = vmatpush3.bf16.msra.mxu1 %v3686_v20  ;;  %3380 = vmatprep.subr.bf16.mxu0 %v3842_v1  ;;  %v3748_v20 = vld [vmem:[%s4645_s5 + $0x78] sm:$0xff]  }
  0x30   : > { %3400 = vmatprep.subr.bf16.mxu1 %v3842_v1  ;;  %3394 = vmatprep.mubr.msk.bf16.mxu0 %vm3843_vm0, %v3842_v1 }
  0x31   : > { %3414 = vmatprep.mubr.msk.bf16.mxu1 %vm3843_vm0, %v3842_v1 }
  0x32   : > { %3381 = vmatpush3.bf16.msra.mxu0 %v3687_v21  ;;  %v3749_v21 = vld [vmem:[%s4645_s5 + $0x80] sm:$0xff]  }
  0x33   : > { %3401 = vmatpush3.bf16.msra.mxu1 %v3688_v22  ;;  %3382 = vmatprep.subr.bf16.mxu0 %v3842_v1  ;;  %v3750_v22 = vld [vmem:[%s4645_s5 + $0xc0] sm:$0xff]  }
  0x34   : > { %3402 = vmatprep.subr.bf16.mxu1 %v3842_v1 }
  0x36   : > { %3383 = vmatpush3.bf16.msra.mxu0 %v3689_v23  ;;  %v3751_v23 = vld [vmem:[%s4645_s5 + $0x88] sm:$0xff]  }
  0x37   : > { %3403 = vmatpush3.bf16.msra.mxu1 %v3690_v24  ;;  %3384 = vmatprep.subr.bf16.mxu0 %v3842_v1  ;;  %v3752_v24 = vld [vmem:[%s4645_s5 + $0xc8] sm:$0xff]  }
  0x38   : > { %3404 = vmatprep.subr.bf16.mxu1 %v3842_v1 }
  0x3a   : > { %3385 = vmatpush3.bf16.msra.mxu0 %v3691_v25  ;;  %v3753_v25 = vld [vmem:[%s4645_s5 + $0x90] sm:$0xff]  }
  0x3b   : > { %3405 = vmatpush3.bf16.msra.mxu1 %v3692_v26  ;;  %3386 = vmatprep.subr.bf16.mxu0 %v3842_v1  ;;  %v3754_v26 = vld [vmem:[%s4645_s5 + $0xd0] sm:$0xff]  }
  0x3c   : > { %3406 = vmatprep.subr.bf16.mxu1 %v3842_v1 }
  0x3e   : > { %3387 = vmatpush3.bf16.msra.mxu0 %v3693_v27  ;;  %v3755_v27 = vld [vmem:[%s4645_s5 + $0x98] sm:$0xff]  }
  0x3f   : > { %3407 = vmatpush3.bf16.msra.mxu1 %v3694_v28  ;;  %3388 = vmatprep.subr.bf16.mxu0 %v3842_v1  ;;  %v3756_v28 = vld [vmem:[%s4645_s5 + $0xd8] sm:$0xff]  }
  0x40   : > { %3408 = vmatprep.subr.bf16.mxu1 %v3842_v1 }
  0x42   : > { %3389 = vmatpush3.bf16.msra.mxu0 %v3695_v29  ;;  %v3757_v29 = vld [vmem:[%s4645_s5 + $0xa0] sm:$0xff]  }
  0x43   : > { %3409 = vmatpush3.bf16.msra.mxu1 %v3696_v30  ;;  %3390 = vmatprep.subr.bf16.mxu0 %v3842_v1  ;;  %v3758_v30 = vld [vmem:[%s4645_s5 + $0xe0] sm:$0xff]  }
  0x44   : > { %3410 = vmatprep.subr.bf16.mxu1 %v3842_v1 }
  0x46   : > { %3391 = vmatpush3.bf16.msra.mxu0 %v3697_v31  ;;  %v3759_v31 = vld [vmem:[%s4645_s5 + $0xa8] sm:$0xff]  }
  0x47   : > { %3411 = vmatpush3.bf16.msra.mxu1 %v3698_v32  ;;  %3392 = vmatprep.subr.bf16.mxu0 %v3842_v1  ;;  %v3760_v32 = vld [vmem:[%s4645_s5 + $0xe8] sm:$0xff]  }
  0x48   : > { %3412 = vmatprep.subr.bf16.mxu1 %v3842_v1 }
  0x4a   : > { %3393 = vmatpush3.bf16.msra.mxu0 %v3699_v33  ;;  %v3761_v33 = vld [vmem:[%s4645_s5 + $0xb0] sm:$0xff]  }
  0x4b   : > { %3413 = vmatpush3.bf16.msra.mxu1 %v3700_v34  ;;  %3418 = vmatprep.subr.bf16.mxu0 %v3842_v1  ;;  %v3762_v34 = vld [vmem:[%s4645_s5 + $0xf0] sm:$0xff]  }
  0x4c   : > { %3438 = vmatprep.subr.bf16.mxu1 %v3842_v1 }
  0x4d   : > { %3395 = vmatmul.mubr.bf16.vlgmr.msra.gmra.mrb[4].mxu0 %v4026_v18 }
  0x4e   : > { %3415 = vmatmul.mubr.bf16.vlgmr.msra.gmra.mrb[4].mxu1 %v4026_v18  ;;  %3419 = vmatpush3.bf16.msra.mxu0 %v3701_v35  ;;  %v3763_v35 = vld [vmem:[%s4645_s5 + $0xb8] sm:$0xff]  }
  0x4f   : > { %3439 = vmatpush3.bf16.msra.mxu1 %v3702_v36  ;;  %3420 = vmatprep.subr.bf16.mxu0 %v3842_v1  ;;  %v3764_v36 = vld [vmem:[%s4645_s5 + $0xf8] sm:$0xff]  }
  0x50   : > { %3440 = vmatprep.subr.bf16.mxu1 %v3842_v1  ;;  %3434 = vmatprep.mubr.msk.bf16.mxu0 %vm3843_vm0, %v3842_v1 }
  0x51   : > { %3454 = vmatprep.mubr.msk.bf16.mxu1 %vm3843_vm0, %v3842_v1 }
  0x52   : > { %3421 = vmatpush3.bf16.msra.mxu0 %v3703_v37 }
  0x53   : > { %3441 = vmatpush3.bf16.msra.mxu1 %v3704_v38  ;;  %3422 = vmatprep.subr.bf16.mxu0 %v3842_v1 }
  0x54   : > { %3442 = vmatprep.subr.bf16.mxu1 %v3842_v1 }
  0x56   : > { %3423 = vmatpush3.bf16.msra.mxu0 %v3705_v39 }
  0x57   : > { %3443 = vmatpush3.bf16.msra.mxu1 %v3706_v40  ;;  %3424 = vmatprep.subr.bf16.mxu0 %v3842_v1 }
  0x58   : > { %3444 = vmatprep.subr.bf16.mxu1 %v3842_v1 }
  0x5a   : > { %3425 = vmatpush3.bf16.msra.mxu0 %v3707_v41 }
  0x5b   : > { %3445 = vmatpush3.bf16.msra.mxu1 %v3708_v42  ;;  %3426 = vmatprep.subr.bf16.mxu0 %v3842_v1 }
  0x5c   : > { %3446 = vmatprep.subr.bf16.mxu1 %v3842_v1 }
  0x5e   : > { %3427 = vmatpush3.bf16.msra.mxu0 %v3709_v43 }
  0x5f   : > { %3447 = vmatpush3.bf16.msra.mxu1 %v3710_v44  ;;  %3428 = vmatprep.subr.bf16.mxu0 %v3842_v1 }
  0x60   : > { %3448 = vmatprep.subr.bf16.mxu1 %v3842_v1 }
  0x62   : > { %3429 = vmatpush3.bf16.msra.mxu0 %v3711_v45 }
  0x63   : > { %3449 = vmatpush3.bf16.msra.mxu1 %v3712_v46  ;;  %3430 = vmatprep.subr.bf16.mxu0 %v3842_v1 }
  0x64   : > { %3450 = vmatprep.subr.bf16.mxu1 %v3842_v1 }
  0x66   : > { %3431 = vmatpush3.bf16.msra.mxu0 %v3713_v47 }
  0x67   : > { %3451 = vmatpush3.bf16.msra.mxu1 %v3714_v48  ;;  %3432 = vmatprep.subr.bf16.mxu0 %v3842_v1 }
  0x68   : > { %3452 = vmatprep.subr.bf16.mxu1 %v3842_v1 }
  0x6a   : > { %3433 = vmatpush3.bf16.msra.mxu0 %v3715_v49 }
  0x6b   : > { %3453 = vmatpush3.bf16.msra.mxu1 %v3716_v50  ;;  %3458 = vmatprep.subr.bf16.mxu0 %v3842_v1 }
  0x6c   : > { %3478 = vmatprep.subr.bf16.mxu1 %v3842_v1 }
  0x6d   : > { %3435 = vmatmul.mubr.bf16.vlgmr.msra.gmra.mrb[8].mxu0 %v4026_v18 }
  0x6e   : > { %3455 = vmatmul.mubr.bf16.vlgmr.msra.gmra.mrb[8].mxu1 %v4026_v18  ;;  %3459 = vmatpush3.bf16.msra.mxu0 %v3717_v51 }
  0x6f   : > { %3479 = vmatpush3.bf16.msra.mxu1 %v3718_v52  ;;  %3460 = vmatprep.subr.bf16.mxu0 %v3842_v1  ;;  %v3048_v52 = vld [vmem:[%s4644_s4] ss:$0 sm:$0xff] }
  0x70   : > { %3480 = vmatprep.subr.bf16.mxu1 %v3842_v1  ;;  %3474 = vmatprep.mubr.msk.bf16.mxu0 %vm3843_vm0, %v3842_v1 }
  0x71   : > { %3494 = vmatprep.mubr.msk.bf16.mxu1 %vm3843_vm0, %v3842_v1 }
  0x72   : > { %3461 = vmatpush3.bf16.msra.mxu0 %v3719_v53  ;;  %v3049_v53 = vld [vmem:[%s4644_s4 + $0x1] ss:$0 sm:$0xff] }
  0x73   : > { %3481 = vmatpush3.bf16.msra.mxu1 %v3720_v54  ;;  %3462 = vmatprep.subr.bf16.mxu0 %v3842_v1 }
  0x74   : > { %3482 = vmatprep.subr.bf16.mxu1 %v3842_v1 }
  0x76   : > { %3463 = vmatpush3.bf16.msra.mxu0 %v3721_v55 }
  0x77   : > { %3483 = vmatpush3.bf16.msra.mxu1 %v3722_v56  ;;  %3464 = vmatprep.subr.bf16.mxu0 %v3842_v1 }
  0x78   : > { %3484 = vmatprep.subr.bf16.mxu1 %v3842_v1 }
  0x7a   : > { %3465 = vmatpush3.bf16.msra.mxu0 %v3723_v57 }
  0x7b   : > { %3485 = vmatpush3.bf16.msra.mxu1 %v3724_v58  ;;  %3466 = vmatprep.subr.bf16.mxu0 %v3842_v1 }
  0x7c   : > { %3486 = vmatprep.subr.bf16.mxu1 %v3842_v1 }
  0x7e   : > { %3467 = vmatpush3.bf16.msra.mxu0 %v3725_v59 }
  0x7f   : > { %3487 = vmatpush3.bf16.msra.mxu1 %v3726_v60  ;;  %3468 = vmatprep.subr.bf16.mxu0 %v3842_v1 }
  0x80   : > { %3488 = vmatprep.subr.bf16.mxu1 %v3842_v1 }
  0x82   : > { %3469 = vmatpush3.bf16.msra.mxu0 %v3727_v61 }
  0x83   : > { %3489 = vmatpush3.bf16.msra.mxu1 %v3728_v62  ;;  %3470 = vmatprep.subr.bf16.mxu0 %v3842_v1 }
  0x84   : > { %3490 = vmatprep.subr.bf16.mxu1 %v3842_v1 }
  0x86   : > { %3471 = vmatpush3.bf16.msra.mxu0 %v3729_v63 }
  0x87   : > { %3491 = vmatpush3.bf16.msra.mxu1 %v3730_v0  ;;  %3472 = vmatprep.subr.bf16.mxu0 %v3842_v1  ;;  %v3012_v0 = vld [vmem:[%s4642_s2] ss:$0 sm:$0xff] }
  0x88   : > { %3492 = vmatprep.subr.bf16.mxu1 %v3842_v1 }
  0x8a   : > { %3473 = vmatpush3.bf16.msra.mxu0 %v3731_v2 }
  0x8b   : > { %3493 = vmatpush3.bf16.msra.mxu1 %v3732_v3  ;;  %3498 = vmatprep.subr.bf16.mxu0 %v3842_v1 }
  0x8c   : > { %3518 = vmatprep.subr.bf16.mxu1 %v3842_v1 }
  0x8d   : > { %3475 = vmatmul.mubr.bf16.vlgmr.msra.gmra.mrb[12].mxu0 %v4026_v18 }
  0x8e   : > { %3495 = vmatmul.mubr.bf16.vlgmr.msra.gmra.mrb[12].mxu1 %v4026_v18  ;;  %3499 = vmatpush3.bf16.msra.mxu0 %v3733_v4  ;;  %v3013_v4 = vld [vmem:[%s4642_s2 + $0x1] ss:$0 sm:$0xff] }
  0x8f   : > { %3519 = vmatpush3.bf16.msra.mxu1 %v3734_v5  ;;  %3500 = vmatprep.subr.bf16.mxu0 %v3842_v1 }
  0x90   : > { %3520 = vmatprep.subr.bf16.mxu1 %v3842_v1  ;;  %3514 = vmatprep.mubr.msk.bf16.mxu0 %vm3843_vm0, %v3842_v1 }
  0x91   : > { %3534 = vmatprep.mubr.msk.bf16.mxu1 %vm3843_vm0, %v3842_v1 }
  0x92   : > { %3501 = vmatpush3.bf16.msra.mxu0 %v3735_v6 }
  0x93   : > { %3521 = vmatpush3.bf16.msra.mxu1 %v3736_v7  ;;  %3502 = vmatprep.subr.bf16.mxu0 %v3842_v1 }
  0x94   : > { %3522 = vmatprep.subr.bf16.mxu1 %v3842_v1 }
  0x96   : > { %3503 = vmatpush3.bf16.msra.mxu0 %v3737_v8 }
  0x97   : > { %3523 = vmatpush3.bf16.msra.mxu1 %v3738_v9  ;;  %3504 = vmatprep.subr.bf16.mxu0 %v3842_v1 }
  0x98   : > { %3524 = vmatprep.subr.bf16.mxu1 %v3842_v1 }
  0x9a   : > { %3505 = vmatpush3.bf16.msra.mxu0 %v3739_v10 }
  0x9b   : > { %3525 = vmatpush3.bf16.msra.mxu1 %v3740_v11  ;;  %3506 = vmatprep.subr.bf16.mxu0 %v3842_v1  ;;  %v3050_v11 = vld [vmem:[%s4644_s4 + $0x2] ss:$0 sm:$0xff] }
  0x9c   : > { %3526 = vmatprep.subr.bf16.mxu1 %v3842_v1 }
  0x9e   : > { %3507 = vmatpush3.bf16.msra.mxu0 %v3741_v12  ;;  %v3051_v12 = vld [vmem:[%s4644_s4 + $0x3] ss:$0 sm:$0xff] }
  0x9f   : > { %3527 = vmatpush3.bf16.msra.mxu1 %v3742_v13  ;;  %3508 = vmatprep.subr.bf16.mxu0 %v3842_v1 }
  0xa0   : > { %3528 = vmatprep.subr.bf16.mxu1 %v3842_v1 }
  0xa2   : > { %3509 = vmatpush3.bf16.msra.mxu0 %v3743_v14 }
  0xa3   : > { %3529 = vmatpush3.bf16.msra.mxu1 %v3744_v15  ;;  %3510 = vmatprep.subr.bf16.mxu0 %v3842_v1 }
  0xa4   : > { %3530 = vmatprep.subr.bf16.mxu1 %v3842_v1 }
  0xa6   : > { %3511 = vmatpush3.bf16.msra.mxu0 %v3745_v16 }
  0xa7   : > { %3531 = vmatpush3.bf16.msra.mxu1 %v3746_v17  ;;  %3512 = vmatprep.subr.bf16.mxu0 %v3842_v1 }
  0xa8   : > { %3532 = vmatprep.subr.bf16.mxu1 %v3842_v1 }
  0xaa   : > { %3513 = vmatpush3.bf16.msra.mxu0 %v3747_v19 }
  0xab   : > { %3533 = vmatpush3.bf16.msra.mxu1 %v3748_v20  ;;  %3538 = vmatprep.subr.bf16.mxu0 %v3842_v1 }
  0xac   : > { %3558 = vmatprep.subr.bf16.mxu1 %v3842_v1 }
  0xad   : > { %3515 = vmatmul.mubr.bf16.vlgmr.msra.gmra.mrb[16].mxu0 %v4026_v18 }
  0xae   : > { %3535 = vmatmul.mubr.bf16.vlgmr.msra.gmra.mrb[16].mxu1 %v4026_v18  ;;  %3539 = vmatpush3.bf16.msra.mxu0 %v3749_v21 }
  0xaf   : > { %3559 = vmatpush3.bf16.msra.mxu1 %v3750_v22  ;;  %3540 = vmatprep.subr.bf16.mxu0 %v3842_v1 }
  0xb0   : > { %3560 = vmatprep.subr.bf16.mxu1 %v3842_v1  ;;  %3554 = vmatprep.mubr.msk.bf16.mxu0 %vm3843_vm0, %v3842_v1 }
  0xb1   : > { %3574 = vmatprep.mubr.msk.bf16.mxu1 %vm3843_vm0, %v3842_v1 }
  0xb2   : > { %3541 = vmatpush3.bf16.msra.mxu0 %v3751_v23 }
  0xb3   : > { %3561 = vmatpush3.bf16.msra.mxu1 %v3752_v24  ;;  %3542 = vmatprep.subr.bf16.mxu0 %v3842_v1  ;;  %v3014_v24 = vld [vmem:[%s4642_s2 + $0x2] ss:$0 sm:$0xff] }
  0xb4   : > { %3562 = vmatprep.subr.bf16.mxu1 %v3842_v1 }
  0xb6   : > { %3543 = vmatpush3.bf16.msra.mxu0 %v3753_v25 }
  0xb7   : > { %3563 = vmatpush3.bf16.msra.mxu1 %v3754_v26  ;;  %3544 = vmatprep.subr.bf16.mxu0 %v3842_v1 }
  0xb8   : > { %3564 = vmatprep.subr.bf16.mxu1 %v3842_v1 }
  0xba   : > { %3545 = vmatpush3.bf16.msra.mxu0 %v3755_v27  ;;  %v3015_v27 = vld [vmem:[%s4642_s2 + $0x3] ss:$0 sm:$0xff] }
  0xbb   : > { %3565 = vmatpush3.bf16.msra.mxu1 %v3756_v28  ;;  %3546 = vmatprep.subr.bf16.mxu0 %v3842_v1 }
  0xbc   : > { %3566 = vmatprep.subr.bf16.mxu1 %v3842_v1 }
  0xbe   : > { %3547 = vmatpush3.bf16.msra.mxu0 %v3757_v29 }
  0xbf   : > { %3567 = vmatpush3.bf16.msra.mxu1 %v3758_v30  ;;  %3548 = vmatprep.subr.bf16.mxu0 %v3842_v1 }
  0xc0   : > { %3568 = vmatprep.subr.bf16.mxu1 %v3842_v1 }
  0xc2   : > { %3549 = vmatpush3.bf16.msra.mxu0 %v3759_v31 }
  0xc3   : > { %3569 = vmatpush3.bf16.msra.mxu1 %v3760_v32  ;;  %3550 = vmatprep.subr.bf16.mxu0 %v3842_v1 }
  0xc4   : > { %3570 = vmatprep.subr.bf16.mxu1 %v3842_v1 }
  0xc6   : > { %3551 = vmatpush3.bf16.msra.mxu0 %v3761_v33 }
  0xc7   : > { %3571 = vmatpush3.bf16.msra.mxu1 %v3762_v34  ;;  %3552 = vmatprep.subr.bf16.mxu0 %v3842_v1  ;;  %v3084_v34 = vld [vmem:[%s4646_s6] ss:$0 sm:$0xff] }
  0xc8   : > { %3572 = vmatprep.subr.bf16.mxu1 %v3842_v1 }
  0xca   : > { %3553 = vmatpush3.bf16.msra.mxu0 %v3763_v35  ;;  %v3085_v35 = vld [vmem:[%s4646_s6 + $0x1] ss:$0 sm:$0xff] }
  0xcb   : > { %3573 = vmatpush3.bf16.msra.mxu1 %v3764_v36  ;;  %3578 = vmatprep.subr.bf16.mxu0 %v3842_v1 }
  0xcc   : > { %3584 = vmatprep.subr.bf16.mxu1 %v3842_v1 }
  0xcd   : > { %3555 = vmatmul.mubr.bf16.vlgmr.msra.gmra.mrb[20].mxu0 %v4026_v18 }
  0xce   : > { %3575 = vmatmul.mubr.bf16.vlgmr.msra.gmra.mrb[20].mxu1 %v4026_v18  ;;  %3580 = vmatprep.mubr.msk.bf16.mxu0 %vm3843_vm0, %v3842_v1 }
  0xcf   : > { %3586 = vmatprep.mubr.msk.bf16.mxu1 %vm3843_vm0, %v3842_v1 }
 0x100   : > { %v874_v37 = vpop.f32.mrb[0].mxu0 }
 0x101   : > { %v3356_v38 = vpop.f32.mrb[1].mxu0  ;;  %v962_v39 = vpop.f32.mrb[0].mxu1  ;;  %v875_v7 = vadd.f32 %v3012_v0, %v874_v37 }
 0x102   : > { %v877_v40 = vpop.f32.mrb[2].mxu0  ;;  %v3376_v41 = vpop.f32.mrb[1].mxu1  ;;  %v963_v8 = vadd.f32 %v3013_v4, %v962_v39 }
 0x103   : > { %v3357_v42 = vpop.f32.mrb[3].mxu0  ;;  %v965_v43 = vpop.f32.mrb[2].mxu1  ;;  %v1896_v9 = vpack.c.bf16 %v875_v7, %v875_v7 }
 0x104   : > { %v3377_v44 = vpop.f32.mrb[3].mxu1  ;;  %v1897_v10 = vpack.c.bf16 %v963_v8, %v963_v8 }
 0x120   : > { %v1050_v45 = vpop.f32.mrb[4].mxu0 }
 0x121   : > { %v3396_v46 = vpop.f32.mrb[5].mxu0  ;;  %v1138_v47 = vpop.f32.mrb[4].mxu1  ;;  %v1051_v30 = vadd.f32 %v3014_v24, %v1050_v45 }
 0x122   : > { %v1053_v48 = vpop.f32.mrb[6].mxu0  ;;  %v3416_v49 = vpop.f32.mrb[5].mxu1  ;;  %v1139_v31 = vadd.f32 %v3015_v27, %v1138_v47 }
 0x123   : > { %v3397_v18 = vpop.f32.mrb[7].mxu0  ;;  %v1141_v50 = vpop.f32.mrb[6].mxu1  ;;  %v1898_v32 = vpack.c.bf16 %v1051_v30, %v1051_v30 }
 0x124   : > { %v3417_v51 = vpop.f32.mrb[7].mxu1  ;;  %v1899_v33 = vpack.c.bf16 %v1139_v31, %v1139_v31  ;;  %v3086_v18 = vld [vmem:[%s4646_s6 + $0x2] ss:$0 sm:$0xff]  ;;  %v3087_v50 = vld [vmem:[%s4646_s6 + $0x3] ss:$0 sm:$0xff] }
 0x140   : > { %v1250_v54 = vpop.f32.mrb[8].mxu0 }
 0x141   : > { %v1251_v55 = vadd.f32 %v3048_v52, %v1250_v54  ;;  %v1338_v56 = vpop.f32.mrb[8].mxu1  ;;  %v3436_v57 = vpop.f32.mrb[9].mxu0 }
 0x142   : > { %v1339_v58 = vadd.f32 %v3049_v53, %v1338_v56  ;;  %v1253_v59 = vpop.f32.mrb[10].mxu0  ;;  %v3456_v60 = vpop.f32.mrb[9].mxu1 }
 0x143   : > { %v1900_v61 = vpack.c.bf16 %v1251_v55, %v1251_v55  ;;  %v3437_v62 = vpop.f32.mrb[11].mxu0  ;;  %v1341_v63 = vpop.f32.mrb[10].mxu1 }
 0x144   : > { %v1901_v2 = vpack.c.bf16 %v1339_v58, %v1339_v58  ;;  %v3457_v3 = vpop.f32.mrb[11].mxu1 }
 0x145   : > { %v1909_v5 = vsel %vm1904_vm1, %v1900_v61, 0 }
 0x146   : > { %v1955_v6 = vsel %vm1904_vm1, %v1901_v2, 0  ;;  %3579 = vmatpush3.bf16.xpose.msra.mxu0 %v1909_v5 }
 0x147   : > { %3585 = vmatpush3.bf16.xpose.msra.mxu1 %v1955_v6  ;;  %3590 = vmatprep.subr.bf16.mxu0 %v3842_v1 }
 0x148   : > { %3596 = vmatprep.subr.bf16.mxu1 %v3842_v1 }
 0x14d   : > { %3581 = vmatmul.mubr.msk.bf16.vlgmr.msra.gmra.mrb[24].mxu0 %vm1904_vm1, %v1896_v9 }
 0x14e   : > { %3587 = vmatmul.mubr.msk.bf16.vlgmr.msra.gmra.mrb[24].mxu1 %vm1904_vm1, %v1897_v10  ;;  %3592 = vmatprep.mubr.msk.bf16.mxu0 %vm3843_vm0, %v3842_v1 }
 0x14f   : > { %3598 = vmatprep.mubr.msk.bf16.mxu1 %vm3843_vm0, %v3842_v1 }
 0x160   : > { %v1426_v13 = vpop.f32.mrb[12].mxu0 }
 0x161   : > { %v1427_v14 = vadd.f32 %v3050_v11, %v1426_v13  ;;  %v1514_v15 = vpop.f32.mrb[12].mxu1  ;;  %v3476_v16 = vpop.f32.mrb[13].mxu0 }
 0x162   : > { %v1515_v17 = vadd.f32 %v3051_v12, %v1514_v15  ;;  %v1429_v19 = vpop.f32.mrb[14].mxu0  ;;  %v3496_v20 = vpop.f32.mrb[13].mxu1 }
 0x163   : > { %v1902_v21 = vpack.c.bf16 %v1427_v14, %v1427_v14  ;;  %v3477_v22 = vpop.f32.mrb[15].mxu0  ;;  %v1517_v23 = vpop.f32.mrb[14].mxu1 }
 0x164   : > { %v1903_v25 = vpack.c.bf16 %v1515_v17, %v1515_v17  ;;  %v3497_v26 = vpop.f32.mrb[15].mxu1 }
 0x165   : > { %v2001_v28 = vsel %vm1904_vm1, %v1902_v21, 0 }
 0x166   : > { %v2047_v29 = vsel %vm1904_vm1, %v1903_v25, 0  ;;  %3591 = vmatpush3.bf16.xpose.msra.mxu0 %v2001_v28 }
 0x167   : > { %3597 = vmatpush3.bf16.xpose.msra.mxu1 %v2047_v29  ;;  %3602 = vmatprep.subr.bf16.mxu0 %v3842_v1 }
 0x168   : > { %3608 = vmatprep.subr.bf16.mxu1 %v3842_v1 }
 0x16d   : > { %3593 = vmatmul.mubr.msk.bf16.vlgmr.msra.gmra.mrb[28].mxu0 %vm1904_vm1, %v1898_v32 }
 0x16e   : > { %3599 = vmatmul.mubr.msk.bf16.vlgmr.msra.gmra.mrb[28].mxu1 %vm1904_vm1, %v1899_v33  ;;  %3604 = vmatprep.mubr.msk.bf16.mxu0 %vm3843_vm0, %v3842_v1 }
 0x16f   : > { %3610 = vmatprep.mubr.msk.bf16.mxu1 %vm3843_vm0, %v3842_v1 }
 0x180   : > { %v1626_v36 = vpop.f32.mrb[16].mxu0 }
 0x181   : > { %v1627_v37 = vadd.f32 %v3084_v34, %v1626_v36  ;;  %v3516_v38 = vpop.f32.mrb[17].mxu0  ;;  %v1714_v39 = vpop.f32.mrb[16].mxu1 }
 0x182   : > { %v1629_v40 = vpop.f32.mrb[18].mxu0  ;;  %v1715_v41 = vadd.f32 %v3085_v35, %v1714_v39  ;;  %v3536_v42 = vpop.f32.mrb[17].mxu1 }
 0x183   : > { %v2142_v43 = vpack.c.bf16 %v1627_v37, %v1627_v37  ;;  %v3517_v44 = vpop.f32.mrb[19].mxu0  ;;  %v1717_v45 = vpop.f32.mrb[18].mxu1 }
 0x184   : > { %v2143_v46 = vpack.c.bf16 %v1715_v41, %v1715_v41  ;;  %v3537_v47 = vpop.f32.mrb[19].mxu1 }
 0x185   : > { %v2151_v48 = vsel %vm2149_vm2, %v2142_v43, 0 }
 0x186   : > { %v2197_v49 = vsel %vm2149_vm2, %v2143_v46, 0  ;;  %3603 = vmatpush3.bf16.msra.mxu0 %v2151_v48 }
 0x187   : > { %3609 = vmatpush3.bf16.msra.mxu1 %v2197_v49  ;;  %3614 = vmatprep.subr.bf16.mxu0 %v3842_v1 }
 0x188   : > { %3620 = vmatprep.subr.bf16.mxu1 %v3842_v1 }
 0x1a0   : > { %v1802_v51 = vpop.f32.mrb[20].mxu0 }
 0x1a1   : > { %v1803_v52 = vadd.f32 %v3086_v18, %v1802_v51  ;;  %v1890_v53 = vpop.f32.mrb[20].mxu1  ;;  %v3556_v54 = vpop.f32.mrb[21].mxu0 }
 0x1a2   : > { %v1891_v55 = vadd.f32 %v3087_v50, %v1890_v53  ;;  %v3576_v56 = vpop.f32.mrb[21].mxu1  ;;  %v1805_v57 = vpop.f32.mrb[22].mxu0 }
 0x1a3   : > { %v2144_v58 = vpack.c.bf16 %v1803_v52, %v1803_v52  ;;  %v1893_v59 = vpop.f32.mrb[22].mxu1  ;;  %v3557_v60 = vpop.f32.mrb[23].mxu0 }
 0x1a4   : > { %v2145_v61 = vpack.c.bf16 %v1891_v55, %v1891_v55  ;;  %v3577_v62 = vpop.f32.mrb[23].mxu1 }
 0x1a5   : > { %v4447_v63 = vsel %vm2149_vm2, %v2144_v58, 0  ;;  %v3765_v58 = vld [vmem:[%s4647_s7] sm:$0xff]  }
 0x1a6   : > { %v4450_v0 = vsel %vm2149_vm2, %v2145_v61, 0 }
 0x220   : > { %v1945_v2 = vpop.f32.mrb[24].mxu0 }
 0x221   : > { %v2089_v3 = vmul.f32 0.17677669, %v1945_v2  ;;  %v1991_v4 = vpop.f32.mrb[24].mxu1  ;;  %v3582_v5 = vpop.f32.mrb[25].mxu0  ;;  %v3768_v2 = vld [vmem:[%s4647_s7 + $0x18] sm:$0xff]  }
 0x222   : > { %v3588_v6 = vpop.f32.mrb[25].mxu1  ;;  %v1948_v7 = vpop.f32.mrb[26].mxu0  ;;  %v2090_v8 = vmul.f32 0.17677669, %v1991_v4  ;;  %v3769_v4 = vld [vmem:[%s4647_s7 + $0x20] sm:$0xff]  }
 0x223   : > { %v1994_v9 = vpop.f32.mrb[26].mxu1  ;;  %v3583_v10 = vpop.f32.mrb[27].mxu0  ;;  %v2094_v11 = vsel %vm2093_vm3, %v2089_v3, -inf }
 0x224   : > { %v3589_v12 = vpop.f32.mrb[27].mxu1  ;;  %2095 = vmax.xlane.f32.xlu0 %v2094_v11  ;;  %v2097_v13 = vsel %vm2093_vm3, %v2090_v8, -inf  ;;  %v3770_v10 = vld [vmem:[%s4647_s7 + $0x28] sm:$0xff]   ;;  %v3771_v11 = vld [vmem:[%s4647_s7 + $0x30] sm:$0xff]  }
 0x228   : > { %2098 = vmax.xlane.f32.xlu0 %v2097_v13 }
 0x240   : > { %v2037_v14 = vpop.f32.mrb[28].mxu0 }
 0x241   : > { %v2091_v15 = vmul.f32 0.17677669, %v2037_v14  ;;  %v2083_v16 = vpop.f32.mrb[28].mxu1  ;;  %v3594_v17 = vpop.f32.mrb[29].mxu0 }
 0x242   : > { %v3600_v19 = vpop.f32.mrb[29].mxu1  ;;  %v2040_v20 = vpop.f32.mrb[30].mxu0  ;;  %v2092_v21 = vmul.f32 0.17677669, %v2083_v16  ;;  %v3772_v16 = vld [vmem:[%s4647_s7 + $0x38] sm:$0xff]  }
 0x243   : > { %v2086_v22 = vpop.f32.mrb[30].mxu1  ;;  %v3595_v23 = vpop.f32.mrb[31].mxu0  ;;  %v2100_v24 = vsel %vm2093_vm3, %v2091_v15, -inf }
 0x244   : > { %v3601_v25 = vpop.f32.mrb[31].mxu1  ;;  %2101 = vmax.xlane.f32.xlu1 %v2100_v24  ;;  %v2103_v26 = vsel %vm2093_vm3, %v2092_v21, -inf }
 0x248   : > { %2104 = vmax.xlane.f32.xlu1 %v2103_v26 }
 0x2b1   : > { %v2096_v27 = vpop.xlane.xlu0 %2095 }
 0x2b2   : > { %v2106_v28 = vsub.f32 %v2089_v3, %v2096_v27 }
 0x2b4   : > { %v2110_v29 = vmul.f32 1.442695, %v2106_v28 }
 0x2b5   : > { %v2099_v30 = vpop.xlane.xlu0 %2098 }
 0x2b6   : > { %3813 = vpow2.f32 %v2110_v29  ;;  %v2107_v31 = vsub.f32 %v2090_v8, %v2099_v30 }
 0x2b8   : > { %v2112_v32 = vmul.f32 1.442695, %v2107_v31 }
 0x2ba   : > { %3815 = vpow2.f32 %v2112_v32 }
 0x2c0   : > { %v3814_v33 = vpop.eup %3813 }
 0x2c1   : > { %v2118_v34 = vsel %vm2093_vm3, %v3814_v33, 0.0 }
 0x2c2   : > { %2119 = vadd.xlane.f32.xlu0 %v2118_v34 }
 0x2c4   : > { %v3816_v35 = vpop.eup %3815 }
 0x2c5   : > { %v2121_v36 = vsel %vm2093_vm3, %v3816_v35, 0.0 }
 0x2c6   : > { %2122 = vadd.xlane.f32.xlu1 %v2121_v36 }
 0x2d1   : > { %v2102_v37 = vpop.xlane.xlu1 %2101 }
 0x2d2   : > { %v2108_v38 = vsub.f32 %v2091_v15, %v2102_v37 }
 0x2d4   : > { %v2114_v39 = vmul.f32 1.442695, %v2108_v38 }
 0x2d5   : > { %v2105_v40 = vpop.xlane.xlu1 %2104 }
 0x2d6   : > { %3817 = vpow2.f32 %v2114_v39  ;;  %v2109_v41 = vsub.f32 %v2092_v21, %v2105_v40 }
 0x2d8   : > { %v2116_v42 = vmul.f32 1.442695, %v2109_v41  ;;  %v3140_v41 = vld [vmem:[%s4648_s8] ss:$0 sm:$0xff] }
 0x2da   : > { %3819 = vpow2.f32 %v2116_v42 }
 0x2e0   : > { %v3818_v43 = vpop.eup %3817 }
 0x2e1   : > { %v2124_v44 = vsel %vm2093_vm3, %v3818_v43, 0.0 }
 0x2e2   : > { %2125 = vadd.xlane.f32.xlu0 %v2124_v44 }
 0x2e4   : > { %v3820_v45 = vpop.eup %3819 }
 0x2e5   : > { %v2127_v46 = vsel %vm2093_vm3, %v3820_v45, 0.0 }
 0x2e6   : > { %2128 = vadd.xlane.f32.xlu1 %v2127_v46 }
 0x34f   : > { %v2120_v47 = vpop.xlane.xlu0 %2119 }
 0x350   : > { %3821 = vrcp.f32 %v2120_v47 }
 0x353   : > { %v2123_v48 = vpop.xlane.xlu1 %2122 }
 0x354   : > { %3823 = vrcp.f32 %v2123_v48  ;;  %v3833_v48 = vld [vmem:[%s4014_s20] sm:$0xff] }
 0x35a   : > { %v3822_v49 = vpop.eup %3821 }
 0x35b   : > { %v2134_v18 = vmul.f32 %v3822_v49, %v3814_v33 }
 0x35d   : > { %v2138_v50 = vpack.c.bf16 %v2134_v18, %v2134_v18  ;;  %v3773_v18 = vld [vmem:[%s4651_s11] ss:$8 sps:$4 sm:$0xff]  }
 0x35e   : > { %v3824_v51 = vpop.eup %3823 }
 0x35f   : > { %v2135_v52 = vmul.f32 %v3824_v51, %v3816_v35  ;;  %3605 = vmatmul.mubr.msk.bf16.vlgmr.msra.gmra.mrb[32].mxu0 %vm2093_vm3, %v2138_v50  ;;  %v3775_v50 = vld [vmem:[%s4651_s11 + $0x4] ss:$8 sps:$4 sm:$0xff]   ;;  %v3778_v51 = vld [vmem:[%s4651_s11 + $0x14] ss:$8 sps:$4 sm:$0xff]  }
 0x360   : > { %3615 = vmatpush3.bf16.msra.mxu0 %v4447_v63  ;;  %3616 = vmatprep.mubr.msk.bf16.mxu0 %vm3843_vm0, %v3842_v1  ;;  %v3766_v63 = vld [vmem:[%s4647_s7 + $0x8] sm:$0xff]  }
 0x361   : > { %v2139_v53 = vpack.c.bf16 %v2135_v52, %v2135_v52  ;;  %3626 = vmatprep.subr.bf16.mxu0 %v3842_v1  ;;  %v3776_v52 = vld [vmem:[%s4651_s11 + $0x10] ss:$8 sps:$4 sm:$0xff]  }
 0x363   : > { %3611 = vmatmul.mubr.msk.bf16.vlgmr.msra.gmra.mrb[32].mxu1 %vm2093_vm3, %v2139_v53  ;;  %v3781_v53 = vld [vmem:[%s4651_s11 + $0x24] ss:$8 sps:$4 sm:$0xff]  }
 0x364   : > { %3621 = vmatpush3.bf16.msra.mxu1 %v4450_v0  ;;  %3622 = vmatprep.mubr.msk.bf16.mxu1 %vm3843_vm0, %v3842_v1  ;;  %v3767_v0 = vld [vmem:[%s4647_s7 + $0x10] sm:$0xff]  }
 0x365   : > { %3634 = vmatprep.subr.bf16.mxu1 %v3842_v1 }
 0x36f   : > { %v2126_v54 = vpop.xlane.xlu0 %2125 }
 0x370   : > { %3825 = vrcp.f32 %v2126_v54  ;;  %v3779_v54 = vld [vmem:[%s4651_s11 + $0x20] ss:$8 sps:$4 sm:$0xff]  }
 0x373   : > { %v2129_v55 = vpop.xlane.xlu1 %2128 }
 0x374   : > { %3827 = vrcp.f32 %v2129_v55 }
 0x37a   : > { %v3826_v56 = vpop.eup %3825 }
 0x37b   : > { %v2136_v57 = vmul.f32 %v3826_v56, %v3818_v43 }
 0x37d   : > { %v2140_v59 = vpack.c.bf16 %v2136_v57, %v2136_v57 }
 0x37e   : > { %v3828_v60 = vpop.eup %3827 }
 0x37f   : > { %v2137_v61 = vmul.f32 %v3828_v60, %v3820_v45  ;;  %3617 = vmatmul.mubr.msk.bf16.vlgmr.msra.gmra.mrb[36].mxu0 %vm2093_vm3, %v2140_v59  ;;  %v3784_v59 = vld [vmem:[%s4651_s11 + $0x34] ss:$8 sps:$4 sm:$0xff]   ;;  %v3782_v60 = vld [vmem:[%s4651_s11 + $0x30] ss:$8 sps:$4 sm:$0xff]  }
 0x380   : > { %3627 = vmatpush3.bf16.msra.mxu0 %v3765_v58  ;;  %3630 = vmatprep.mubr.msk.bf16.mxu0 %vm3843_vm0, %v3842_v1 }
 0x381   : > { %v2141_v62 = vpack.c.bf16 %v2137_v61, %v2137_v61  ;;  %3628 = vmatprep.subr.bf16.mxu0 %v3842_v1  ;;  %v3787_v61 = vld [vmem:[%s4651_s11 + $0x44] ss:$8 sps:$4 sm:$0xff]  }
 0x383   : > { %3623 = vmatmul.mubr.msk.bf16.vlgmr.msra.gmra.mrb[36].mxu1 %vm2093_vm3, %v2141_v62  ;;  %v3785_v62 = vld [vmem:[%s4651_s11 + $0x40] ss:$8 sps:$4 sm:$0xff]  }
 0x384   : > { %3638 = vmatprep.mubr.msk.bf16.mxu1 %vm3843_vm0, %v3842_v1  ;;  %3629 = vmatpush3.bf16.msra.mxu0 %v3766_v63  ;;  %v3790_v63 = vld [vmem:[%s4651_s11 + $0x54] ss:$8 sps:$4 sm:$0xff]  }
 0x385   : > { %3635 = vmatpush3.bf16.msra.mxu1 %v3767_v0  ;;  %3642 = vmatprep.subr.bf16.mxu0 %v3842_v1  ;;  %v3788_v0 = vld [vmem:[%s4651_s11 + $0x50] ss:$8 sps:$4 sm:$0xff]  }
 0x386   : > { %3636 = vmatprep.subr.bf16.mxu1 %v3842_v1 }
 0x389   : > { %3637 = vmatpush3.bf16.msra.mxu1 %v3768_v2  ;;  %v3793_v2 = vld [vmem:[%s4651_s11 + $0x64] ss:$8 sps:$4 sm:$0xff]  }
 0x38a   : > { %3650 = vmatprep.subr.bf16.mxu1 %v3842_v1 }
 0x432   : > { %v2187_v3 = vpop.f32.mrb[32].mxu0 }
 0x433   : > { %v2331_v5 = vpack.c.bf16 %v2187_v3, %v2187_v3  ;;  %v3606_v6 = vpop.f32.mrb[33].mxu0  ;;  %v3791_v3 = vld [vmem:[%s4651_s11 + $0x60] ss:$8 sps:$4 sm:$0xff]  }
 0x434   : > { %v2190_v7 = vpop.f32.mrb[34].mxu0  ;;  %v3844_v6 = vmov 0  }
 0x435   : > { %v3607_v8 = vpop.f32.mrb[35].mxu0  ;;  %3631 = vmatmul.mubr.msk.bf16.vlgmr.msra.gmra.mrb[40].mxu0 %vm1904_vm1, %v2331_v5  ;;  %v3794_v5 = vld [vmem:[%s4651_s11 + $0x70] ss:$8 sps:$4 sm:$0xff]   ;;  %v3797_v7 = vld [vmem:[%s4653_s13 + $0x40] sm:$0xff]  }
 0x436   : > { %v2233_v9 = vpop.f32.mrb[32].mxu1  ;;  %3643 = vmatpush3.bf16.msra.mxu0 %v3769_v4  ;;  %3646 = vmatprep.mubr.msk.bf16.mxu0 %vm3843_vm0, %v3842_v1  ;;  %v3796_v4 = vld [vmem:[%s4651_s11 + $0x74] ss:$8 sps:$4 sm:$0xff]   ;;  %v3798_v8 = vld [vmem:[%s4653_s13] sm:$0xff]  }
 0x437   : > { %v2332_v12 = vpack.c.bf16 %v2233_v9, %v2233_v9  ;;  %v3612_v13 = vpop.f32.mrb[33].mxu1  ;;  %3644 = vmatprep.subr.bf16.mxu0 %v3842_v1  ;;  %v3799_v9 = vld [vmem:[%s4653_s13 + $0x48] sm:$0xff]  }
 0x438   : > { %v2236_v14 = vpop.f32.mrb[34].mxu1  ;;  %v3803_v13 = vld [vmem:[%s4653_s13 + $0x58] sm:$0xff]  }
 0x439   : > { %v3613_v15 = vpop.f32.mrb[35].mxu1  ;;  %3639 = vmatmul.mubr.msk.bf16.vlgmr.msra.gmra.mrb[40].mxu1 %vm1904_vm1, %v2332_v12  ;;  %v3802_v12 = vld [vmem:[%s4653_s13 + $0x10] sm:$0xff]   ;;  %v3804_v14 = vld [vmem:[%s4653_s13 + $0x18] sm:$0xff]  }
 0x43a   : > { %3645 = vmatpush3.bf16.msra.mxu0 %v3770_v10  ;;  %3651 = vmatpush3.bf16.msra.mxu1 %v3771_v11  ;;  %v3800_v10 = vld [vmem:[%s4653_s13 + $0x8] sm:$0xff]   ;;  %v3801_v11 = vld [vmem:[%s4653_s13 + $0x50] sm:$0xff]   ;;  %v3805_v15 = vld [vmem:[%s4653_s13 + $0x60] sm:$0xff]  }
 0x43b   : > { %3652 = vmatprep.subr.bf16.mxu1 %v3842_v1  ;;  %3654 = vmatprep.mubr.msk.bf16.mxu1 %vm3843_vm0, %v3842_v1 }
 0x43c   : > { %2736 = vmatprep.subr.bf16.mxu0 %v3775_v50  ;;  %v3159_v50 = vld [vmem:[%s4654_s14] ss:$0 sm:$0xff] }
 0x43e   : > { %3653 = vmatpush3.bf16.msra.mxu1 %v3772_v16  ;;  %v3806_v16 = vld [vmem:[%s4653_s13 + $0x20] sm:$0xff]  }
 0x43f   : > { %3316 = vmatprep.subr.bf16.mxu1 %v3797_v7 }
 0x452   : > { %v2279_v17 = vpop.f32.mrb[36].mxu0 }
 0x453   : > { %v2333_v19 = vpack.c.bf16 %v2279_v17, %v2279_v17  ;;  %v3618_v20 = vpop.f32.mrb[37].mxu0  ;;  %v3807_v17 = vld [vmem:[%s4653_s13 + $0x68] sm:$0xff]  }
 0x454   : > { %v2282_v21 = vpop.f32.mrb[38].mxu0 }
 0x455   : > { %v3619_v22 = vpop.f32.mrb[39].mxu0  ;;  %3647 = vmatmul.mubr.msk.bf16.vlgmr.msra.gmra.mrb[44].mxu0 %vm1904_vm1, %v2333_v19  ;;  %v3808_v19 = vld [vmem:[%s4653_s13 + $0x28] sm:$0xff]  }
 0x456   : > { %v2325_v23 = vpop.f32.mrb[36].mxu1  ;;  %2737 = vmatpush1.bf16.msra.mxu0 %v3773_v18  ;;  %2768 = vmatprep.mubr.bf16.mxu0 %v3844_v6 }
 0x457   : > { %v2334_v24 = vpack.c.bf16 %v2325_v23, %v2325_v23  ;;  %v3624_v25 = vpop.f32.mrb[37].mxu1  ;;  %2738 = vmatprep.subr.bf16.mxu0 %v3778_v51 }
 0x458   : > { %v2328_v26 = vpop.f32.mrb[38].mxu1 }
 0x459   : > { %v3625_v27 = vpop.f32.mrb[39].mxu1  ;;  %3655 = vmatmul.mubr.msk.bf16.vlgmr.msra.gmra.mrb[44].mxu1 %vm1904_vm1, %v2334_v24  ;;  %v3141_v24 = vld [vmem:[%s4649_s9] ss:$0 sm:$0xff] }
 0x45a   : > { %2739 = vmatpush1.bf16.msra.mxu0 %v3776_v52  ;;  %3317 = vmatpush3.bf16.msra.mxu1 %v3798_v8  ;;  %v3142_v26 = vld [vmem:[%s4650_s10] ss:$0 sm:$0xff] }
 0x45b   : > { %2740 = vmatprep.subr.bf16.mxu0 %v3781_v53  ;;  %3318 = vmatprep.subr.bf16.mxu1 %v3799_v9 }
 0x45e   : > { %2741 = vmatpush1.bf16.msra.mxu0 %v3779_v54  ;;  %3319 = vmatpush3.bf16.msra.mxu1 %v3800_v10 }
 0x45f   : > { %2742 = vmatprep.subr.bf16.mxu0 %v3784_v59  ;;  %3320 = vmatprep.subr.bf16.mxu1 %v3801_v11 }
 0x462   : > { %2743 = vmatpush1.bf16.msra.mxu0 %v3782_v60  ;;  %3321 = vmatpush3.bf16.msra.mxu1 %v3802_v12 }
 0x463   : > { %2744 = vmatprep.subr.bf16.mxu0 %v3787_v61  ;;  %3322 = vmatprep.subr.bf16.mxu1 %v3803_v13 }
 0x466   : > { %2745 = vmatpush1.bf16.msra.mxu0 %v3785_v62  ;;  %3323 = vmatpush3.bf16.msra.mxu1 %v3804_v14 }
 0x467   : > { %2746 = vmatprep.subr.bf16.mxu0 %v3790_v63  ;;  %3324 = vmatprep.subr.bf16.mxu1 %v3805_v15 }
 0x46a   : > { %2747 = vmatpush1.bf16.msra.mxu0 %v3788_v0  ;;  %3325 = vmatpush3.bf16.msra.mxu1 %v3806_v16 }
 0x46b   : > { %2748 = vmatprep.subr.bf16.mxu0 %v3793_v2  ;;  %3326 = vmatprep.subr.bf16.mxu1 %v3807_v17  ;;  %v3176_v2 = vld [vmem:[%s4655_s15] ss:$0 sm:$0xff] }
 0x46e   : > { %2749 = vmatpush1.bf16.msra.mxu0 %v3791_v3  ;;  %3327 = vmatpush3.bf16.msra.mxu1 %v3808_v19 }
 0x46f   : > { %2750 = vmatprep.subr.bf16.mxu0 %v3796_v4  ;;  %v3177_v4 = vld [vmem:[%s4656_s16] ss:$0 sm:$0xff] }
 0x472   : > { %2751 = vmatpush1.bf16.msra.mxu0 %v3794_v5 }
 0x508   : > { %v2384_v28 = vpop.f32.mrb[40].mxu0 }
 0x509   : > { %v3632_v29 = vpop.f32.mrb[41].mxu0 }
 0x50a   : > { %v2387_v30 = vpop.f32.mrb[42].mxu0 }
 0x50b   : > { %v3633_v31 = vpop.f32.mrb[43].mxu0  ;;  %v3809_v30 = vld [vmem:[%s4653_s13 + $0x70] sm:$0xff]  }
 0x50c   : > { %v2439_v1 = vpop.f32.mrb[40].mxu1  ;;  %v3810_v31 = vld [vmem:[%s4653_s13 + $0x30] sm:$0xff]   ;;  %3328 = vmatprep.subr.bf16.mxu1 %v3809_v30 }
 0x50d   : > { %v2555_v32 = vadd.f32 %v2439_v1, %v2384_v28  ;;  %v3640_v33 = vpop.f32.mrb[41].mxu1  ;;  %3329 = vmatpush3.bf16.msra.mxu1 %v3810_v31  ;;  %v3811_v1 = vld [vmem:[%s4653_s13 + $0x78] sm:$0xff]  }
 0x50e   : > { %v2442_v34 = vpop.f32.mrb[42].mxu1  ;;  %3330 = vmatprep.subr.bf16.mxu1 %v3811_v1  ;;  %v2646_v33 = vlaneseq }
 0x50f   : > { %v3641_v35 = vpop.f32.mrb[43].mxu1 }
 0x510   : > { %v2647_v34 = vshrl.u32 %v2646_v33, 7 }
 0x512   : > { %v2648_v35 = vsub.s32 0, %v2647_v34 }
 0x528   : > { %v2494_v36 = vpop.f32.mrb[44].mxu0 }
 0x529   : > { %v2556_v37 = vadd.f32 %v2555_v32, %v2494_v36  ;;  %v3648_v38 = vpop.f32.mrb[45].mxu0  ;;  %v3812_v32 = vld [vmem:[%s4653_s13 + $0x38] sm:$0xff]   ;;  %v2610_v36 = vld [vmem:[%s4652_s12] sm:$0x3] }
 0x52a   : > { %v2497_v39 = vpop.f32.mrb[46].mxu0  ;;  %3331 = vmatpush3.bf16.msra.mxu1 %v3812_v32  ;;  %v2649_v38 = vrot.slane %v2610_v36, %v2648_v35 }
 0x52b   : > { %v3649_v40 = vpop.f32.mrb[47].mxu0 }
 0x52c   : > { %v2549_v42 = vpop.f32.mrb[44].mxu1 }
 0x52d   : > { %v2557_v43 = vadd.f32 %v2556_v37, %v2549_v42  ;;  %v3656_v44 = vpop.f32.mrb[45].mxu1  ;;  %v2652_v37 = vsub.s32 1, %v2647_v34 }
 0x52e   : > { %v2552_v45 = vpop.f32.mrb[46].mxu1 }
 0x52f   : > { %v2564_v46 = vadd.f32 %v3140_v41, %v2557_v43  ;;  %v3657_v47 = vpop.f32.mrb[47].mxu1  ;;  %v2653_v39 = vrot.slane %v2610_v36, %v2652_v37 }
 0x531   : > { %v2567_v49 = vadd.f32 %v3833_v48, %v2564_v46 }
 0x533   : > { %2568 = vadd.xlane.f32.xlu0 %v2567_v49 }
 0x5c0   : > { %v2569_v55 = vpop.xlane.xlu0 %2568 }
 0x5c1   : > { %v2571_v56 = vmul.f32 0.0078125, %v2569_v55 }
 0x5c3   : > { %v2572_v57 = vsub.f32 %v2567_v49, %v2571_v56 }
 0x5c5   : > { %v2573_v58 = vmul.f32 %v2572_v57, %v2572_v57 }
 0x5c7   : > { %2574 = vadd.xlane.f32.xlu1 %v2573_v58 }
 0x654   : > { %v2575_v20 = vpop.xlane.xlu1 %2574 }
 0x655   : > { %v2576_v21 = vmul.f32 0.0078125, %v2575_v20 }
 0x657   : > { %v2577_v22 = vadd.f32 1e-05, %v2576_v21 }
 0x659   : > { %3829 = vrsqrt.f32 %v2577_v22 }
 0x663   : > { %v3830_v23 = vpop.eup %3829 }
 0x664   : > { %v2579_v25 = vmul.f32 %v3830_v23, %v2572_v57 }
 0x666   : > { %v2586_v27 = vmul.f32 %v3141_v24, %v2579_v25 }
 0x668   : > { %v2593_v28 = vadd.f32 %v3142_v26, %v2586_v27 }
 0x66a   : > { %v2644_v29 = vpack.c.bf16 %v2593_v28, %v2593_v28 }
 0x66c   : > { %2769 = vmatmul.mubr.bf16.vlgmr.msra.gmra.mrb[48].mxu0 %v2644_v29 }
 0x73f   : > { %v2770_v40 = vpop.f32.mrb[48].mxu0 }
 0x740   : > { %v2771_v41 = vadd.f32 %v2770_v40, %v2649_v38  ;;  %v2772_v42 = vpop.f32.mrb[49].mxu0 }
 0x741   : > { %v2773_v43 = vadd.f32 %v2772_v42, %v2653_v39  ;;  %v2774_v44 = vpop.f32.mrb[50].mxu0 }
 0x742   : > { %v2777_v45 = vmax.f32 %v2771_v41, 0.0  ;;  %v2775_v46 = vpop.f32.mrb[51].mxu0 }
 0x743   : > { %v2778_v47 = vmax.f32 %v2773_v43, 0.0 }
 0x744   : > { %v2779_v49 = vpack.c.bf16 %v2777_v45, %v2777_v45 }
 0x745   : > { %v2780_v48 = vpack.c.bf16 %v2778_v47, %v2778_v47 }
 0x747   : > { %2915 = vmatprep.mubr.bf16.mxu1 %v2780_v48 }
 0x748   : > { %2916 = vmatmul.mubr.bf16.vlgmr.msra.gmra.mrb[48].mxu1 %v2779_v49 }
 0x81b   : > { %v3332_v18 = vpop.f32.mrb[48].mxu1 }
 0x81c   : > { %v3333_v51 = vpop.f32.mrb[49].mxu1 }
 0x81d   : > { %v3334_v52 = vadd.f32 %v3333_v51, %v3332_v18  ;;  %v3335_v53 = vpop.f32.mrb[50].mxu1 }
 0x81e   : > { %v3336_v54 = vpop.f32.mrb[51].mxu1 }
 0x81f   : > { %v2918_v55 = vadd.f32 %v3334_v52, %v3159_v50 }
 0x821   : > { %v2925_v56 = vadd.f32 %v2918_v55, %v2593_v28 }
 0x823   : > { %2926 = vadd.xlane.f32.xlu0 %v2925_v56 }
 0x8b0   : > { %v2927_v57 = vpop.xlane.xlu0 %2926 }
 0x8b1   : > { %v2928_v58 = vmul.f32 0.0078125, %v2927_v57 }
 0x8b3   : > { %v2929_v59 = vsub.f32 %v2925_v56, %v2928_v58 }
 0x8b5   : > { %v2930_v60 = vmul.f32 %v2929_v59, %v2929_v59 }
 0x8b7   : > { %2931 = vadd.xlane.f32.xlu1 %v2930_v60 }
 0x944   : > { %v2932_v61 = vpop.xlane.xlu1 %2931 }
 0x945   : > { %v2933_v62 = vmul.f32 0.0078125, %v2932_v61 }
 0x947   : > { %v2934_v63 = vadd.f32 1e-05, %v2933_v62 }
 0x949   : > { %3831 = vrsqrt.f32 %v2934_v63 }
 0x953   : > { %v3832_v0 = vpop.eup %3831 }
 0x954   : > { %v2936_v3 = vmul.f32 %v3832_v0, %v2929_v59 }
 0x956   : > { %v2943_v5 = vmul.f32 %v3176_v2, %v2936_v3 }
 0x958   : > { %v2950_v6 = vadd.f32 %v3177_v4, %v2943_v5 }
 0x95a   : > { %2951 = vst [vmem:[%s543_s18] sm:$0xff] %v2950_v6 }
 0x95b PF: > { %s27_s24 = sadd.s32 1, %s3840_s24  }
 0x95c   : > { %p24_p4 = scmp.ge.s32.totalorder %s27_s24, 4  }
 0x95e   :  { %26 = sbr.rel (!%p24_p4) target bundleno = 3 (0x3), region = 118 }

// kernel: transformer_mt_forward.13
= control target key start
LH: loop header
LB: loop body
LE: loop exit
PB: predicated region body
PF: predicated region fallthrough
CT: control target
= control target key end

     0   :  { %s8361_s0 = inlined_call_operand.vmem [shape: f32[2,8,128], index: 0, kind: input, shape index: {}]   ;;  %s8362_s1 = inlined_call_operand.vmem [shape: f32[2,8,128], index: 1, kind: input, shape index: {}]   ;;  %s8363_s2 = inlined_call_operand.vmem [shape: bf16[4,128,32], index: 2, kind: input, shape index: {}]   ;;  %s8364_s3 = inlined_call_operand.vmem [shape: f32[4,1,32], index: 3, kind: input, shape index: {}]   ;;  %s8365_s4 = inlined_call_operand.vmem [shape: bf16[4,128,32], index: 4, kind: input, shape index: {}]   ;;  %s8366_s5 = inlined_call_operand.vmem [shape: f32[4,1,32], index: 5, kind: input, shape index: {}]   ;;  %s8367_s6 = inlined_call_operand.vmem [shape: bf16[4,128,32], index: 6, kind: input, shape index: {}]   ;;  %s8368_s7 = inlined_call_operand.vmem [shape: f32[4,1,32], index: 7, kind: input, shape index: {}]   ;;  %s8369_s8 = inlined_call_operand.vmem [shape: bf16[4,32,128], index: 8, kind: input, shape index: {}]   ;;  %s8370_s9 = inlined_call_operand.vmem [shape: f32[1,128], index: 9, kind: input, shape index: {}]   ;;  %s8371_s10 = inlined_call_operand.vmem [shape: f32[1,128], index: 10, kind: input, shape index: {}]   ;;  %s8372_s11 = inlined_call_operand.vmem [shape: f32[1,128], index: 11, kind: input, shape index: {}]   ;;  %s8373_s12 = inlined_call_operand.vmem [shape: bf16[4,128,32], index: 12, kind: input, shape index: {}]   ;;  %s8374_s13 = inlined_call_operand.vmem [shape: f32[4,1,32], index: 13, kind: input, shape index: {}]   ;;  %s8375_s14 = inlined_call_operand.vmem [shape: bf16[4,128,32], index: 14, kind: input, shape index: {}]   ;;  %s8376_s15 = inlined_call_operand.vmem [shape: f32[4,1,32], index: 15, kind: input, shape index: {}]   ;;  %s8377_s16 = inlined_call_operand.vmem [shape: bf16[4,128,32], index: 16, kind: input, shape index: {}]   ;;  %s8378_s17 = inlined_call_operand.vmem [shape: f32[4,1,32], index: 17, kind: input, shape index: {}]   ;;  %s8379_s18 = inlined_call_operand.vmem [shape: bf16[4,32,128], index: 18, kind: input, shape index: {}]   ;;  %s8380_s19 = inlined_call_operand.vmem [shape: f32[1,128], index: 19, kind: input, shape index: {}]   ;;  %s8381_s20 = inlined_call_operand.vmem [shape: f32[1,128], index: 20, kind: input, shape index: {}]   ;;  %s8382_s21 = inlined_call_operand.vmem [shape: f32[1,128], index: 21, kind: input, shape index: {}]   ;;  %s8383_s22 = inlined_call_operand.vmem [shape: bf16[128,256], index: 22, kind: input, shape index: {}]   ;;  %s8384_s23 = inlined_call_operand.vmem [shape: f32[1,256], index: 23, kind: input, shape index: {}]   ;;  %s8385_s24 = inlined_call_operand.vmem [shape: bf16[256,128], index: 24, kind: input, shape index: {}]   ;;  %s8386_s25 = inlined_call_operand.vmem [shape: f32[1,128], index: 25, kind: input, shape index: {}]   ;;  %s8387_s26 = inlined_call_operand.vmem [shape: f32[1,128], index: 26, kind: input, shape index: {}]   ;;  %s8388_s27 = inlined_call_operand.vmem [shape: f32[1,128], index: 27, kind: input, shape index: {}]   ;;  %s8389_s28 = inlined_call_operand.vmem [shape: f32[2,8,128], index: 28, kind: output, shape index: {}]  }
   0x1   :  { %8403 = sst [smem:[#allocation2_spill]] %s8361_s0 }
   0x2   :  { %8404 = sst [smem:[#allocation3_spill]] %s8362_s1 }
   0x3   :  { %8405 = sst [smem:[#allocation4_spill]] %s8363_s2 }
   0x4   :  { %8406 = sst [smem:[#allocation5_spill]] %s8364_s3 }
   0x5   :  { %8407 = sst [smem:[#allocation6_spill]] %s8365_s4 }
   0x6   :  { %8408 = sst [smem:[#allocation7_spill]] %s8366_s5 }
   0x7   :  { %8409 = sst [smem:[#allocation8_spill]] %s8367_s6 }
   0x8   :  { %8410 = sst [smem:[#allocation9_spill]] %s8368_s7 }
   0x9   :  { %8411 = sst [smem:[#allocation10_spill]] %s8369_s8  ;;  %s7084_s8 = smov 0  }
   0xa   :  { %8412 = sst [smem:[#allocation11_spill]] %s8370_s9 }
   0xb   :  { %8413 = sst [smem:[#allocation12_spill]] %s8371_s10 }
   0xc   :  { %8414 = sst [smem:[#allocation13_spill]] %s8372_s11 }
   0xd   :  { %8415 = sst [smem:[#allocation14_spill]] %s8373_s12 }
   0xe LB: > { %s5387_s5 = sadd.s32 4294967295, %s6933_s8   ;;  %p5391_p0 = scmp.ge.s32.totalorder %s6933_s8, 1  ;;  %s6933_s8 = sphi %s7084_s8, %s38_s8  }
   0xf   : > { %p770_p1 = scmp.lt.s32.totalorder %s6933_s8, 3 }
  0x11   : > { %p771_p2 = pnand %p5391_p0, %p770_p1 }
  0x12   : > { %s8416_s3 = sld [smem:[#allocation4_spill]] (!%p771_p2)  ;;  %v6935_v1 = vmov (!%p771_p2), 0.0   ;;  %vm6936_vm0 = vmmov (!%p771_p2), 0   ;;  %p846_p3 = scmp.lt.s32.totalorder (!%p771_p2), %s5387_s5, 1  ;;  %vm2219_vm1 = vcmask (!%p771_p2), 261120   ;;  %vm2474_vm2 = vcmask (!%p771_p2), 1043456  }
  0x13   : > { %774 = sbr.rel (%p771_p2) target bundleno = 4006 (0xfa6), region = 132  ;;  %5988 = vmatprep.subr.bf16.mxu0 (!%p771_p2), %v6935_v1  ;;  %6008 = vmatprep.subr.bf16.mxu1 (!%p771_p2), %v6935_v1  ;;  %s8417_s2 = sld [smem:[#allocation2_spill]] (!%p771_p2)  ;;  %vm2418_vm4 = vcmask (!%p771_p2), 64512  }
  0x14   : > { %6004 = vmatprep.mubr.msk.bf16.mxu0 (!%p771_p2), %vm6936_vm0, %v6935_v1  ;;  %6024 = vmatprep.mubr.msk.bf16.mxu1 (!%p771_p2), %vm6936_vm0, %v6935_v1  ;;  %s8418_s6 = sld [smem:[#allocation6_spill]] (!%p771_p2)  ;;  %s8420_s12 = sld [smem:[#allocation7_spill]] (!%p771_p2) }
  0x15   : > { %s8421_s0 = sld [smem:[#allocation5_spill]] (!%p771_p2)  ;;  %s8422_s30 = sld [smem:[#allocation9_spill]] (!%p771_p2) }
  0x16   : > { %s8423_s29 = sld [smem:[#allocation10_spill]] (!%p771_p2)  ;;  %s8425_s1 = sld [smem:[#allocation14_spill]] (!%p771_p2) }
  0x18   : > { %v6640_v0 = vld [vmem:[%s8416_s3] sm:$0xff] (!%p771_p2)   ;;  %v6642_v3 = vld [vmem:[%s8416_s3 + $0x8] sm:$0xff] (!%p771_p2)   ;;  %v6644_v5 = vld [vmem:[%s8416_s3 + $0x10] sm:$0xff] (!%p771_p2)  }
  0x19   : > { %v6641_v2 = vld [vmem:[%s8416_s3 + $0x40] sm:$0xff] (!%p771_p2)   ;;  %5989 = vmatpush3.bf16.msra.mxu0 (!%p771_p2), %v6640_v0  ;;  %v6643_v4 = vld [vmem:[%s8416_s3 + $0x48] sm:$0xff] (!%p771_p2)   ;;  %v6645_v6 = vld [vmem:[%s8416_s3 + $0x50] sm:$0xff] (!%p771_p2)  }
  0x1a   : > { %6009 = vmatpush3.bf16.msra.mxu1 %v6641_v2  ;;  %5990 = vmatprep.subr.bf16.mxu0 %v6935_v1  ;;  %v6646_v7 = vld [vmem:[%s8416_s3 + $0x18] sm:$0xff]   ;;  %v6648_v9 = vld [vmem:[%s8416_s3 + $0x20] sm:$0xff]   ;;  %s8430_s5 = smov (!%p846_p3, %s5387_s5), 1  ;;  %v6650_v11 = vld [vmem:[%s8416_s3 + $0x28] sm:$0xff]  }
  0x1b   : > { %6010 = vmatprep.subr.bf16.mxu1 %v6935_v1  ;;  %v6647_v8 = vld [vmem:[%s8416_s3 + $0x58] sm:$0xff]   ;;  %v6649_v10 = vld [vmem:[%s8416_s3 + $0x60] sm:$0xff]   ;;  %v6651_v12 = vld [vmem:[%s8416_s3 + $0x68] sm:$0xff]   ;;  %s7148_s9 = sshll.u32 %s8430_s5, 3 }
  0x1c   : > { %v6652_v13 = vld [vmem:[%s8416_s3 + $0x30] sm:$0xff]   ;;  %s7161_s7 = scalar_lea.vmem %s8417_s2, %s7148_s9  ;;  %v6654_v15 = vld [vmem:[%s8416_s3 + $0x38] sm:$0xff]   ;;  %v6656_v19 = vld [vmem:[%s8416_s3 + $0x80] sm:$0xff]   ;;  %s8419_s2 = sld [smem:[#allocation8_spill]] }
  0x1d   : > { %5991 = vmatpush3.bf16.msra.mxu0 %v6642_v3  ;;  %v6653_v14 = vld [vmem:[%s8416_s3 + $0x70] sm:$0xff]   ;;  %v859_v16 = vld [vmem:[%s7161_s7] sm:$0xff]  ;;  %v6655_v17 = vld [vmem:[%s8416_s3 + $0x78] sm:$0xff]   ;;  %s857_s4 = scalar_lea.vmem %s8389_s28, %s7148_s9 }
  0x1e   : > { %6011 = vmatpush3.bf16.msra.mxu1 %v6643_v4  ;;  %5992 = vmatprep.subr.bf16.mxu0 %v6935_v1  ;;  %v7173_v18 = vpack.c.bf16 %v859_v16, %v859_v16  ;;  %v6657_v20 = vld [vmem:[%s8416_s3 + $0xc0] sm:$0xff]   ;;  %v6658_v21 = vld [vmem:[%s8416_s3 + $0x88] sm:$0xff]   ;;  %v6660_v23 = vld [vmem:[%s8416_s3 + $0x90] sm:$0xff]  }
  0x1f   : > { %6012 = vmatprep.subr.bf16.mxu1 %v6935_v1  ;;  %v6659_v22 = vld [vmem:[%s8416_s3 + $0xc8] sm:$0xff]   ;;  %v6661_v24 = vld [vmem:[%s8416_s3 + $0xd0] sm:$0xff]   ;;  %v6662_v25 = vld [vmem:[%s8416_s3 + $0x98] sm:$0xff]  }
  0x20   : > { %v6663_v26 = vld [vmem:[%s8416_s3 + $0xd8] sm:$0xff]   ;;  %v6664_v27 = vld [vmem:[%s8416_s3 + $0xa0] sm:$0xff]   ;;  %v6666_v29 = vld [vmem:[%s8416_s3 + $0xa8] sm:$0xff]  }
  0x21   : > { %5993 = vmatpush3.bf16.msra.mxu0 %v6644_v5  ;;  %v6665_v28 = vld [vmem:[%s8416_s3 + $0xe0] sm:$0xff]   ;;  %v6667_v30 = vld [vmem:[%s8416_s3 + $0xe8] sm:$0xff]   ;;  %v6668_v31 = vld [vmem:[%s8416_s3 + $0xb0] sm:$0xff]  }
  0x22   : > { %6013 = vmatpush3.bf16.msra.mxu1 %v6645_v6  ;;  %5994 = vmatprep.subr.bf16.mxu0 %v6935_v1  ;;  %v6669_v32 = vld [vmem:[%s8416_s3 + $0xf0] sm:$0xff]   ;;  %v6670_v33 = vld [vmem:[%s8416_s3 + $0xb8] sm:$0xff]   ;;  %v6672_v35 = vld [vmem:[%s8418_s6] sm:$0xff]  }
  0x23   : > { %6014 = vmatprep.subr.bf16.mxu1 %v6935_v1  ;;  %v6671_v34 = vld [vmem:[%s8416_s3 + $0xf8] sm:$0xff]   ;;  %v6673_v36 = vld [vmem:[%s8418_s6 + $0x40] sm:$0xff]   ;;  %v6674_v37 = vld [vmem:[%s8418_s6 + $0x8] sm:$0xff]   ;;  %s8427_s3 = sld [smem:[#allocation13_spill]] }
  0x24   : > { %v6675_v38 = vld [vmem:[%s8418_s6 + $0x48] sm:$0xff]   ;;  %v6676_v39 = vld [vmem:[%s8418_s6 + $0x10] sm:$0xff]   ;;  %v6678_v41 = vld [vmem:[%s8418_s6 + $0x18] sm:$0xff]  }
  0x25   : > { %5995 = vmatpush3.bf16.msra.mxu0 %v6646_v7  ;;  %v6677_v40 = vld [vmem:[%s8418_s6 + $0x50] sm:$0xff]   ;;  %v6679_v42 = vld [vmem:[%s8418_s6 + $0x58] sm:$0xff]   ;;  %v6680_v43 = vld [vmem:[%s8418_s6 + $0x20] sm:$0xff]  }
  0x26   : > { %6015 = vmatpush3.bf16.msra.mxu1 %v6647_v8  ;;  %5996 = vmatprep.subr.bf16.mxu0 %v6935_v1  ;;  %v6681_v44 = vld [vmem:[%s8418_s6 + $0x60] sm:$0xff]   ;;  %v6682_v45 = vld [vmem:[%s8418_s6 + $0x28] sm:$0xff]   ;;  %v6684_v47 = vld [vmem:[%s8418_s6 + $0x30] sm:$0xff]  }
  0x27   : > { %6016 = vmatprep.subr.bf16.mxu1 %v6935_v1  ;;  %v6683_v46 = vld [vmem:[%s8418_s6 + $0x68] sm:$0xff]   ;;  %v6685_v48 = vld [vmem:[%s8418_s6 + $0x70] sm:$0xff]   ;;  %v6686_v49 = vld [vmem:[%s8418_s6 + $0x38] sm:$0xff]  }
  0x28   : > { %v6687_v50 = vld [vmem:[%s8418_s6 + $0x78] sm:$0xff]   ;;  %v6688_v51 = vld [vmem:[%s8418_s6 + $0x80] sm:$0xff]   ;;  %v6690_v53 = vld [vmem:[%s8418_s6 + $0x88] sm:$0xff]  }
  0x29   : > { %5997 = vmatpush3.bf16.msra.mxu0 %v6648_v9  ;;  %v6689_v52 = vld [vmem:[%s8418_s6 + $0xc0] sm:$0xff]   ;;  %v6691_v54 = vld [vmem:[%s8418_s6 + $0xc8] sm:$0xff]   ;;  %v6692_v55 = vld [vmem:[%s8418_s6 + $0x90] sm:$0xff]  }
  0x2a   : > { %6017 = vmatpush3.bf16.msra.mxu1 %v6649_v10  ;;  %5998 = vmatprep.subr.bf16.mxu0 %v6935_v1  ;;  %v6693_v56 = vld [vmem:[%s8418_s6 + $0xd0] sm:$0xff]   ;;  %v6694_v57 = vld [vmem:[%s8418_s6 + $0x98] sm:$0xff]   ;;  %v6696_v59 = vld [vmem:[%s8418_s6 + $0xa0] sm:$0xff]  }
  0x2b   : > { %6018 = vmatprep.subr.bf16.mxu1 %v6935_v1  ;;  %v6695_v58 = vld [vmem:[%s8418_s6 + $0xd8] sm:$0xff]   ;;  %v6697_v60 = vld [vmem:[%s8418_s6 + $0xe0] sm:$0xff]   ;;  %v6698_v61 = vld [vmem:[%s8418_s6 + $0xa8] sm:$0xff]  }
  0x2c   : > { %v6699_v62 = vld [vmem:[%s8418_s6 + $0xe8] sm:$0xff]   ;;  %v6700_v63 = vld [vmem:[%s8418_s6 + $0xb0] sm:$0xff]   ;;  %v6702_v2 = vld [vmem:[%s8418_s6 + $0xb8] sm:$0xff]  }
  0x2d   : > { %5999 = vmatpush3.bf16.msra.mxu0 %v6650_v11  ;;  %v6701_v0 = vld [vmem:[%s8418_s6 + $0xf0] sm:$0xff]   ;;  %v6703_v3 = vld [vmem:[%s8418_s6 + $0xf8] sm:$0xff]   ;;  %v6704_v4 = vld [vmem:[%s8419_s2] sm:$0xff]   ;;  %s8428_s6 = sld [smem:[#allocation3_spill]] }
  0x2e   : > { %6019 = vmatpush3.bf16.msra.mxu1 %v6651_v12  ;;  %6000 = vmatprep.subr.bf16.mxu0 %v6935_v1  ;;  %v6705_v5 = vld [vmem:[%s8419_s2 + $0x40] sm:$0xff]   ;;  %v6706_v6 = vld [vmem:[%s8419_s2 + $0x8] sm:$0xff]   ;;  %v6708_v8 = vld [vmem:[%s8419_s2 + $0x10] sm:$0xff]  }
  0x2f   : > { %6020 = vmatprep.subr.bf16.mxu1 %v6935_v1  ;;  %v6707_v7 = vld [vmem:[%s8419_s2 + $0x48] sm:$0xff]   ;;  %v6709_v9 = vld [vmem:[%s8419_s2 + $0x50] sm:$0xff]   ;;  %v6710_v10 = vld [vmem:[%s8419_s2 + $0x18] sm:$0xff]  }
  0x30   : > { %v6711_v11 = vld [vmem:[%s8419_s2 + $0x58] sm:$0xff]   ;;  %v6712_v12 = vld [vmem:[%s8419_s2 + $0x20] sm:$0xff]   ;;  %v6716_v16 = vld [vmem:[%s8419_s2 + $0x30] sm:$0xff]  }
  0x31   : > { %6001 = vmatpush3.bf16.msra.mxu0 %v6652_v13  ;;  %v6713_v13 = vld [vmem:[%s8419_s2 + $0x60] sm:$0xff]  }
  0x32   : > { %6021 = vmatpush3.bf16.msra.mxu1 %v6653_v14  ;;  %6002 = vmatprep.subr.bf16.mxu0 %v6935_v1  ;;  %v6714_v14 = vld [vmem:[%s8419_s2 + $0x28] sm:$0xff]  }
  0x33   : > { %6022 = vmatprep.subr.bf16.mxu1 %v6935_v1  ;;  %s853_s5 = scalar_lea.vmem %s8428_s6, %s7148_s9 }
  0x35   : > { %6003 = vmatpush3.bf16.msra.mxu0 %v6654_v15  ;;  %v6715_v15 = vld [vmem:[%s8419_s2 + $0x68] sm:$0xff]  }
  0x36   : > { %6023 = vmatpush3.bf16.msra.mxu1 %v6655_v17  ;;  %6028 = vmatprep.subr.bf16.mxu0 %v6935_v1  ;;  %v6717_v17 = vld [vmem:[%s8419_s2 + $0x70] sm:$0xff]  }
  0x37   : > { %6048 = vmatprep.subr.bf16.mxu1 %v6935_v1 }
  0x38   : > { %6005 = vmatmul.mubr.bf16.vlgmr.msra.gmra.mrb[0].mxu0 %v7173_v18 }
  0x39   : > { %6025 = vmatmul.mubr.bf16.vlgmr.msra.gmra.mrb[0].mxu1 %v7173_v18  ;;  %6029 = vmatpush3.bf16.msra.mxu0 %v6656_v19  ;;  %v6718_v19 = vld [vmem:[%s8419_s2 + $0x38] sm:$0xff]  }
  0x3a   : > { %6049 = vmatpush3.bf16.msra.mxu1 %v6657_v20  ;;  %6030 = vmatprep.subr.bf16.mxu0 %v6935_v1  ;;  %v6719_v20 = vld [vmem:[%s8419_s2 + $0x78] sm:$0xff]  }
  0x3b   : > { %6050 = vmatprep.subr.bf16.mxu1 %v6935_v1  ;;  %6044 = vmatprep.mubr.msk.bf16.mxu0 %vm6936_vm0, %v6935_v1 }
  0x3c   : > { %6064 = vmatprep.mubr.msk.bf16.mxu1 %vm6936_vm0, %v6935_v1 }
  0x3d   : > { %6031 = vmatpush3.bf16.msra.mxu0 %v6658_v21  ;;  %v6720_v21 = vld [vmem:[%s8419_s2 + $0x80] sm:$0xff]  }
  0x3e   : > { %6051 = vmatpush3.bf16.msra.mxu1 %v6659_v22  ;;  %6032 = vmatprep.subr.bf16.mxu0 %v6935_v1  ;;  %v6721_v22 = vld [vmem:[%s8419_s2 + $0xc0] sm:$0xff]  }
  0x3f   : > { %6052 = vmatprep.subr.bf16.mxu1 %v6935_v1 }
  0x41   : > { %6033 = vmatpush3.bf16.msra.mxu0 %v6660_v23  ;;  %v6722_v23 = vld [vmem:[%s8419_s2 + $0x88] sm:$0xff]  }
  0x42   : > { %6053 = vmatpush3.bf16.msra.mxu1 %v6661_v24  ;;  %6034 = vmatprep.subr.bf16.mxu0 %v6935_v1  ;;  %v6723_v24 = vld [vmem:[%s8419_s2 + $0xc8] sm:$0xff]  }
  0x43   : > { %6054 = vmatprep.subr.bf16.mxu1 %v6935_v1 }
  0x45   : > { %6035 = vmatpush3.bf16.msra.mxu0 %v6662_v25  ;;  %v6724_v25 = vld [vmem:[%s8419_s2 + $0x90] sm:$0xff]  }
  0x46   : > { %6055 = vmatpush3.bf16.msra.mxu1 %v6663_v26  ;;  %6036 = vmatprep.subr.bf16.mxu0 %v6935_v1  ;;  %v6725_v26 = vld [vmem:[%s8419_s2 + $0xd0] sm:$0xff]  }
  0x47   : > { %6056 = vmatprep.subr.bf16.mxu1 %v6935_v1 }
  0x49   : > { %6037 = vmatpush3.bf16.msra.mxu0 %v6664_v27  ;;  %v6726_v27 = vld [vmem:[%s8419_s2 + $0x98] sm:$0xff]  }
  0x4a   : > { %6057 = vmatpush3.bf16.msra.mxu1 %v6665_v28  ;;  %6038 = vmatprep.subr.bf16.mxu0 %v6935_v1  ;;  %v6727_v28 = vld [vmem:[%s8419_s2 + $0xd8] sm:$0xff]  }
  0x4b   : > { %6058 = vmatprep.subr.bf16.mxu1 %v6935_v1 }
  0x4d   : > { %6039 = vmatpush3.bf16.msra.mxu0 %v6666_v29  ;;  %v6728_v29 = vld [vmem:[%s8419_s2 + $0xa0] sm:$0xff]  }
  0x4e   : > { %6059 = vmatpush3.bf16.msra.mxu1 %v6667_v30  ;;  %6040 = vmatprep.subr.bf16.mxu0 %v6935_v1  ;;  %v6729_v30 = vld [vmem:[%s8419_s2 + $0xe0] sm:$0xff]  }
  0x4f   : > { %6060 = vmatprep.subr.bf16.mxu1 %v6935_v1 }
  0x51   : > { %6041 = vmatpush3.bf16.msra.mxu0 %v6668_v31  ;;  %v6730_v31 = vld [vmem:[%s8419_s2 + $0xa8] sm:$0xff]  }
  0x52   : > { %6061 = vmatpush3.bf16.msra.mxu1 %v6669_v32  ;;  %6042 = vmatprep.subr.bf16.mxu0 %v6935_v1  ;;  %v6731_v32 = vld [vmem:[%s8419_s2 + $0xe8] sm:$0xff]  }
  0x53   : > { %6062 = vmatprep.subr.bf16.mxu1 %v6935_v1 }
  0x55   : > { %6043 = vmatpush3.bf16.msra.mxu0 %v6670_v33  ;;  %v6732_v33 = vld [vmem:[%s8419_s2 + $0xb0] sm:$0xff]  }
  0x56   : > { %6063 = vmatpush3.bf16.msra.mxu1 %v6671_v34  ;;  %6068 = vmatprep.subr.bf16.mxu0 %v6935_v1  ;;  %v6733_v34 = vld [vmem:[%s8419_s2 + $0xf0] sm:$0xff]  }
  0x57   : > { %6088 = vmatprep.subr.bf16.mxu1 %v6935_v1 }
  0x58   : > { %6045 = vmatmul.mubr.bf16.vlgmr.msra.gmra.mrb[4].mxu0 %v7173_v18 }
  0x59   : > { %6065 = vmatmul.mubr.bf16.vlgmr.msra.gmra.mrb[4].mxu1 %v7173_v18  ;;  %6069 = vmatpush3.bf16.msra.mxu0 %v6672_v35  ;;  %v6734_v35 = vld [vmem:[%s8419_s2 + $0xb8] sm:$0xff]  }
  0x5a   : > { %6089 = vmatpush3.bf16.msra.mxu1 %v6673_v36  ;;  %6070 = vmatprep.subr.bf16.mxu0 %v6935_v1  ;;  %v6735_v36 = vld [vmem:[%s8419_s2 + $0xf8] sm:$0xff]  }
  0x5b   : > { %6090 = vmatprep.subr.bf16.mxu1 %v6935_v1  ;;  %6084 = vmatprep.mubr.msk.bf16.mxu0 %vm6936_vm0, %v6935_v1 }
  0x5c   : > { %6104 = vmatprep.mubr.msk.bf16.mxu1 %vm6936_vm0, %v6935_v1 }
  0x5d   : > { %6071 = vmatpush3.bf16.msra.mxu0 %v6674_v37 }
  0x5e   : > { %6091 = vmatpush3.bf16.msra.mxu1 %v6675_v38  ;;  %6072 = vmatprep.subr.bf16.mxu0 %v6935_v1 }
  0x5f   : > { %6092 = vmatprep.subr.bf16.mxu1 %v6935_v1 }
  0x61   : > { %6073 = vmatpush3.bf16.msra.mxu0 %v6676_v39 }
  0x62   : > { %6093 = vmatpush3.bf16.msra.mxu1 %v6677_v40  ;;  %6074 = vmatprep.subr.bf16.mxu0 %v6935_v1 }
  0x63   : > { %6094 = vmatprep.subr.bf16.mxu1 %v6935_v1 }
  0x65   : > { %6075 = vmatpush3.bf16.msra.mxu0 %v6678_v41 }
  0x66   : > { %6095 = vmatpush3.bf16.msra.mxu1 %v6679_v42  ;;  %6076 = vmatprep.subr.bf16.mxu0 %v6935_v1 }
  0x67   : > { %6096 = vmatprep.subr.bf16.mxu1 %v6935_v1 }
  0x69   : > { %6077 = vmatpush3.bf16.msra.mxu0 %v6680_v43 }
  0x6a   : > { %6097 = vmatpush3.bf16.msra.mxu1 %v6681_v44  ;;  %6078 = vmatprep.subr.bf16.mxu0 %v6935_v1 }
  0x6b   : > { %6098 = vmatprep.subr.bf16.mxu1 %v6935_v1 }
  0x6d   : > { %6079 = vmatpush3.bf16.msra.mxu0 %v6682_v45 }
  0x6e   : > { %6099 = vmatpush3.bf16.msra.mxu1 %v6683_v46  ;;  %6080 = vmatprep.subr.bf16.mxu0 %v6935_v1 }
  0x6f   : > { %6100 = vmatprep.subr.bf16.mxu1 %v6935_v1 }
  0x71   : > { %6081 = vmatpush3.bf16.msra.mxu0 %v6684_v47 }
  0x72   : > { %6101 = vmatpush3.bf16.msra.mxu1 %v6685_v48  ;;  %6082 = vmatprep.subr.bf16.mxu0 %v6935_v1 }
  0x73   : > { %6102 = vmatprep.subr.bf16.mxu1 %v6935_v1 }
  0x75   : > { %6083 = vmatpush3.bf16.msra.mxu0 %v6686_v49 }
  0x76   : > { %6103 = vmatpush3.bf16.msra.mxu1 %v6687_v50  ;;  %6108 = vmatprep.subr.bf16.mxu0 %v6935_v1 }
  0x77   : > { %6128 = vmatprep.subr.bf16.mxu1 %v6935_v1 }
  0x78   : > { %6085 = vmatmul.mubr.bf16.vlgmr.msra.gmra.mrb[8].mxu0 %v7173_v18 }
  0x79   : > { %6105 = vmatmul.mubr.bf16.vlgmr.msra.gmra.mrb[8].mxu1 %v7173_v18  ;;  %6109 = vmatpush3.bf16.msra.mxu0 %v6688_v51 }
  0x7a   : > { %6129 = vmatpush3.bf16.msra.mxu1 %v6689_v52  ;;  %6110 = vmatprep.subr.bf16.mxu0 %v6935_v1  ;;  %v5431_v52 = vld [vmem:[%s8420_s12] ss:$0 sm:$0xff] }
  0x7b   : > { %6130 = vmatprep.subr.bf16.mxu1 %v6935_v1  ;;  %6124 = vmatprep.mubr.msk.bf16.mxu0 %vm6936_vm0, %v6935_v1 }
  0x7c   : > { %6144 = vmatprep.mubr.msk.bf16.mxu1 %vm6936_vm0, %v6935_v1 }
  0x7d   : > { %6111 = vmatpush3.bf16.msra.mxu0 %v6690_v53  ;;  %v5432_v53 = vld [vmem:[%s8420_s12 + $0x1] ss:$0 sm:$0xff] }
  0x7e   : > { %6131 = vmatpush3.bf16.msra.mxu1 %v6691_v54  ;;  %6112 = vmatprep.subr.bf16.mxu0 %v6935_v1 }
  0x7f   : > { %6132 = vmatprep.subr.bf16.mxu1 %v6935_v1 }
  0x81   : > { %6113 = vmatpush3.bf16.msra.mxu0 %v6692_v55 }
  0x82   : > { %6133 = vmatpush3.bf16.msra.mxu1 %v6693_v56  ;;  %6114 = vmatprep.subr.bf16.mxu0 %v6935_v1 }
  0x83   : > { %6134 = vmatprep.subr.bf16.mxu1 %v6935_v1 }
  0x85   : > { %6115 = vmatpush3.bf16.msra.mxu0 %v6694_v57 }
  0x86   : > { %6135 = vmatpush3.bf16.msra.mxu1 %v6695_v58  ;;  %6116 = vmatprep.subr.bf16.mxu0 %v6935_v1 }
  0x87   : > { %6136 = vmatprep.subr.bf16.mxu1 %v6935_v1 }
  0x89   : > { %6117 = vmatpush3.bf16.msra.mxu0 %v6696_v59 }
  0x8a   : > { %6137 = vmatpush3.bf16.msra.mxu1 %v6697_v60  ;;  %6118 = vmatprep.subr.bf16.mxu0 %v6935_v1 }
  0x8b   : > { %6138 = vmatprep.subr.bf16.mxu1 %v6935_v1 }
  0x8d   : > { %6119 = vmatpush3.bf16.msra.mxu0 %v6698_v61 }
  0x8e   : > { %6139 = vmatpush3.bf16.msra.mxu1 %v6699_v62  ;;  %6120 = vmatprep.subr.bf16.mxu0 %v6935_v1 }
  0x8f   : > { %6140 = vmatprep.subr.bf16.mxu1 %v6935_v1 }
  0x91   : > { %6121 = vmatpush3.bf16.msra.mxu0 %v6700_v63 }
  0x92   : > { %6141 = vmatpush3.bf16.msra.mxu1 %v6701_v0  ;;  %6122 = vmatprep.subr.bf16.mxu0 %v6935_v1  ;;  %v5395_v0 = vld [vmem:[%s8421_s0] ss:$0 sm:$0xff] }
  0x93   : > { %6142 = vmatprep.subr.bf16.mxu1 %v6935_v1 }
  0x95   : > { %6123 = vmatpush3.bf16.msra.mxu0 %v6702_v2 }
  0x96   : > { %6143 = vmatpush3.bf16.msra.mxu1 %v6703_v3  ;;  %6148 = vmatprep.subr.bf16.mxu0 %v6935_v1 }
  0x97   : > { %6168 = vmatprep.subr.bf16.mxu1 %v6935_v1 }
  0x98   : > { %6125 = vmatmul.mubr.bf16.vlgmr.msra.gmra.mrb[12].mxu0 %v7173_v18 }
  0x99   : > { %6145 = vmatmul.mubr.bf16.vlgmr.msra.gmra.mrb[12].mxu1 %v7173_v18  ;;  %6149 = vmatpush3.bf16.msra.mxu0 %v6704_v4  ;;  %v5396_v4 = vld [vmem:[%s8421_s0 + $0x1] ss:$0 sm:$0xff] }
  0x9a   : > { %6169 = vmatpush3.bf16.msra.mxu1 %v6705_v5  ;;  %6150 = vmatprep.subr.bf16.mxu0 %v6935_v1 }
  0x9b   : > { %6170 = vmatprep.subr.bf16.mxu1 %v6935_v1  ;;  %6164 = vmatprep.mubr.msk.bf16.mxu0 %vm6936_vm0, %v6935_v1 }
  0x9c   : > { %6184 = vmatprep.mubr.msk.bf16.mxu1 %vm6936_vm0, %v6935_v1 }
  0x9d   : > { %6151 = vmatpush3.bf16.msra.mxu0 %v6706_v6 }
  0x9e   : > { %6171 = vmatpush3.bf16.msra.mxu1 %v6707_v7  ;;  %6152 = vmatprep.subr.bf16.mxu0 %v6935_v1 }
  0x9f   : > { %6172 = vmatprep.subr.bf16.mxu1 %v6935_v1 }
  0xa1   : > { %6153 = vmatpush3.bf16.msra.mxu0 %v6708_v8 }
  0xa2   : > { %6173 = vmatpush3.bf16.msra.mxu1 %v6709_v9  ;;  %6154 = vmatprep.subr.bf16.mxu0 %v6935_v1 }
  0xa3   : > { %6174 = vmatprep.subr.bf16.mxu1 %v6935_v1 }
  0xa5   : > { %6155 = vmatpush3.bf16.msra.mxu0 %v6710_v10 }
  0xa6   : > { %6175 = vmatpush3.bf16.msra.mxu1 %v6711_v11  ;;  %6156 = vmatprep.subr.bf16.mxu0 %v6935_v1  ;;  %v5433_v11 = vld [vmem:[%s8420_s12 + $0x2] ss:$0 sm:$0xff] }
  0xa7   : > { %6176 = vmatprep.subr.bf16.mxu1 %v6935_v1 }
  0xa9   : > { %6157 = vmatpush3.bf16.msra.mxu0 %v6712_v12  ;;  %v5434_v12 = vld [vmem:[%s8420_s12 + $0x3] ss:$0 sm:$0xff] }
  0xaa   : > { %6177 = vmatpush3.bf16.msra.mxu1 %v6713_v13  ;;  %6158 = vmatprep.subr.bf16.mxu0 %v6935_v1 }
  0xab   : > { %6178 = vmatprep.subr.bf16.mxu1 %v6935_v1 }
  0xad   : > { %6159 = vmatpush3.bf16.msra.mxu0 %v6714_v14 }
  0xae   : > { %6179 = vmatpush3.bf16.msra.mxu1 %v6715_v15  ;;  %6160 = vmatprep.subr.bf16.mxu0 %v6935_v1 }
  0xaf   : > { %6180 = vmatprep.subr.bf16.mxu1 %v6935_v1 }
  0xb1   : > { %6161 = vmatpush3.bf16.msra.mxu0 %v6716_v16 }
  0xb2   : > { %6181 = vmatpush3.bf16.msra.mxu1 %v6717_v17  ;;  %6162 = vmatprep.subr.bf16.mxu0 %v6935_v1 }
  0xb3   : > { %6182 = vmatprep.subr.bf16.mxu1 %v6935_v1 }
  0xb5   : > { %6163 = vmatpush3.bf16.msra.mxu0 %v6718_v19 }
  0xb6   : > { %6183 = vmatpush3.bf16.msra.mxu1 %v6719_v20  ;;  %6188 = vmatprep.subr.bf16.mxu0 %v6935_v1 }
  0xb7   : > { %6208 = vmatprep.subr.bf16.mxu1 %v6935_v1 }
  0xb8   : > { %6165 = vmatmul.mubr.bf16.vlgmr.msra.gmra.mrb[16].mxu0 %v7173_v18 }
  0xb9   : > { %6185 = vmatmul.mubr.bf16.vlgmr.msra.gmra.mrb[16].mxu1 %v7173_v18  ;;  %6189 = vmatpush3.bf16.msra.mxu0 %v6720_v21 }
  0xba   : > { %6209 = vmatpush3.bf16.msra.mxu1 %v6721_v22  ;;  %6190 = vmatprep.subr.bf16.mxu0 %v6935_v1 }
  0xbb   : > { %6210 = vmatprep.subr.bf16.mxu1 %v6935_v1  ;;  %6204 = vmatprep.mubr.msk.bf16.mxu0 %vm6936_vm0, %v6935_v1 }
  0xbc   : > { %6224 = vmatprep.mubr.msk.bf16.mxu1 %vm6936_vm0, %v6935_v1 }
  0xbd   : > { %6191 = vmatpush3.bf16.msra.mxu0 %v6722_v23 }
  0xbe   : > { %6211 = vmatpush3.bf16.msra.mxu1 %v6723_v24  ;;  %6192 = vmatprep.subr.bf16.mxu0 %v6935_v1  ;;  %v5397_v24 = vld [vmem:[%s8421_s0 + $0x2] ss:$0 sm:$0xff] }
  0xbf   : > { %6212 = vmatprep.subr.bf16.mxu1 %v6935_v1 }
  0xc1   : > { %6193 = vmatpush3.bf16.msra.mxu0 %v6724_v25 }
  0xc2   : > { %6213 = vmatpush3.bf16.msra.mxu1 %v6725_v26  ;;  %6194 = vmatprep.subr.bf16.mxu0 %v6935_v1 }
  0xc3   : > { %6214 = vmatprep.subr.bf16.mxu1 %v6935_v1 }
  0xc5   : > { %6195 = vmatpush3.bf16.msra.mxu0 %v6726_v27  ;;  %v5398_v27 = vld [vmem:[%s8421_s0 + $0x3] ss:$0 sm:$0xff]  ;;  %s8424_s0 = sld [smem:[#allocation11_spill]] }
  0xc6   : > { %6215 = vmatpush3.bf16.msra.mxu1 %v6727_v28  ;;  %6196 = vmatprep.subr.bf16.mxu0 %v6935_v1 }
  0xc7   : > { %6216 = vmatprep.subr.bf16.mxu1 %v6935_v1 }
  0xc9   : > { %6197 = vmatpush3.bf16.msra.mxu0 %v6728_v29 }
  0xca   : > { %6217 = vmatpush3.bf16.msra.mxu1 %v6729_v30  ;;  %6198 = vmatprep.subr.bf16.mxu0 %v6935_v1 }
  0xcb   : > { %6218 = vmatprep.subr.bf16.mxu1 %v6935_v1 }
  0xcd   : > { %6199 = vmatpush3.bf16.msra.mxu0 %v6730_v31 }
  0xce   : > { %6219 = vmatpush3.bf16.msra.mxu1 %v6731_v32  ;;  %6200 = vmatprep.subr.bf16.mxu0 %v6935_v1 }
  0xcf   : > { %6220 = vmatprep.subr.bf16.mxu1 %v6935_v1 }
  0xd1   : > { %6201 = vmatpush3.bf16.msra.mxu0 %v6732_v33 }
  0xd2   : > { %6221 = vmatpush3.bf16.msra.mxu1 %v6733_v34  ;;  %6202 = vmatprep.subr.bf16.mxu0 %v6935_v1  ;;  %v5467_v34 = vld [vmem:[%s8422_s30] ss:$0 sm:$0xff] }
  0xd3   : > { %6222 = vmatprep.subr.bf16.mxu1 %v6935_v1 }
  0xd5   : > { %6203 = vmatpush3.bf16.msra.mxu0 %v6734_v35  ;;  %v5468_v35 = vld [vmem:[%s8422_s30 + $0x1] ss:$0 sm:$0xff] }
  0xd6   : > { %6223 = vmatpush3.bf16.msra.mxu1 %v6735_v36  ;;  %6228 = vmatprep.subr.bf16.mxu0 %v6935_v1 }
  0xd7   : > { %6234 = vmatprep.subr.bf16.mxu1 %v6935_v1 }
  0xd8   : > { %6205 = vmatmul.mubr.bf16.vlgmr.msra.gmra.mrb[20].mxu0 %v7173_v18 }
  0xd9   : > { %6225 = vmatmul.mubr.bf16.vlgmr.msra.gmra.mrb[20].mxu1 %v7173_v18  ;;  %6230 = vmatprep.mubr.msk.bf16.mxu0 %vm6936_vm0, %v6935_v1 }
  0xda   : > { %6236 = vmatprep.mubr.msk.bf16.mxu1 %vm6936_vm0, %v6935_v1 }
 0x10b   : > { %v1189_v37 = vpop.f32.mrb[0].mxu0 }
 0x10c   : > { %v6006_v38 = vpop.f32.mrb[1].mxu0  ;;  %v1277_v39 = vpop.f32.mrb[0].mxu1  ;;  %v1190_v7 = vadd.f32 %v5395_v0, %v1189_v37 }
 0x10d   : > { %v1192_v40 = vpop.f32.mrb[2].mxu0  ;;  %v6026_v41 = vpop.f32.mrb[1].mxu1  ;;  %v1278_v8 = vadd.f32 %v5396_v4, %v1277_v39 }
 0x10e   : > { %v6007_v42 = vpop.f32.mrb[3].mxu0  ;;  %v1280_v43 = vpop.f32.mrb[2].mxu1  ;;  %v2211_v9 = vpack.c.bf16 %v1190_v7, %v1190_v7 }
 0x10f   : > { %v6027_v44 = vpop.f32.mrb[3].mxu1  ;;  %v2212_v10 = vpack.c.bf16 %v1278_v8, %v1278_v8 }
 0x12b   : > { %v1365_v45 = vpop.f32.mrb[4].mxu0 }
 0x12c   : > { %v6046_v46 = vpop.f32.mrb[5].mxu0  ;;  %v1453_v47 = vpop.f32.mrb[4].mxu1  ;;  %v1366_v30 = vadd.f32 %v5397_v24, %v1365_v45 }
 0x12d   : > { %v1368_v48 = vpop.f32.mrb[6].mxu0  ;;  %v6066_v49 = vpop.f32.mrb[5].mxu1  ;;  %v1454_v31 = vadd.f32 %v5398_v27, %v1453_v47 }
 0x12e   : > { %v6047_v18 = vpop.f32.mrb[7].mxu0  ;;  %v1456_v50 = vpop.f32.mrb[6].mxu1  ;;  %v2213_v32 = vpack.c.bf16 %v1366_v30, %v1366_v30 }
 0x12f   : > { %v6067_v51 = vpop.f32.mrb[7].mxu1  ;;  %v2214_v33 = vpack.c.bf16 %v1454_v31, %v1454_v31 }
 0x14b   : > { %v1565_v54 = vpop.f32.mrb[8].mxu0 }
 0x14c   : > { %v1566_v55 = vadd.f32 %v5431_v52, %v1565_v54  ;;  %v1653_v56 = vpop.f32.mrb[8].mxu1  ;;  %v6086_v57 = vpop.f32.mrb[9].mxu0 }
 0x14d   : > { %v1654_v58 = vadd.f32 %v5432_v53, %v1653_v56  ;;  %v1568_v59 = vpop.f32.mrb[10].mxu0  ;;  %v6106_v60 = vpop.f32.mrb[9].mxu1  ;;  %v2408_v57 = vlaneseq }
 0x14e   : > { %v2215_v61 = vpack.c.bf16 %v1566_v55, %v1566_v55  ;;  %v6087_v62 = vpop.f32.mrb[11].mxu0  ;;  %v1656_v63 = vpop.f32.mrb[10].mxu1 }
 0x14f   : > { %v2216_v2 = vpack.c.bf16 %v1654_v58, %v1654_v58  ;;  %v6107_v3 = vpop.f32.mrb[11].mxu1  ;;  %v7591_v58 = vshrl.u32 %v2408_v57, 7  ;;  %v2411_v59 = vand.u32 127, %v2408_v57 }
 0x150   : > { %v2224_v5 = vsel %vm2219_vm1, %v2215_v61, 0  ;;  %v6937_v61 = vmov -1e+09  }
 0x151   : > { %v2270_v6 = vsel %vm2219_vm1, %v2216_v2, 0  ;;  %6229 = vmatpush3.bf16.xpose.msra.mxu0 %v2224_v5  ;;  %vm2412_vm3 = vcmp.ge.s32.totalorder %v7591_v58, %v2411_v59 }
 0x152   : > { %6235 = vmatpush3.bf16.xpose.msra.mxu1 %v2270_v6  ;;  %6240 = vmatprep.subr.bf16.mxu0 %v6935_v1  ;;  %v2413_v62 = vsel %vm2412_vm3, 0.0, %v6937_v61 }
 0x153   : > { %6246 = vmatprep.subr.bf16.mxu1 %v6935_v1 }
 0x158   : > { %6231 = vmatmul.mubr.msk.bf16.vlgmr.msra.gmra.mrb[24].mxu0 %vm2219_vm1, %v2211_v9 }
 0x159   : > { %6237 = vmatmul.mubr.msk.bf16.vlgmr.msra.gmra.mrb[24].mxu1 %vm2219_vm1, %v2212_v10  ;;  %6242 = vmatprep.mubr.msk.bf16.mxu0 %vm6936_vm0, %v6935_v1 }
 0x15a   : > { %6248 = vmatprep.mubr.msk.bf16.mxu1 %vm6936_vm0, %v6935_v1 }
 0x16b   : > { %v1741_v13 = vpop.f32.mrb[12].mxu0 }
 0x16c   : > { %v1742_v14 = vadd.f32 %v5433_v11, %v1741_v13  ;;  %v1829_v15 = vpop.f32.mrb[12].mxu1  ;;  %v6126_v16 = vpop.f32.mrb[13].mxu0 }
 0x16d   : > { %v1830_v17 = vadd.f32 %v5434_v12, %v1829_v15  ;;  %v1744_v19 = vpop.f32.mrb[14].mxu0  ;;  %v6146_v20 = vpop.f32.mrb[13].mxu1 }
 0x16e   : > { %v2217_v21 = vpack.c.bf16 %v1742_v14, %v1742_v14  ;;  %v6127_v22 = vpop.f32.mrb[15].mxu0  ;;  %v1832_v23 = vpop.f32.mrb[14].mxu1 }
 0x16f   : > { %v2218_v25 = vpack.c.bf16 %v1830_v17, %v1830_v17  ;;  %v6147_v26 = vpop.f32.mrb[15].mxu1 }
 0x170   : > { %v2316_v28 = vsel %vm2219_vm1, %v2217_v21, 0 }
 0x171   : > { %v2362_v29 = vsel %vm2219_vm1, %v2218_v25, 0  ;;  %6241 = vmatpush3.bf16.xpose.msra.mxu0 %v2316_v28 }
 0x172   : > { %6247 = vmatpush3.bf16.xpose.msra.mxu1 %v2362_v29  ;;  %6252 = vmatprep.subr.bf16.mxu0 %v6935_v1 }
 0x173   : > { %6258 = vmatprep.subr.bf16.mxu1 %v6935_v1 }
 0x178   : > { %6243 = vmatmul.mubr.msk.bf16.vlgmr.msra.gmra.mrb[28].mxu0 %vm2219_vm1, %v2213_v32 }
 0x179   : > { %6249 = vmatmul.mubr.msk.bf16.vlgmr.msra.gmra.mrb[28].mxu1 %vm2219_vm1, %v2214_v33  ;;  %6254 = vmatprep.mubr.msk.bf16.mxu0 %vm6936_vm0, %v6935_v1 }
 0x17a   : > { %6260 = vmatprep.mubr.msk.bf16.mxu1 %vm6936_vm0, %v6935_v1 }
 0x18b   : > { %v1941_v36 = vpop.f32.mrb[16].mxu0 }
 0x18c   : > { %v1942_v37 = vadd.f32 %v5467_v34, %v1941_v36  ;;  %v6166_v38 = vpop.f32.mrb[17].mxu0  ;;  %v2029_v39 = vpop.f32.mrb[16].mxu1 }
 0x18d   : > { %v1944_v40 = vpop.f32.mrb[18].mxu0  ;;  %v2030_v41 = vadd.f32 %v5468_v35, %v2029_v39  ;;  %v6186_v42 = vpop.f32.mrb[17].mxu1 }
 0x18e   : > { %v2467_v43 = vpack.c.bf16 %v1942_v37, %v1942_v37  ;;  %v6167_v44 = vpop.f32.mrb[19].mxu0  ;;  %v2032_v45 = vpop.f32.mrb[18].mxu1 }
 0x18f   : > { %v2468_v46 = vpack.c.bf16 %v2030_v41, %v2030_v41  ;;  %v6187_v47 = vpop.f32.mrb[19].mxu1 }
 0x190   : > { %v2476_v48 = vsel %vm2474_vm2, %v2467_v43, 0 }
 0x191   : > { %v2522_v49 = vsel %vm2474_vm2, %v2468_v46, 0  ;;  %6253 = vmatpush3.bf16.msra.mxu0 %v2476_v48 }
 0x192   : > { %6259 = vmatpush3.bf16.msra.mxu1 %v2522_v49  ;;  %6264 = vmatprep.subr.bf16.mxu0 %v6935_v1 }
 0x193   : > { %6270 = vmatprep.subr.bf16.mxu1 %v6935_v1 }
 0x1ab   : > { %v7587_v18 = vpop.f32.mrb[20].mxu0 }
 0x1ac   : > { %v7589_v50 = vpop.f32.mrb[20].mxu1  ;;  %v6206_v51 = vpop.f32.mrb[21].mxu0 }
 0x1ad   : > { %v6226_v52 = vpop.f32.mrb[21].mxu1  ;;  %v2120_v53 = vpop.f32.mrb[22].mxu0  ;;  %v5469_v51 = vld [vmem:[%s8422_s30 + $0x2] ss:$0 sm:$0xff] }
 0x1ae   : > { %v2208_v54 = vpop.f32.mrb[22].mxu1  ;;  %v6207_v55 = vpop.f32.mrb[23].mxu0  ;;  %v2118_v52 = vadd.f32 %v5469_v51, %v7587_v18  ;;  %v5470_v53 = vld [vmem:[%s8422_s30 + $0x3] ss:$0 sm:$0xff] }
 0x1af   : > { %v6227_v56 = vpop.f32.mrb[23].mxu1 }
 0x1b0   : > { %v2469_v55 = vpack.c.bf16 %v2118_v52, %v2118_v52  ;;  %v2206_v56 = vadd.f32 %v5470_v53, %v7589_v50  ;;  %v5523_v53 = vld [vmem:[%s8424_s0] ss:$0 sm:$0xff]  ;;  %s8426_s0 = sld [smem:[#allocation12_spill]] }
 0x1b2   : > { %v2568_v61 = vsel %vm2474_vm2, %v2469_v55, 0 }
 0x22b   : > { %v2260_v60 = vpop.f32.mrb[24].mxu0 }
 0x22c   : > { %v2404_v63 = vmul.f32 0.17677669, %v2260_v60  ;;  %v2306_v0 = vpop.f32.mrb[24].mxu1  ;;  %v6232_v2 = vpop.f32.mrb[25].mxu0 }
 0x22d   : > { %v2405_v3 = vmul.f32 0.17677669, %v2306_v0  ;;  %v6238_v4 = vpop.f32.mrb[25].mxu1  ;;  %v2263_v5 = vpop.f32.mrb[26].mxu0 }
 0x22e   : > { %v2309_v6 = vpop.f32.mrb[26].mxu1  ;;  %v6233_v7 = vpop.f32.mrb[27].mxu0  ;;  %v2414_v8 = vadd.f32 %v2413_v62, %v2404_v63  ;;  %v6736_v5 = vld [vmem:[%s8423_s29] sm:$0xff]  }
 0x22f   : > { %v6239_v9 = vpop.f32.mrb[27].mxu1  ;;  %v2415_v11 = vadd.f32 %v2413_v62, %v2405_v3 }
 0x230   : > { %v2419_v10 = vsel %vm2418_vm4, %v2414_v8, -inf }
 0x231   : > { %2420 = vmax.xlane.f32.xlu0 %v2419_v10  ;;  %v2422_v12 = vsel %vm2418_vm4, %v2415_v11, -inf  ;;  %v6737_v10 = vld [vmem:[%s8423_s29 + $0x8] sm:$0xff]  }
 0x235   : > { %2423 = vmax.xlane.f32.xlu0 %v2422_v12  ;;  %v6739_v12 = vld [vmem:[%s8423_s29 + $0x18] sm:$0xff]  }
 0x24b   : > { %v2352_v13 = vpop.f32.mrb[28].mxu0 }
 0x24c   : > { %v2406_v14 = vmul.f32 0.17677669, %v2352_v13  ;;  %v2398_v15 = vpop.f32.mrb[28].mxu1  ;;  %v6244_v16 = vpop.f32.mrb[29].mxu0 }
 0x24d   : > { %v2407_v17 = vmul.f32 0.17677669, %v2398_v15  ;;  %v6250_v19 = vpop.f32.mrb[29].mxu1  ;;  %v2355_v20 = vpop.f32.mrb[30].mxu0 }
 0x24e   : > { %v2401_v21 = vpop.f32.mrb[30].mxu1  ;;  %v6245_v22 = vpop.f32.mrb[31].mxu0  ;;  %v2416_v23 = vadd.f32 %v2413_v62, %v2406_v14  ;;  %v6740_v14 = vld [vmem:[%s8423_s29 + $0x20] sm:$0xff]  }
 0x24f   : > { %v6251_v24 = vpop.f32.mrb[31].mxu1  ;;  %v2417_v26 = vadd.f32 %v2413_v62, %v2407_v17  ;;  %v2470_v62 = vpack.c.bf16 %v2206_v56, %v2206_v56  ;;  %v6741_v21 = vld [vmem:[%s8423_s29 + $0x28] sm:$0xff]   ;;  %v6742_v22 = vld [vmem:[%s8423_s29 + $0x30] sm:$0xff]  }
 0x250   : > { %v2425_v25 = vsel %vm2418_vm4, %v2416_v23, -inf }
 0x251   : > { %2426 = vmax.xlane.f32.xlu1 %v2425_v25  ;;  %v2428_v27 = vsel %vm2418_vm4, %v2417_v26, -inf  ;;  %v2614_v0 = vsel %vm2474_vm2, %v2470_v62, 0 }
 0x255   : > { %2429 = vmax.xlane.f32.xlu1 %v2428_v27  ;;  %v6743_v27 = vld [vmem:[%s8423_s29 + $0x38] sm:$0xff]  }
 0x2be   : > { %v2421_v28 = vpop.xlane.xlu0 %2420 }
 0x2bf   : > { %v2431_v29 = vsub.f32 %v2414_v8, %v2421_v28 }
 0x2c1   : > { %v2435_v30 = vmul.f32 1.442695, %v2431_v29 }
 0x2c2   : > { %v2424_v31 = vpop.xlane.xlu0 %2423 }
 0x2c3   : > { %6888 = vpow2.f32 %v2435_v30  ;;  %v2432_v32 = vsub.f32 %v2415_v11, %v2424_v31  ;;  %v6738_v11 = vld [vmem:[%s8423_s29 + $0x10] sm:$0xff]  }
 0x2c5   : > { %v2437_v33 = vmul.f32 1.442695, %v2432_v32 }
 0x2c7   : > { %6890 = vpow2.f32 %v2437_v33 }
 0x2cd   : > { %v6889_v34 = vpop.eup %6888 }
 0x2ce   : > { %v2443_v35 = vsel %vm2418_vm4, %v6889_v34, 0.0 }
 0x2cf   : > { %2444 = vadd.xlane.f32.xlu0 %v2443_v35 }
 0x2d1   : > { %v6891_v36 = vpop.eup %6890 }
 0x2d2   : > { %v2446_v37 = vsel %vm2418_vm4, %v6891_v36, 0.0 }
 0x2d3   : > { %2447 = vadd.xlane.f32.xlu1 %v2446_v37 }
 0x2de   : > { %v2427_v38 = vpop.xlane.xlu1 %2426 }
 0x2df   : > { %v2433_v39 = vsub.f32 %v2416_v23, %v2427_v38 }
 0x2e1   : > { %v2439_v40 = vmul.f32 1.442695, %v2433_v39 }
 0x2e2   : > { %v2430_v41 = vpop.xlane.xlu1 %2429 }
 0x2e3   : > { %6892 = vpow2.f32 %v2439_v40  ;;  %v2434_v42 = vsub.f32 %v2417_v26, %v2430_v41 }
 0x2e5   : > { %v2441_v43 = vmul.f32 1.442695, %v2434_v42 }
 0x2e7   : > { %6894 = vpow2.f32 %v2441_v43 }
 0x2ed   : > { %v6893_v44 = vpop.eup %6892 }
 0x2ee   : > { %v2449_v45 = vsel %vm2418_vm4, %v6893_v44, 0.0 }
 0x2ef   : > { %2450 = vadd.xlane.f32.xlu0 %v2449_v45 }
 0x2f1   : > { %v6895_v46 = vpop.eup %6894 }
 0x2f2   : > { %v2452_v47 = vsel %vm2418_vm4, %v6895_v46, 0.0 }
 0x2f3   : > { %2453 = vadd.xlane.f32.xlu1 %v2452_v47 }
 0x35c   : > { %v2445_v48 = vpop.xlane.xlu0 %2444 }
 0x35d   : > { %6896 = vrcp.f32 %v2445_v48 }
 0x360   : > { %v2448_v49 = vpop.xlane.xlu1 %2447 }
 0x361   : > { %6898 = vrcp.f32 %v2448_v49 }
 0x367   : > { %v6897_v54 = vpop.eup %6896 }
 0x368   : > { %v2459_v57 = vmul.f32 %v6897_v54, %v6889_v34 }
 0x36a   : > { %v2463_v59 = vpack.c.bf16 %v2459_v57, %v2459_v57 }
 0x36b   : > { %v6899_v60 = vpop.eup %6898 }
 0x36c   : > { %v2460_v63 = vmul.f32 %v6899_v60, %v6891_v36  ;;  %6255 = vmatmul.mubr.msk.bf16.vlgmr.msra.gmra.mrb[32].mxu0 %vm2418_vm4, %v2463_v59 }
 0x36d   : > { %6265 = vmatpush3.bf16.msra.mxu0 %v2568_v61  ;;  %6266 = vmatprep.mubr.msk.bf16.mxu0 %vm6936_vm0, %v6935_v1  ;;  %v6926_v61 = vld [vmem:[%s7161_s7] sm:$0xff] }
 0x36e   : > { %v2464_v18 = vpack.c.bf16 %v2460_v63, %v2460_v63  ;;  %6276 = vmatprep.subr.bf16.mxu0 %v6935_v1  ;;  %v6744_v63 = vld [vmem:[%s8425_s1] sm:$0xff]  }
 0x370   : > { %6261 = vmatmul.mubr.msk.bf16.vlgmr.msra.gmra.mrb[32].mxu1 %vm2418_vm4, %v2464_v18  ;;  %v6745_v18 = vld [vmem:[%s8425_s1 + $0x40] sm:$0xff]  }
 0x371   : > { %6271 = vmatpush3.bf16.msra.mxu1 %v2614_v0  ;;  %6272 = vmatprep.mubr.msk.bf16.mxu1 %vm6936_vm0, %v6935_v1  ;;  %v6746_v0 = vld [vmem:[%s8425_s1 + $0x8] sm:$0xff]  }
 0x372   : > { %6284 = vmatprep.subr.bf16.mxu1 %v6935_v1 }
 0x37c   : > { %v2451_v50 = vpop.xlane.xlu0 %2450 }
 0x37d   : > { %6900 = vrcp.f32 %v2451_v50  ;;  %v6747_v50 = vld [vmem:[%s8425_s1 + $0x48] sm:$0xff]  }
 0x380   : > { %v2454_v2 = vpop.xlane.xlu1 %2453 }
 0x381   : > { %6902 = vrcp.f32 %v2454_v2  ;;  %v6748_v2 = vld [vmem:[%s8425_s1 + $0x10] sm:$0xff]  }
 0x387   : > { %v6901_v3 = vpop.eup %6900 }
 0x388   : > { %v2461_v4 = vmul.f32 %v6901_v3, %v6893_v44  ;;  %v6749_v3 = vld [vmem:[%s8425_s1 + $0x50] sm:$0xff]  }
 0x38a   : > { %v2465_v6 = vpack.c.bf16 %v2461_v4, %v2461_v4 }
 0x38b   : > { %v6903_v7 = vpop.eup %6902 }
 0x38c   : > { %v2462_v8 = vmul.f32 %v6903_v7, %v6895_v46  ;;  %6267 = vmatmul.mubr.msk.bf16.vlgmr.msra.gmra.mrb[36].mxu0 %vm2418_vm4, %v2465_v6 }
 0x38d   : > { %6277 = vmatpush3.bf16.msra.mxu0 %v6736_v5  ;;  %6280 = vmatprep.mubr.msk.bf16.mxu0 %vm6936_vm0, %v6935_v1 }
 0x38e   : > { %v2466_v9 = vpack.c.bf16 %v2462_v8, %v2462_v8  ;;  %6278 = vmatprep.subr.bf16.mxu0 %v6935_v1  ;;  %v6750_v8 = vld [vmem:[%s8425_s1 + $0x18] sm:$0xff]  }
 0x390   : > { %6273 = vmatmul.mubr.msk.bf16.vlgmr.msra.gmra.mrb[36].mxu1 %vm2418_vm4, %v2466_v9  ;;  %v6751_v9 = vld [vmem:[%s8425_s1 + $0x58] sm:$0xff]  }
 0x391   : > { %6288 = vmatprep.mubr.msk.bf16.mxu1 %vm6936_vm0, %v6935_v1  ;;  %6279 = vmatpush3.bf16.msra.mxu0 %v6737_v10  ;;  %v6752_v10 = vld [vmem:[%s8425_s1 + $0x20] sm:$0xff]  }
 0x392   : > { %6285 = vmatpush3.bf16.msra.mxu1 %v6738_v11  ;;  %6292 = vmatprep.subr.bf16.mxu0 %v6935_v1  ;;  %v6753_v11 = vld [vmem:[%s8425_s1 + $0x60] sm:$0xff]  }
 0x393   : > { %6286 = vmatprep.subr.bf16.mxu1 %v6935_v1 }
 0x396   : > { %6287 = vmatpush3.bf16.msra.mxu1 %v6739_v12  ;;  %v6754_v12 = vld [vmem:[%s8425_s1 + $0x28] sm:$0xff]  }
 0x397   : > { %6300 = vmatprep.subr.bf16.mxu1 %v6935_v1 }
 0x43f   : > { %v2512_v13 = vpop.f32.mrb[32].mxu0 }
 0x440   : > { %v2656_v15 = vpack.c.bf16 %v2512_v13, %v2512_v13  ;;  %v6256_v16 = vpop.f32.mrb[33].mxu0  ;;  %v6755_v13 = vld [vmem:[%s8425_s1 + $0x68] sm:$0xff]  }
 0x441   : > { %v2515_v17 = vpop.f32.mrb[34].mxu0  ;;  %v6758_v16 = vld [vmem:[%s8425_s1 + $0x38] sm:$0xff]  }
 0x442   : > { %v6257_v19 = vpop.f32.mrb[35].mxu0  ;;  %6281 = vmatmul.mubr.msk.bf16.vlgmr.msra.gmra.mrb[40].mxu0 %vm2219_vm1, %v2656_v15  ;;  %v6757_v15 = vld [vmem:[%s8425_s1 + $0x70] sm:$0xff]   ;;  %v6759_v17 = vld [vmem:[%s8425_s1 + $0x78] sm:$0xff]  }
 0x443   : > { %v2558_v20 = vpop.f32.mrb[32].mxu1  ;;  %6293 = vmatpush3.bf16.msra.mxu0 %v6740_v14  ;;  %6296 = vmatprep.mubr.msk.bf16.mxu0 %vm6936_vm0, %v6935_v1  ;;  %v6756_v14 = vld [vmem:[%s8425_s1 + $0x30] sm:$0xff]  }
 0x444   : > { %v2657_v23 = vpack.c.bf16 %v2558_v20, %v2558_v20  ;;  %v6262_v24 = vpop.f32.mrb[33].mxu1  ;;  %6294 = vmatprep.subr.bf16.mxu0 %v6935_v1 }
 0x445   : > { %v2561_v25 = vpop.f32.mrb[34].mxu1 }
 0x446   : > { %v6263_v26 = vpop.f32.mrb[35].mxu1  ;;  %6289 = vmatmul.mubr.msk.bf16.vlgmr.msra.gmra.mrb[40].mxu1 %vm2219_vm1, %v2657_v23  ;;  %v5524_v23 = vld [vmem:[%s8426_s0] ss:$0 sm:$0xff] }
 0x447   : > { %6295 = vmatpush3.bf16.msra.mxu0 %v6741_v21  ;;  %6301 = vmatpush3.bf16.msra.mxu1 %v6742_v22  ;;  %v5525_v25 = vld [vmem:[%s8427_s3] ss:$0 sm:$0xff] }
 0x448   : > { %6302 = vmatprep.subr.bf16.mxu1 %v6935_v1  ;;  %6304 = vmatprep.mubr.msk.bf16.mxu1 %vm6936_vm0, %v6935_v1 }
 0x449   : > { %6308 = vmatprep.subr.bf16.mxu0 %v6935_v1 }
 0x44b   : > { %6303 = vmatpush3.bf16.msra.mxu1 %v6743_v27 }
 0x44c   : > { %6328 = vmatprep.subr.bf16.mxu1 %v6935_v1 }
 0x45f   : > { %v2604_v28 = vpop.f32.mrb[36].mxu0 }
 0x460   : > { %v2658_v29 = vpack.c.bf16 %v2604_v28, %v2604_v28  ;;  %v6268_v30 = vpop.f32.mrb[37].mxu0  ;;  %v6760_v28 = vld [vmem:[%s8425_s1 + $0x80] sm:$0xff]  }
 0x461   : > { %v2607_v31 = vpop.f32.mrb[38].mxu0 }
 0x462   : > { %v6269_v32 = vpop.f32.mrb[39].mxu0  ;;  %6297 = vmatmul.mubr.msk.bf16.vlgmr.msra.gmra.mrb[44].mxu0 %vm2219_vm1, %v2658_v29  ;;  %v6761_v29 = vld [vmem:[%s8425_s1 + $0xc0] sm:$0xff]   ;;  %v6762_v31 = vld [vmem:[%s8425_s1 + $0x88] sm:$0xff]  }
 0x463   : > { %v2650_v33 = vpop.f32.mrb[36].mxu1  ;;  %6324 = vmatprep.mubr.msk.bf16.mxu0 %vm6936_vm0, %v6935_v1  ;;  %6309 = vmatpush3.bf16.msra.mxu0 %v6744_v63  ;;  %v6763_v32 = vld [vmem:[%s8425_s1 + $0xc8] sm:$0xff]   ;;  %v860_v63 = vld [vmem:[%s853_s5] sm:$0xff] }
 0x464   : > { %v2659_v34 = vpack.c.bf16 %v2650_v33, %v2650_v33  ;;  %v6274_v35 = vpop.f32.mrb[37].mxu1  ;;  %6310 = vmatprep.subr.bf16.mxu0 %v6935_v1  ;;  %v6764_v33 = vld [vmem:[%s8425_s1 + $0x90] sm:$0xff]  }
 0x465   : > { %v2653_v36 = vpop.f32.mrb[38].mxu1  ;;  %v6766_v35 = vld [vmem:[%s8425_s1 + $0x98] sm:$0xff]  }
 0x466   : > { %v6275_v37 = vpop.f32.mrb[39].mxu1  ;;  %6305 = vmatmul.mubr.msk.bf16.vlgmr.msra.gmra.mrb[44].mxu1 %vm2219_vm1, %v2659_v34  ;;  %v6765_v34 = vld [vmem:[%s8425_s1 + $0xd0] sm:$0xff]   ;;  %v6767_v36 = vld [vmem:[%s8425_s1 + $0xd8] sm:$0xff]  }
 0x467   : > { %6344 = vmatprep.mubr.msk.bf16.mxu1 %vm6936_vm0, %v6935_v1  ;;  %6329 = vmatpush3.bf16.msra.mxu1 %v6745_v18  ;;  %v6768_v37 = vld [vmem:[%s8425_s1 + $0xa0] sm:$0xff]   ;;  %v7886_v18 = vpack.c.bf16 %v860_v63, %v860_v63 }
 0x468   : > { %6330 = vmatprep.subr.bf16.mxu1 %v6935_v1  ;;  %6311 = vmatpush3.bf16.msra.mxu0 %v6746_v0  ;;  %v6792_v0 = vld [vmem:[%s8375_s14 + $0x80] sm:$0xff]  }
 0x469   : > { %6312 = vmatprep.subr.bf16.mxu0 %v6935_v1 }
 0x46b   : > { %6331 = vmatpush3.bf16.msra.mxu1 %v6747_v50  ;;  %v6793_v50 = vld [vmem:[%s8375_s14 + $0xc0] sm:$0xff]  }
 0x46c   : > { %6332 = vmatprep.subr.bf16.mxu1 %v6935_v1  ;;  %6313 = vmatpush3.bf16.msra.mxu0 %v6748_v2  ;;  %v6794_v2 = vld [vmem:[%s8375_s14 + $0x88] sm:$0xff]  }
 0x46d   : > { %6314 = vmatprep.subr.bf16.mxu0 %v6935_v1 }
 0x46f   : > { %6333 = vmatpush3.bf16.msra.mxu1 %v6749_v3  ;;  %v6795_v3 = vld [vmem:[%s8375_s14 + $0xc8] sm:$0xff]  }
 0x470   : > { %6334 = vmatprep.subr.bf16.mxu1 %v6935_v1  ;;  %6315 = vmatpush3.bf16.msra.mxu0 %v6750_v8  ;;  %v6800_v8 = vld [vmem:[%s8375_s14 + $0xa0] sm:$0xff]  }
 0x471   : > { %6316 = vmatprep.subr.bf16.mxu0 %v6935_v1 }
 0x473   : > { %6335 = vmatpush3.bf16.msra.mxu1 %v6751_v9  ;;  %v6801_v9 = vld [vmem:[%s8375_s14 + $0xe0] sm:$0xff]  }
 0x474   : > { %6336 = vmatprep.subr.bf16.mxu1 %v6935_v1  ;;  %6317 = vmatpush3.bf16.msra.mxu0 %v6752_v10  ;;  %v6802_v10 = vld [vmem:[%s8375_s14 + $0xa8] sm:$0xff]  }
 0x475   : > { %6318 = vmatprep.subr.bf16.mxu0 %v6935_v1 }
 0x477   : > { %6337 = vmatpush3.bf16.msra.mxu1 %v6753_v11  ;;  %v6803_v11 = vld [vmem:[%s8375_s14 + $0xe8] sm:$0xff]  }
 0x478   : > { %6338 = vmatprep.subr.bf16.mxu1 %v6935_v1  ;;  %6319 = vmatpush3.bf16.msra.mxu0 %v6754_v12  ;;  %v6804_v12 = vld [vmem:[%s8375_s14 + $0xb0] sm:$0xff]  }
 0x479   : > { %6320 = vmatprep.subr.bf16.mxu0 %v6935_v1 }
 0x47b   : > { %6339 = vmatpush3.bf16.msra.mxu1 %v6755_v13  ;;  %v6805_v13 = vld [vmem:[%s8375_s14 + $0xf0] sm:$0xff]  }
 0x47c   : > { %6340 = vmatprep.subr.bf16.mxu1 %v6935_v1  ;;  %6321 = vmatpush3.bf16.msra.mxu0 %v6756_v14  ;;  %v6806_v14 = vld [vmem:[%s8375_s14 + $0xb8] sm:$0xff]  }
 0x47d   : > { %6322 = vmatprep.subr.bf16.mxu0 %v6935_v1 }
 0x47f   : > { %6341 = vmatpush3.bf16.msra.mxu1 %v6757_v15  ;;  %v6807_v15 = vld [vmem:[%s8375_s14 + $0xf8] sm:$0xff]  }
 0x480   : > { %6342 = vmatprep.subr.bf16.mxu1 %v6935_v1  ;;  %6323 = vmatpush3.bf16.msra.mxu0 %v6758_v16  ;;  %v6808_v16 = vld [vmem:[%s8377_s16] sm:$0xff]  }
 0x481   : > { %6348 = vmatprep.subr.bf16.mxu0 %v6935_v1 }
 0x483   : > { %6343 = vmatpush3.bf16.msra.mxu1 %v6759_v17  ;;  %v6809_v17 = vld [vmem:[%s8377_s16 + $0x40] sm:$0xff]  }
 0x484   : > { %6368 = vmatprep.subr.bf16.mxu1 %v6935_v1 }
 0x515   : > { %v2709_v38 = vpop.f32.mrb[40].mxu0 }
 0x516   : > { %v6282_v39 = vpop.f32.mrb[41].mxu0 }
 0x517   : > { %v2712_v40 = vpop.f32.mrb[42].mxu0  ;;  %v6770_v39 = vld [vmem:[%s8425_s1 + $0xa8] sm:$0xff]  }
 0x518   : > { %v6283_v41 = vpop.f32.mrb[43].mxu0  ;;  %v6771_v40 = vld [vmem:[%s8425_s1 + $0xe8] sm:$0xff]  }
 0x519   : > { %v2764_v42 = vpop.f32.mrb[40].mxu1  ;;  %v6772_v41 = vld [vmem:[%s8425_s1 + $0xb0] sm:$0xff]  }
 0x51a   : > { %v2880_v43 = vadd.f32 %v2764_v42, %v2709_v38  ;;  %v6290_v44 = vpop.f32.mrb[41].mxu1  ;;  %v6769_v38 = vld [vmem:[%s8425_s1 + $0xe0] sm:$0xff]   ;;  %v6773_v42 = vld [vmem:[%s8425_s1 + $0xf0] sm:$0xff]  }
 0x51b   : > { %v2767_v45 = vpop.f32.mrb[42].mxu1  ;;  %v6775_v44 = vld [vmem:[%s8425_s1 + $0xf8] sm:$0xff]  }
 0x51c   : > { %v6291_v46 = vpop.f32.mrb[43].mxu1  ;;  %v6776_v45 = vld [vmem:[%s8375_s14] sm:$0xff]  }
 0x51d   : > { %v6777_v46 = vld [vmem:[%s8375_s14 + $0x40] sm:$0xff]  }
 0x535   : > { %v2819_v47 = vpop.f32.mrb[44].mxu0 }
 0x536   : > { %v2881_v48 = vadd.f32 %v2880_v43, %v2819_v47  ;;  %v6298_v49 = vpop.f32.mrb[45].mxu0  ;;  %v6774_v43 = vld [vmem:[%s8425_s1 + $0xb8] sm:$0xff]   ;;  %v6778_v47 = vld [vmem:[%s8375_s14 + $0x8] sm:$0xff]  }
 0x537   : > { %v2822_v51 = vpop.f32.mrb[46].mxu0  ;;  %v6780_v49 = vld [vmem:[%s8375_s14 + $0x10] sm:$0xff]  }
 0x538   : > { %v6299_v52 = vpop.f32.mrb[47].mxu0  ;;  %v6781_v51 = vld [vmem:[%s8375_s14 + $0x50] sm:$0xff]  }
 0x539   : > { %v2874_v54 = vpop.f32.mrb[44].mxu1  ;;  %v6782_v52 = vld [vmem:[%s8375_s14 + $0x18] sm:$0xff]  }
 0x53a   : > { %v2882_v55 = vadd.f32 %v2881_v48, %v2874_v54  ;;  %v6306_v56 = vpop.f32.mrb[45].mxu1  ;;  %v6779_v48 = vld [vmem:[%s8375_s14 + $0x48] sm:$0xff]   ;;  %v6784_v54 = vld [vmem:[%s8375_s14 + $0x20] sm:$0xff]  }
 0x53b   : > { %v2877_v57 = vpop.f32.mrb[46].mxu1  ;;  %v6786_v56 = vld [vmem:[%s8375_s14 + $0x28] sm:$0xff]  }
 0x53c   : > { %v2889_v59 = vadd.f32 %v5523_v53, %v2882_v55  ;;  %v6307_v60 = vpop.f32.mrb[47].mxu1  ;;  %v6783_v53 = vld [vmem:[%s8375_s14 + $0x58] sm:$0xff]   ;;  %v6785_v55 = vld [vmem:[%s8375_s14 + $0x60] sm:$0xff]   ;;  %v6787_v57 = vld [vmem:[%s8375_s14 + $0x68] sm:$0xff]  }
 0x53d   : > { %v6789_v60 = vld [vmem:[%s8375_s14 + $0x70] sm:$0xff]  }
 0x53e   : > { %v2892_v62 = vadd.f32 %v6926_v61, %v2889_v59  ;;  %v6788_v59 = vld [vmem:[%s8375_s14 + $0x30] sm:$0xff]   ;;  %v6790_v61 = vld [vmem:[%s8375_s14 + $0x38] sm:$0xff]  }
 0x540   : > { %2893 = vadd.xlane.f32.xlu0 %v2892_v62 }
 0x5cd   : > { %v2894_v4 = vpop.xlane.xlu0 %2893 }
 0x5ce   : > { %v2896_v5 = vmul.f32 0.0078125, %v2894_v4  ;;  %v6796_v4 = vld [vmem:[%s8375_s14 + $0x90] sm:$0xff]  }
 0x5d0   : > { %v2897_v6 = vsub.f32 %v2892_v62, %v2896_v5  ;;  %v6791_v62 = vld [vmem:[%s8375_s14 + $0x78] sm:$0xff]   ;;  %v6797_v5 = vld [vmem:[%s8375_s14 + $0xd0] sm:$0xff]  }
 0x5d2   : > { %v2898_v7 = vmul.f32 %v2897_v6, %v2897_v6 }
 0x5d4   : > { %2899 = vadd.xlane.f32.xlu1 %v2898_v7  ;;  %v6799_v7 = vld [vmem:[%s8375_s14 + $0xd8] sm:$0xff]  }
 0x661   : > { %v2900_v19 = vpop.xlane.xlu1 %2899 }
 0x662   : > { %v2901_v20 = vmul.f32 0.0078125, %v2900_v19  ;;  %v6810_v19 = vld [vmem:[%s8377_s16 + $0x8] sm:$0xff]  }
 0x664   : > { %v2902_v21 = vadd.f32 1e-05, %v2901_v20  ;;  %v6811_v20 = vld [vmem:[%s8377_s16 + $0x48] sm:$0xff]  }
 0x666   : > { %6904 = vrsqrt.f32 %v2902_v21  ;;  %v6812_v21 = vld [vmem:[%s8377_s16 + $0x10] sm:$0xff]  }
 0x670   : > { %v6905_v22 = vpop.eup %6904 }
 0x671   : > { %v2904_v24 = vmul.f32 %v6905_v22, %v2897_v6  ;;  %v6798_v6 = vld [vmem:[%s8375_s14 + $0x98] sm:$0xff]   ;;  %v6813_v22 = vld [vmem:[%s8377_s16 + $0x50] sm:$0xff]  }
 0x673   : > { %v2911_v26 = vmul.f32 %v5524_v23, %v2904_v24  ;;  %v6814_v23 = vld [vmem:[%s8377_s16 + $0x18] sm:$0xff]  }
 0x674   : > { %v6815_v24 = vld [vmem:[%s8377_s16 + $0x58] sm:$0xff]  }
 0x675   : > { %v7744_v27 = vadd.f32 %v5525_v25, %v2911_v26  ;;  %v6816_v25 = vld [vmem:[%s8377_s16 + $0x20] sm:$0xff]  }
 0x676   : > { %v6817_v26 = vld [vmem:[%s8377_s16 + $0x60] sm:$0xff]  }
 0x677   : > { %v3140_v30 = vpack.c.bf16 %v7744_v27, %v7744_v27 }
 0x679   : > { %6325 = vmatmul.mubr.bf16.vlgmr.msra.gmra.mrb[48].mxu0 %v3140_v30  ;;  %6345 = vmatmul.mubr.bf16.vlgmr.msra.gmra.mrb[48].mxu1 %v3140_v30 }
 0x67a   : > { %6349 = vmatpush3.bf16.msra.mxu0 %v6760_v28  ;;  %6369 = vmatpush3.bf16.msra.mxu1 %v6761_v29  ;;  %v6818_v28 = vld [vmem:[%s8377_s16 + $0x28] sm:$0xff]  }
 0x67b   : > { %6350 = vmatprep.subr.bf16.mxu0 %v6935_v1  ;;  %6370 = vmatprep.subr.bf16.mxu1 %v6935_v1  ;;  %v6819_v29 = vld [vmem:[%s8377_s16 + $0x68] sm:$0xff]  }
 0x67c   : > { %6364 = vmatprep.mubr.msk.bf16.mxu0 %vm6936_vm0, %v6935_v1  ;;  %6384 = vmatprep.mubr.msk.bf16.mxu1 %vm6936_vm0, %v6935_v1 }
 0x67e   : > { %6351 = vmatpush3.bf16.msra.mxu0 %v6762_v31  ;;  %6371 = vmatpush3.bf16.msra.mxu1 %v6763_v32  ;;  %v6821_v31 = vld [vmem:[%s8377_s16 + $0x70] sm:$0xff]   ;;  %v6822_v32 = vld [vmem:[%s8377_s16 + $0x38] sm:$0xff]  }
 0x67f   : > { %6352 = vmatprep.subr.bf16.mxu0 %v6935_v1  ;;  %6372 = vmatprep.subr.bf16.mxu1 %v6935_v1 }
 0x682   : > { %6353 = vmatpush3.bf16.msra.mxu0 %v6764_v33  ;;  %6373 = vmatpush3.bf16.msra.mxu1 %v6765_v34  ;;  %v6823_v33 = vld [vmem:[%s8377_s16 + $0x78] sm:$0xff]   ;;  %v6824_v34 = vld [vmem:[%s8377_s16 + $0x80] sm:$0xff]  }
 0x683   : > { %6354 = vmatprep.subr.bf16.mxu0 %v6935_v1  ;;  %6374 = vmatprep.subr.bf16.mxu1 %v6935_v1 }
 0x686   : > { %6355 = vmatpush3.bf16.msra.mxu0 %v6766_v35  ;;  %6375 = vmatpush3.bf16.msra.mxu1 %v6767_v36  ;;  %v6825_v35 = vld [vmem:[%s8377_s16 + $0xc0] sm:$0xff]   ;;  %v6826_v36 = vld [vmem:[%s8377_s16 + $0x88] sm:$0xff]  }
 0x687   : > { %6356 = vmatprep.subr.bf16.mxu0 %v6935_v1  ;;  %6376 = vmatprep.subr.bf16.mxu1 %v6935_v1 }
 0x68a   : > { %6357 = vmatpush3.bf16.msra.mxu0 %v6768_v37  ;;  %6377 = vmatpush3.bf16.msra.mxu1 %v6769_v38  ;;  %v6827_v37 = vld [vmem:[%s8377_s16 + $0xc8] sm:$0xff]   ;;  %v6828_v38 = vld [vmem:[%s8377_s16 + $0x90] sm:$0xff]  }
 0x68b   : > { %6358 = vmatprep.subr.bf16.mxu0 %v6935_v1  ;;  %6378 = vmatprep.subr.bf16.mxu1 %v6935_v1 }
 0x68e   : > { %6359 = vmatpush3.bf16.msra.mxu0 %v6770_v39  ;;  %6379 = vmatpush3.bf16.msra.mxu1 %v6771_v40  ;;  %v6829_v39 = vld [vmem:[%s8377_s16 + $0xd0] sm:$0xff]   ;;  %v6830_v40 = vld [vmem:[%s8377_s16 + $0x98] sm:$0xff]  }
 0x68f   : > { %6360 = vmatprep.subr.bf16.mxu0 %v6935_v1  ;;  %6380 = vmatprep.subr.bf16.mxu1 %v6935_v1 }
 0x692   : > { %6361 = vmatpush3.bf16.msra.mxu0 %v6772_v41  ;;  %6381 = vmatpush3.bf16.msra.mxu1 %v6773_v42  ;;  %v6831_v41 = vld [vmem:[%s8377_s16 + $0xd8] sm:$0xff]   ;;  %v6832_v42 = vld [vmem:[%s8377_s16 + $0xa0] sm:$0xff]  }
 0x693   : > { %6362 = vmatprep.subr.bf16.mxu0 %v6935_v1  ;;  %6382 = vmatprep.subr.bf16.mxu1 %v6935_v1 }
 0x696   : > { %6363 = vmatpush3.bf16.msra.mxu0 %v6774_v43  ;;  %6383 = vmatpush3.bf16.msra.mxu1 %v6775_v44  ;;  %v6833_v43 = vld [vmem:[%s8377_s16 + $0xe0] sm:$0xff]   ;;  %v6834_v44 = vld [vmem:[%s8377_s16 + $0xa8] sm:$0xff]  }
 0x697   : > { %6388 = vmatprep.subr.bf16.mxu0 %v6935_v1  ;;  %6408 = vmatprep.subr.bf16.mxu1 %v6935_v1 }
 0x699   : > { %6365 = vmatmul.mubr.bf16.vlgmr.msra.gmra.mrb[52].mxu0 %v3140_v30  ;;  %6385 = vmatmul.mubr.bf16.vlgmr.msra.gmra.mrb[52].mxu1 %v3140_v30  ;;  %v6820_v30 = vld [vmem:[%s8377_s16 + $0x30] sm:$0xff]  }
 0x69a   : > { %6389 = vmatpush3.bf16.msra.mxu0 %v6776_v45  ;;  %6409 = vmatpush3.bf16.msra.mxu1 %v6777_v46  ;;  %v6835_v45 = vld [vmem:[%s8377_s16 + $0xe8] sm:$0xff]   ;;  %v6836_v46 = vld [vmem:[%s8377_s16 + $0xb0] sm:$0xff]  }
 0x69b   : > { %6390 = vmatprep.subr.bf16.mxu0 %v6935_v1  ;;  %6410 = vmatprep.subr.bf16.mxu1 %v6935_v1 }
 0x69c   : > { %6404 = vmatprep.mubr.msk.bf16.mxu0 %vm6936_vm0, %v6935_v1  ;;  %6424 = vmatprep.mubr.msk.bf16.mxu1 %vm6936_vm0, %v6935_v1 }
 0x69e   : > { %6391 = vmatpush3.bf16.msra.mxu0 %v6778_v47  ;;  %6411 = vmatpush3.bf16.msra.mxu1 %v6779_v48  ;;  %v6837_v47 = vld [vmem:[%s8377_s16 + $0xf0] sm:$0xff]   ;;  %v6838_v48 = vld [vmem:[%s8377_s16 + $0xb8] sm:$0xff]  }
 0x69f   : > { %6392 = vmatprep.subr.bf16.mxu0 %v6935_v1  ;;  %6412 = vmatprep.subr.bf16.mxu1 %v6935_v1 }
 0x6a2   : > { %6393 = vmatpush3.bf16.msra.mxu0 %v6780_v49  ;;  %6413 = vmatpush3.bf16.msra.mxu1 %v6781_v51  ;;  %v6839_v49 = vld [vmem:[%s8377_s16 + $0xf8] sm:$0xff]  }
 0x6a3   : > { %6394 = vmatprep.subr.bf16.mxu0 %v6935_v1  ;;  %6414 = vmatprep.subr.bf16.mxu1 %v6935_v1 }
 0x6a6   : > { %6395 = vmatpush3.bf16.msra.mxu0 %v6782_v52  ;;  %6415 = vmatpush3.bf16.msra.mxu1 %v6783_v53 }
 0x6a7   : > { %6396 = vmatprep.subr.bf16.mxu0 %v6935_v1  ;;  %6416 = vmatprep.subr.bf16.mxu1 %v6935_v1 }
 0x6aa   : > { %6397 = vmatpush3.bf16.msra.mxu0 %v6784_v54  ;;  %6417 = vmatpush3.bf16.msra.mxu1 %v6785_v55 }
 0x6ab   : > { %6398 = vmatprep.subr.bf16.mxu0 %v6935_v1  ;;  %6418 = vmatprep.subr.bf16.mxu1 %v6935_v1 }
 0x6ae   : > { %6399 = vmatpush3.bf16.msra.mxu0 %v6786_v56  ;;  %6419 = vmatpush3.bf16.msra.mxu1 %v6787_v57 }
 0x6af   : > { %6400 = vmatprep.subr.bf16.mxu0 %v6935_v1  ;;  %6420 = vmatprep.subr.bf16.mxu1 %v6935_v1 }
 0x6b2   : > { %6401 = vmatpush3.bf16.msra.mxu0 %v6788_v59  ;;  %6421 = vmatpush3.bf16.msra.mxu1 %v6789_v60 }
 0x6b3   : > { %6402 = vmatprep.subr.bf16.mxu0 %v6935_v1  ;;  %6422 = vmatprep.subr.bf16.mxu1 %v6935_v1 }
 0x6b6   : > { %6403 = vmatpush3.bf16.msra.mxu0 %v6790_v61  ;;  %6423 = vmatpush3.bf16.msra.mxu1 %v6791_v62 }
 0x6b7   : > { %6428 = vmatprep.subr.bf16.mxu0 %v6935_v1  ;;  %6448 = vmatprep.subr.bf16.mxu1 %v6935_v1 }
 0x6b9   : > { %6405 = vmatmul.mubr.bf16.vlgmr.msra.gmra.mrb[56].mxu0 %v7886_v18  ;;  %6425 = vmatmul.mubr.bf16.vlgmr.msra.gmra.mrb[56].mxu1 %v7886_v18 }
 0x6ba   : > { %6429 = vmatpush3.bf16.msra.mxu0 %v6792_v0  ;;  %6449 = vmatpush3.bf16.msra.mxu1 %v6793_v50 }
 0x6bb   : > { %6430 = vmatprep.subr.bf16.mxu0 %v6935_v1  ;;  %6450 = vmatprep.subr.bf16.mxu1 %v6935_v1 }
 0x6bc   : > { %6444 = vmatprep.mubr.msk.bf16.mxu0 %vm6936_vm0, %v6935_v1  ;;  %6464 = vmatprep.mubr.msk.bf16.mxu1 %vm6936_vm0, %v6935_v1 }
 0x6be   : > { %6431 = vmatpush3.bf16.msra.mxu0 %v6794_v2  ;;  %6451 = vmatpush3.bf16.msra.mxu1 %v6795_v3  ;;  %v5562_v3 = vld [vmem:[%s8376_s15] ss:$0 sm:$0xff] }
 0x6bf   : > { %6432 = vmatprep.subr.bf16.mxu0 %v6935_v1  ;;  %6452 = vmatprep.subr.bf16.mxu1 %v6935_v1 }
 0x6c2   : > { %6433 = vmatpush3.bf16.msra.mxu0 %v6796_v4  ;;  %6453 = vmatpush3.bf16.msra.mxu1 %v6797_v5  ;;  %v5563_v4 = vld [vmem:[%s8376_s15 + $0x1] ss:$0 sm:$0xff] }
 0x6c3   : > { %6434 = vmatprep.subr.bf16.mxu0 %v6935_v1  ;;  %6454 = vmatprep.subr.bf16.mxu1 %v6935_v1 }
 0x6c6   : > { %6435 = vmatpush3.bf16.msra.mxu0 %v6798_v6  ;;  %6455 = vmatpush3.bf16.msra.mxu1 %v6799_v7 }
 0x6c7   : > { %6436 = vmatprep.subr.bf16.mxu0 %v6935_v1  ;;  %6456 = vmatprep.subr.bf16.mxu1 %v6935_v1 }
 0x6ca   : > { %6437 = vmatpush3.bf16.msra.mxu0 %v6800_v8  ;;  %6457 = vmatpush3.bf16.msra.mxu1 %v6801_v9 }
 0x6cb   : > { %6438 = vmatprep.subr.bf16.mxu0 %v6935_v1  ;;  %6458 = vmatprep.subr.bf16.mxu1 %v6935_v1 }
 0x6ce   : > { %6439 = vmatpush3.bf16.msra.mxu0 %v6802_v10  ;;  %6459 = vmatpush3.bf16.msra.mxu1 %v6803_v11 }
 0x6cf   : > { %6440 = vmatprep.subr.bf16.mxu0 %v6935_v1  ;;  %6460 = vmatprep.subr.bf16.mxu1 %v6935_v1 }
 0x6d2   : > { %6441 = vmatpush3.bf16.msra.mxu0 %v6804_v12  ;;  %6461 = vmatpush3.bf16.msra.mxu1 %v6805_v13 }
 0x6d3   : > { %6442 = vmatprep.subr.bf16.mxu0 %v6935_v1  ;;  %6462 = vmatprep.subr.bf16.mxu1 %v6935_v1 }
 0x6d6   : > { %6443 = vmatpush3.bf16.msra.mxu0 %v6806_v14  ;;  %6463 = vmatpush3.bf16.msra.mxu1 %v6807_v15 }
 0x6d7   : > { %6468 = vmatprep.subr.bf16.mxu0 %v6935_v1  ;;  %6488 = vmatprep.subr.bf16.mxu1 %v6935_v1 }
 0x6d9   : > { %6445 = vmatmul.mubr.bf16.vlgmr.msra.gmra.mrb[60].mxu0 %v7886_v18  ;;  %6465 = vmatmul.mubr.bf16.vlgmr.msra.gmra.mrb[60].mxu1 %v7886_v18 }
 0x6da   : > { %6469 = vmatpush3.bf16.msra.mxu0 %v6808_v16  ;;  %6489 = vmatpush3.bf16.msra.mxu1 %v6809_v17  ;;  %v5526_v17 = vld [vmem:[%s8374_s13] ss:$0 sm:$0xff] }
 0x6db   : > { %6470 = vmatprep.subr.bf16.mxu0 %v6935_v1  ;;  %6490 = vmatprep.subr.bf16.mxu1 %v6935_v1 }
 0x6dc   : > { %6484 = vmatprep.mubr.msk.bf16.mxu0 %vm6936_vm0, %v6935_v1  ;;  %6504 = vmatprep.mubr.msk.bf16.mxu1 %vm6936_vm0, %v6935_v1 }
 0x6de   : > { %6471 = vmatpush3.bf16.msra.mxu0 %v6810_v19  ;;  %6491 = vmatpush3.bf16.msra.mxu1 %v6811_v20  ;;  %v5527_v19 = vld [vmem:[%s8374_s13 + $0x1] ss:$0 sm:$0xff] }
 0x6df   : > { %6472 = vmatprep.subr.bf16.mxu0 %v6935_v1  ;;  %6492 = vmatprep.subr.bf16.mxu1 %v6935_v1 }
 0x6e2   : > { %6473 = vmatpush3.bf16.msra.mxu0 %v6812_v21  ;;  %6493 = vmatpush3.bf16.msra.mxu1 %v6813_v22 }
 0x6e3   : > { %6474 = vmatprep.subr.bf16.mxu0 %v6935_v1  ;;  %6494 = vmatprep.subr.bf16.mxu1 %v6935_v1 }
 0x6e6   : > { %6475 = vmatpush3.bf16.msra.mxu0 %v6814_v23  ;;  %6495 = vmatpush3.bf16.msra.mxu1 %v6815_v24 }
 0x6e7   : > { %6476 = vmatprep.subr.bf16.mxu0 %v6935_v1  ;;  %6496 = vmatprep.subr.bf16.mxu1 %v6935_v1 }
 0x6ea   : > { %6477 = vmatpush3.bf16.msra.mxu0 %v6816_v25  ;;  %6497 = vmatpush3.bf16.msra.mxu1 %v6817_v26  ;;  %v5564_v26 = vld [vmem:[%s8376_s15 + $0x2] ss:$0 sm:$0xff] }
 0x6eb   : > { %6478 = vmatprep.subr.bf16.mxu0 %v6935_v1  ;;  %6498 = vmatprep.subr.bf16.mxu1 %v6935_v1 }
 0x6ee   : > { %6479 = vmatpush3.bf16.msra.mxu0 %v6818_v28  ;;  %6499 = vmatpush3.bf16.msra.mxu1 %v6819_v29  ;;  %v5565_v28 = vld [vmem:[%s8376_s15 + $0x3] ss:$0 sm:$0xff] }
 0x6ef   : > { %6480 = vmatprep.subr.bf16.mxu0 %v6935_v1  ;;  %6500 = vmatprep.subr.bf16.mxu1 %v6935_v1 }
 0x6f2   : > { %6481 = vmatpush3.bf16.msra.mxu0 %v6820_v30  ;;  %6501 = vmatpush3.bf16.msra.mxu1 %v6821_v31 }
 0x6f3   : > { %6482 = vmatprep.subr.bf16.mxu0 %v6935_v1  ;;  %6502 = vmatprep.subr.bf16.mxu1 %v6935_v1 }
 0x6f6   : > { %6483 = vmatpush3.bf16.msra.mxu0 %v6822_v32  ;;  %6503 = vmatpush3.bf16.msra.mxu1 %v6823_v33 }
 0x6f7   : > { %6508 = vmatprep.subr.bf16.mxu0 %v6935_v1  ;;  %6528 = vmatprep.subr.bf16.mxu1 %v6935_v1 }
 0x6f9   : > { %6485 = vmatmul.mubr.bf16.vlgmr.msra.gmra.mrb[64].mxu0 %v7886_v18  ;;  %6505 = vmatmul.mubr.bf16.vlgmr.msra.gmra.mrb[64].mxu1 %v7886_v18 }
 0x6fa   : > { %6509 = vmatpush3.bf16.msra.mxu0 %v6824_v34  ;;  %6529 = vmatpush3.bf16.msra.mxu1 %v6825_v35 }
 0x6fb   : > { %6510 = vmatprep.subr.bf16.mxu0 %v6935_v1  ;;  %6530 = vmatprep.subr.bf16.mxu1 %v6935_v1 }
 0x6fc   : > { %6524 = vmatprep.mubr.msk.bf16.mxu0 %vm6936_vm0, %v6935_v1  ;;  %6544 = vmatprep.mubr.msk.bf16.mxu1 %vm6936_vm0, %v6935_v1 }
 0x6fe   : > { %6511 = vmatpush3.bf16.msra.mxu0 %v6826_v36  ;;  %6531 = vmatpush3.bf16.msra.mxu1 %v6827_v37 }
 0x6ff   : > { %6512 = vmatprep.subr.bf16.mxu0 %v6935_v1  ;;  %6532 = vmatprep.subr.bf16.mxu1 %v6935_v1 }
 0x702   : > { %6513 = vmatpush3.bf16.msra.mxu0 %v6828_v38  ;;  %6533 = vmatpush3.bf16.msra.mxu1 %v6829_v39 }
 0x703   : > { %6514 = vmatprep.subr.bf16.mxu0 %v6935_v1  ;;  %6534 = vmatprep.subr.bf16.mxu1 %v6935_v1 }
 0x706   : > { %6515 = vmatpush3.bf16.msra.mxu0 %v6830_v40  ;;  %6535 = vmatpush3.bf16.msra.mxu1 %v6831_v41  ;;  %v5528_v41 = vld [vmem:[%s8374_s13 + $0x2] ss:$0 sm:$0xff] }
 0x707   : > { %6516 = vmatprep.subr.bf16.mxu0 %v6935_v1  ;;  %6536 = vmatprep.subr.bf16.mxu1 %v6935_v1 }
 0x70a   : > { %6517 = vmatpush3.bf16.msra.mxu0 %v6832_v42  ;;  %6537 = vmatpush3.bf16.msra.mxu1 %v6833_v43  ;;  %v5529_v42 = vld [vmem:[%s8374_s13 + $0x3] ss:$0 sm:$0xff] }
 0x70b   : > { %6518 = vmatprep.subr.bf16.mxu0 %v6935_v1  ;;  %6538 = vmatprep.subr.bf16.mxu1 %v6935_v1 }
 0x70e   : > { %6519 = vmatpush3.bf16.msra.mxu0 %v6834_v44  ;;  %6539 = vmatpush3.bf16.msra.mxu1 %v6835_v45 }
 0x70f   : > { %6520 = vmatprep.subr.bf16.mxu0 %v6935_v1  ;;  %6540 = vmatprep.subr.bf16.mxu1 %v6935_v1 }
 0x712   : > { %6521 = vmatpush3.bf16.msra.mxu0 %v6836_v46  ;;  %6541 = vmatpush3.bf16.msra.mxu1 %v6837_v47 }
 0x713   : > { %6522 = vmatprep.subr.bf16.mxu0 %v6935_v1  ;;  %6542 = vmatprep.subr.bf16.mxu1 %v6935_v1 }
 0x716   : > { %6523 = vmatpush3.bf16.msra.mxu0 %v6838_v48  ;;  %6543 = vmatpush3.bf16.msra.mxu1 %v6839_v49  ;;  %v5598_v49 = vld [vmem:[%s8378_s17] ss:$0 sm:$0xff] }
 0x717   : > { %6548 = vmatprep.subr.bf16.mxu0 %v6935_v1  ;;  %6554 = vmatprep.subr.bf16.mxu1 %v6935_v1 }
 0x719   : > { %6525 = vmatmul.mubr.bf16.vlgmr.msra.gmra.mrb[68].mxu0 %v7886_v18  ;;  %6545 = vmatmul.mubr.bf16.vlgmr.msra.gmra.mrb[68].mxu1 %v7886_v18 }
 0x71a   : > { %6550 = vmatprep.mubr.msk.bf16.mxu0 %vm6936_vm0, %v6935_v1  ;;  %6556 = vmatprep.mubr.msk.bf16.mxu1 %vm6936_vm0, %v6935_v1 }
 0x74c   : > { %v3248_v51 = vpop.f32.mrb[48].mxu0  ;;  %v3336_v52 = vpop.f32.mrb[48].mxu1 }
 0x74d   : > { %v6326_v53 = vpop.f32.mrb[49].mxu0  ;;  %v6346_v54 = vpop.f32.mrb[49].mxu1  ;;  %v3249_v22 = vadd.f32 %v5526_v17, %v3248_v51  ;;  %v3337_v23 = vadd.f32 %v5527_v19, %v3336_v52  ;;  %v5599_v51 = vld [vmem:[%s8378_s17 + $0x1] ss:$0 sm:$0xff] }
 0x74e   : > { %v3251_v55 = vpop.f32.mrb[50].mxu0  ;;  %v3339_v56 = vpop.f32.mrb[50].mxu1 }
 0x74f   : > { %v6327_v57 = vpop.f32.mrb[51].mxu0  ;;  %v6347_v59 = vpop.f32.mrb[51].mxu1  ;;  %v4270_v24 = vpack.c.bf16 %v3249_v22, %v3249_v22  ;;  %v4271_v25 = vpack.c.bf16 %v3337_v23, %v3337_v23 }
 0x76c   : > { %v3424_v60 = vpop.f32.mrb[52].mxu0  ;;  %v3512_v61 = vpop.f32.mrb[52].mxu1 }
 0x76d   : > { %v6366_v62 = vpop.f32.mrb[53].mxu0  ;;  %v6386_v63 = vpop.f32.mrb[53].mxu1  ;;  %v3425_v45 = vadd.f32 %v5528_v41, %v3424_v60  ;;  %v3513_v46 = vadd.f32 %v5529_v42, %v3512_v61 }
 0x76e   : > { %v3427_v0 = vpop.f32.mrb[54].mxu0  ;;  %v3515_v18 = vpop.f32.mrb[54].mxu1 }
 0x76f   : > { %v6367_v50 = vpop.f32.mrb[55].mxu0  ;;  %v6387_v2 = vpop.f32.mrb[55].mxu1  ;;  %v4272_v47 = vpack.c.bf16 %v3425_v45, %v3425_v45  ;;  %v4273_v48 = vpack.c.bf16 %v3513_v46, %v3513_v46 }
 0x78c   : > { %v3624_v5 = vpop.f32.mrb[56].mxu0  ;;  %v3712_v6 = vpop.f32.mrb[56].mxu1 }
 0x78d   : > { %v3625_v7 = vadd.f32 %v5562_v3, %v3624_v5  ;;  %v3713_v8 = vadd.f32 %v5563_v4, %v3712_v6  ;;  %v6406_v9 = vpop.f32.mrb[57].mxu0  ;;  %v6426_v10 = vpop.f32.mrb[57].mxu1 }
 0x78e   : > { %v3627_v11 = vpop.f32.mrb[58].mxu0  ;;  %v3715_v12 = vpop.f32.mrb[58].mxu1 }
 0x78f   : > { %v4274_v13 = vpack.c.bf16 %v3625_v7, %v3625_v7  ;;  %v4275_v14 = vpack.c.bf16 %v3713_v8, %v3713_v8  ;;  %v6407_v15 = vpop.f32.mrb[59].mxu0  ;;  %v6427_v16 = vpop.f32.mrb[59].mxu1 }
 0x791   : > { %v4282_v20 = vsel %vm2219_vm1, %v4274_v13, 0  ;;  %v4328_v21 = vsel %vm2219_vm1, %v4275_v14, 0 }
 0x792   : > { %6549 = vmatpush3.bf16.xpose.msra.mxu0 %v4282_v20  ;;  %6555 = vmatpush3.bf16.xpose.msra.mxu1 %v4328_v21 }
 0x793   : > { %6560 = vmatprep.subr.bf16.mxu0 %v6935_v1  ;;  %6566 = vmatprep.subr.bf16.mxu1 %v6935_v1 }
 0x799   : > { %6551 = vmatmul.mubr.msk.bf16.vlgmr.msra.gmra.mrb[72].mxu0 %vm2219_vm1, %v4270_v24  ;;  %6557 = vmatmul.mubr.msk.bf16.vlgmr.msra.gmra.mrb[72].mxu1 %vm2219_vm1, %v4271_v25 }
 0x79a   : > { %6562 = vmatprep.mubr.msk.bf16.mxu0 %vm6936_vm0, %v6935_v1  ;;  %6568 = vmatprep.mubr.msk.bf16.mxu1 %vm6936_vm0, %v6935_v1 }
 0x7ac   : > { %v3800_v29 = vpop.f32.mrb[60].mxu0  ;;  %v3888_v30 = vpop.f32.mrb[60].mxu1 }
 0x7ad   : > { %v3801_v31 = vadd.f32 %v5564_v26, %v3800_v29  ;;  %v3889_v32 = vadd.f32 %v5565_v28, %v3888_v30  ;;  %v6446_v33 = vpop.f32.mrb[61].mxu0  ;;  %v6466_v34 = vpop.f32.mrb[61].mxu1 }
 0x7ae   : > { %v3803_v35 = vpop.f32.mrb[62].mxu0  ;;  %v3891_v36 = vpop.f32.mrb[62].mxu1 }
 0x7af   : > { %v4276_v37 = vpack.c.bf16 %v3801_v31, %v3801_v31  ;;  %v4277_v38 = vpack.c.bf16 %v3889_v32, %v3889_v32  ;;  %v6447_v39 = vpop.f32.mrb[63].mxu0  ;;  %v6467_v40 = vpop.f32.mrb[63].mxu1 }
 0x7b1   : > { %v4374_v43 = vsel %vm2219_vm1, %v4276_v37, 0  ;;  %v4420_v44 = vsel %vm2219_vm1, %v4277_v38, 0 }
 0x7b2   : > { %6561 = vmatpush3.bf16.xpose.msra.mxu0 %v4374_v43  ;;  %6567 = vmatpush3.bf16.xpose.msra.mxu1 %v4420_v44 }
 0x7b3   : > { %6572 = vmatprep.subr.bf16.mxu0 %v6935_v1  ;;  %6578 = vmatprep.subr.bf16.mxu1 %v6935_v1 }
 0x7b9   : > { %6563 = vmatmul.mubr.msk.bf16.vlgmr.msra.gmra.mrb[76].mxu0 %vm2219_vm1, %v4272_v47  ;;  %6569 = vmatmul.mubr.msk.bf16.vlgmr.msra.gmra.mrb[76].mxu1 %vm2219_vm1, %v4273_v48 }
 0x7ba   : > { %6574 = vmatprep.mubr.msk.bf16.mxu0 %vm6936_vm0, %v6935_v1  ;;  %6580 = vmatprep.mubr.msk.bf16.mxu1 %vm6936_vm0, %v6935_v1 }
 0x7cc   : > { %v4000_v52 = vpop.f32.mrb[64].mxu0  ;;  %v4088_v53 = vpop.f32.mrb[64].mxu1 }
 0x7cd   : > { %v4001_v54 = vadd.f32 %v5598_v49, %v4000_v52  ;;  %v6486_v55 = vpop.f32.mrb[65].mxu0  ;;  %v4089_v56 = vadd.f32 %v5599_v51, %v4088_v53  ;;  %v6506_v57 = vpop.f32.mrb[65].mxu1 }
 0x7ce   : > { %v4003_v59 = vpop.f32.mrb[66].mxu0  ;;  %v4091_v60 = vpop.f32.mrb[66].mxu1 }
 0x7cf   : > { %v4514_v61 = vpack.c.bf16 %v4001_v54, %v4001_v54  ;;  %v4515_v62 = vpack.c.bf16 %v4089_v56, %v4089_v56  ;;  %v6487_v63 = vpop.f32.mrb[67].mxu0  ;;  %v6507_v0 = vpop.f32.mrb[67].mxu1  ;;  %v5601_v60 = vld [vmem:[%s8378_s17 + $0x3] ss:$0 sm:$0xff] }
 0x7d1   : > { %v4522_v18 = vsel %vm2474_vm2, %v4514_v61, 0  ;;  %v4568_v50 = vsel %vm2474_vm2, %v4515_v62, 0  ;;  %v5600_v61 = vld [vmem:[%s8378_s17 + $0x2] ss:$0 sm:$0xff] }
 0x7d2   : > { %6573 = vmatpush3.bf16.msra.mxu0 %v4522_v18  ;;  %6579 = vmatpush3.bf16.msra.mxu1 %v4568_v50 }
 0x7d3   : > { %6584 = vmatprep.subr.bf16.mxu0 %v6935_v1  ;;  %6590 = vmatprep.subr.bf16.mxu1 %v6935_v1 }
 0x7ec   : > { %v8160_v2 = vpop.f32.mrb[68].mxu0  ;;  %v8162_v3 = vpop.f32.mrb[68].mxu1 }
 0x7ed   : > { %v6526_v4 = vpop.f32.mrb[69].mxu0  ;;  %v6546_v5 = vpop.f32.mrb[69].mxu1  ;;  %v4265_v62 = vadd.f32 %v5601_v60, %v8162_v3  ;;  %v4177_v63 = vadd.f32 %v5600_v61, %v8160_v2 }
 0x7ee   : > { %v4179_v6 = vpop.f32.mrb[70].mxu0  ;;  %v4267_v7 = vpop.f32.mrb[70].mxu1 }
 0x7ef   : > { %v6527_v8 = vpop.f32.mrb[71].mxu0  ;;  %v6547_v9 = vpop.f32.mrb[71].mxu1  ;;  %v4517_v50 = vpack.c.bf16 %v4265_v62, %v4265_v62  ;;  %v4516_v5 = vpack.c.bf16 %v4177_v63, %v4177_v63  ;;  %v5654_v63 = vld [vmem:[%s8380_s19] ss:$0 sm:$0xff] }
 0x7f1   : > { %v4660_v9 = vsel %vm2474_vm2, %v4517_v50, 0 }
 0x86c   : > { %v4318_v10 = vpop.f32.mrb[72].mxu0  ;;  %v4364_v11 = vpop.f32.mrb[72].mxu1 }
 0x86d   : > { %v4462_v12 = vmul.f32 0.17677669, %v4318_v10  ;;  %v4463_v13 = vmul.f32 0.17677669, %v4364_v11  ;;  %v6552_v14 = vpop.f32.mrb[73].mxu0  ;;  %v6558_v15 = vpop.f32.mrb[73].mxu1 }
 0x86e   : > { %v4321_v16 = vpop.f32.mrb[74].mxu0  ;;  %v4367_v17 = vpop.f32.mrb[74].mxu1  ;;  %v4614_v10 = vsel %vm2474_vm2, %v4516_v5, 0  ;;  %v6841_v15 = vld [vmem:[%s8379_s18 + $0x10] sm:$0xff]  }
 0x86f   : > { %v6553_v19 = vpop.f32.mrb[75].mxu0  ;;  %v6559_v20 = vpop.f32.mrb[75].mxu1  ;;  %v4469_v21 = vsel %vm2418_vm4, %v4463_v13, -inf  ;;  %v4466_v22 = vsel %vm2418_vm4, %v4462_v12, -inf  ;;  %v6840_v17 = vld [vmem:[%s8379_s18] sm:$0xff]  }
 0x870   : > { %4470 = vmax.xlane.f32.xlu1 %v4469_v21  ;;  %4467 = vmax.xlane.f32.xlu0 %v4466_v22  ;;  %v6842_v20 = vld [vmem:[%s8379_s18 + $0x8] sm:$0xff]   ;;  %v6843_v21 = vld [vmem:[%s8379_s18 + $0x18] sm:$0xff]  }
 0x88c   : > { %v4410_v23 = vpop.f32.mrb[76].mxu0  ;;  %v4456_v24 = vpop.f32.mrb[76].mxu1 }
 0x88d   : > { %v4464_v25 = vmul.f32 0.17677669, %v4410_v23  ;;  %v4465_v26 = vmul.f32 0.17677669, %v4456_v24  ;;  %v6564_v28 = vpop.f32.mrb[77].mxu0  ;;  %v6570_v29 = vpop.f32.mrb[77].mxu1 }
 0x88e   : > { %v4413_v30 = vpop.f32.mrb[78].mxu0  ;;  %v4459_v31 = vpop.f32.mrb[78].mxu1  ;;  %v6845_v23 = vld [vmem:[%s8379_s18 + $0x30] sm:$0xff]   ;;  %v6844_v28 = vld [vmem:[%s8379_s18 + $0x20] sm:$0xff]  }
 0x88f   : > { %v6565_v32 = vpop.f32.mrb[79].mxu0  ;;  %v6571_v33 = vpop.f32.mrb[79].mxu1  ;;  %v4475_v34 = vsel %vm2418_vm4, %v4465_v26, -inf  ;;  %v4472_v35 = vsel %vm2418_vm4, %v4464_v25, -inf }
 0x890   : > { %4476 = vmax.xlane.f32.xlu1 %v4475_v34  ;;  %4473 = vmax.xlane.f32.xlu0 %v4472_v35  ;;  %v6847_v35 = vld [vmem:[%s8379_s18 + $0x38] sm:$0xff]  }
 0x8fd   : > { %v4471_v36 = vpop.xlane.xlu1 %4470  ;;  %v4468_v37 = vpop.xlane.xlu0 %4467 }
 0x8fe   : > { %v4479_v38 = vsub.f32 %v4463_v13, %v4471_v36  ;;  %v4478_v39 = vsub.f32 %v4462_v12, %v4468_v37  ;;  %v6846_v36 = vld [vmem:[%s8379_s18 + $0x28] sm:$0xff]  }
 0x900   : > { %v4484_v40 = vmul.f32 1.442695, %v4479_v38  ;;  %v4482_v41 = vmul.f32 1.442695, %v4478_v39 }
 0x902   : > { %6906 = vpow2.f32 %v4484_v40 }
 0x903   : > { %6908 = vpow2.f32 %v4482_v41 }
 0x90c   : > { %v6907_v42 = vpop.eup %6906 }
 0x90d   : > { %v6909_v43 = vpop.eup %6908  ;;  %v4493_v44 = vsel %vm2418_vm4, %v6907_v42, 0.0 }
 0x90e   : > { %4494 = vadd.xlane.f32.xlu1 %v4493_v44  ;;  %v4490_v45 = vsel %vm2418_vm4, %v6909_v43, 0.0 }
 0x90f   : > { %4491 = vadd.xlane.f32.xlu0 %v4490_v45 }
 0x91d   : > { %v4477_v46 = vpop.xlane.xlu1 %4476  ;;  %v4474_v47 = vpop.xlane.xlu0 %4473 }
 0x91e   : > { %v4481_v48 = vsub.f32 %v4465_v26, %v4477_v46  ;;  %v4480_v49 = vsub.f32 %v4464_v25, %v4474_v47 }
 0x920   : > { %v4488_v51 = vmul.f32 1.442695, %v4481_v48  ;;  %v4486_v52 = vmul.f32 1.442695, %v4480_v49 }
 0x922   : > { %6910 = vpow2.f32 %v4488_v51 }
 0x923   : > { %6912 = vpow2.f32 %v4486_v52 }
 0x92c   : > { %v6911_v53 = vpop.eup %6910 }
 0x92d   : > { %v6913_v54 = vpop.eup %6912  ;;  %v4499_v55 = vsel %vm2418_vm4, %v6911_v53, 0.0 }
 0x92e   : > { %4500 = vadd.xlane.f32.xlu1 %v4499_v55  ;;  %v4496_v56 = vsel %vm2418_vm4, %v6913_v54, 0.0 }
 0x92f   : > { %4497 = vadd.xlane.f32.xlu0 %v4496_v56 }
 0x99b   : > { %v4495_v57 = vpop.xlane.xlu1 %4494 }
 0x99c   : > { %6914 = vrcp.f32 %v4495_v57  ;;  %v4492_v59 = vpop.xlane.xlu0 %4491 }
 0x99d   : > { %6916 = vrcp.f32 %v4492_v59 }
 0x9a6   : > { %v6915_v0 = vpop.eup %6914 }
 0x9a7   : > { %v6917_v18 = vpop.eup %6916  ;;  %v4507_v4 = vmul.f32 %v6915_v0, %v6907_v42 }
 0x9a8   : > { %v4506_v6 = vmul.f32 %v6917_v18, %v6909_v43 }
 0x9a9   : > { %v4511_v7 = vpack.c.bf16 %v4507_v4, %v4507_v4 }
 0x9aa   : > { %v4510_v8 = vpack.c.bf16 %v4506_v6, %v4506_v6 }
 0x9ab   : > { %6581 = vmatmul.mubr.msk.bf16.vlgmr.msra.gmra.mrb[80].mxu1 %vm2418_vm4, %v4511_v7  ;;  %v6848_v7 = vld [vmem:[%s8383_s22] ss:$8 sps:$4 sm:$0xff]  }
 0x9ac   : > { %6575 = vmatmul.mubr.msk.bf16.vlgmr.msra.gmra.mrb[80].mxu0 %vm2418_vm4, %v4510_v8  ;;  %6591 = vmatpush3.bf16.msra.mxu1 %v4660_v9  ;;  %v6850_v8 = vld [vmem:[%s8383_s22 + $0x4] ss:$8 sps:$4 sm:$0xff]   ;;  %v6853_v9 = vld [vmem:[%s8383_s22 + $0x14] ss:$8 sps:$4 sm:$0xff]  }
 0x9ad   : > { %6585 = vmatpush3.bf16.msra.mxu0 %v4614_v10  ;;  %6586 = vmatprep.mubr.msk.bf16.mxu0 %vm6936_vm0, %v6935_v1  ;;  %v6851_v10 = vld [vmem:[%s8383_s22 + $0x10] ss:$8 sps:$4 sm:$0xff]  }
 0x9ae   : > { %6592 = vmatprep.mubr.msk.bf16.mxu1 %vm6936_vm0, %v6935_v1  ;;  %6596 = vmatprep.subr.bf16.mxu0 %v6935_v1 }
 0x9af   : > { %6604 = vmatprep.subr.bf16.mxu1 %v6935_v1 }
 0x9bb   : > { %v4501_v2 = vpop.xlane.xlu1 %4500 }
 0x9bc   : > { %6918 = vrcp.f32 %v4501_v2  ;;  %v4498_v3 = vpop.xlane.xlu0 %4497  ;;  %v6854_v2 = vld [vmem:[%s8383_s22 + $0x20] ss:$8 sps:$4 sm:$0xff]  }
 0x9bd   : > { %6920 = vrcp.f32 %v4498_v3 }
 0x9c6   : > { %v6919_v11 = vpop.eup %6918 }
 0x9c7   : > { %v6921_v12 = vpop.eup %6920  ;;  %v4509_v13 = vmul.f32 %v6919_v11, %v6911_v53 }
 0x9c8   : > { %v4508_v14 = vmul.f32 %v6921_v12, %v6913_v54 }
 0x9c9   : > { %v4513_v16 = vpack.c.bf16 %v4509_v13, %v4509_v13 }
 0x9ca   : > { %v4512_v19 = vpack.c.bf16 %v4508_v14, %v4508_v14  ;;  %v6859_v14 = vld [vmem:[%s8383_s22 + $0x34] ss:$8 sps:$4 sm:$0xff]  }
 0x9cb   : > { %6593 = vmatmul.mubr.msk.bf16.vlgmr.msra.gmra.mrb[84].mxu1 %vm2418_vm4, %v4513_v16  ;;  %v6862_v16 = vld [vmem:[%s8383_s22 + $0x44] ss:$8 sps:$4 sm:$0xff]  }
 0x9cc   : > { %6587 = vmatmul.mubr.msk.bf16.vlgmr.msra.gmra.mrb[84].mxu0 %vm2418_vm4, %v4512_v19  ;;  %6605 = vmatpush3.bf16.msra.mxu1 %v6841_v15  ;;  %v6857_v15 = vld [vmem:[%s8383_s22 + $0x30] ss:$8 sps:$4 sm:$0xff]   ;;  %v6865_v19 = vld [vmem:[%s8383_s22 + $0x54] ss:$8 sps:$4 sm:$0xff]  }
 0x9cd   : > { %6597 = vmatpush3.bf16.msra.mxu0 %v6840_v17  ;;  %6606 = vmatprep.subr.bf16.mxu1 %v6935_v1  ;;  %v6860_v17 = vld [vmem:[%s8383_s22 + $0x40] ss:$8 sps:$4 sm:$0xff]  }
 0x9ce   : > { %6598 = vmatprep.subr.bf16.mxu0 %v6935_v1  ;;  %6600 = vmatprep.mubr.msk.bf16.mxu0 %vm6936_vm0, %v6935_v1 }
 0x9cf   : > { %6608 = vmatprep.mubr.msk.bf16.mxu1 %vm6936_vm0, %v6935_v1 }
 0x9d0   : > { %6607 = vmatpush3.bf16.msra.mxu1 %v6843_v21  ;;  %v6868_v21 = vld [vmem:[%s8383_s22 + $0x64] ss:$8 sps:$4 sm:$0xff]  }
 0x9d1   : > { %6599 = vmatpush3.bf16.msra.mxu0 %v6842_v20  ;;  %6620 = vmatprep.subr.bf16.mxu1 %v6935_v1  ;;  %v6863_v20 = vld [vmem:[%s8383_s22 + $0x50] ss:$8 sps:$4 sm:$0xff]  }
 0x9d2   : > { %6612 = vmatprep.subr.bf16.mxu0 %v6935_v1 }
 0xa7e   : > { %v4604_v22 = vpop.f32.mrb[80].mxu1 }
 0xa7f   : > { %v4558_v24 = vpop.f32.mrb[80].mxu0  ;;  %v4703_v25 = vpack.c.bf16 %v4604_v22, %v4604_v22  ;;  %v6582_v26 = vpop.f32.mrb[81].mxu1  ;;  %v6866_v22 = vld [vmem:[%s8383_s22 + $0x60] ss:$8 sps:$4 sm:$0xff]  }
 0xa80   : > { %v4702_v29 = vpack.c.bf16 %v4558_v24, %v4558_v24  ;;  %v6576_v30 = vpop.f32.mrb[81].mxu0  ;;  %v4607_v31 = vpop.f32.mrb[82].mxu1  ;;  %v6869_v24 = vld [vmem:[%s8383_s22 + $0x70] ss:$8 sps:$4 sm:$0xff]   ;;  %v6872_v26 = vld [vmem:[%s8385_s24 + $0x40] sm:$0xff]  }
 0xa81   : > { %v4561_v32 = vpop.f32.mrb[82].mxu0  ;;  %v6583_v33 = vpop.f32.mrb[83].mxu1  ;;  %6609 = vmatmul.mubr.msk.bf16.vlgmr.msra.gmra.mrb[88].mxu1 %vm2219_vm1, %v4703_v25  ;;  %v6938_v25 = vmov 0   ;;  %v6875_v30 = vld [vmem:[%s8385_s24 + $0x8] sm:$0xff]   ;;  %v6876_v31 = vld [vmem:[%s8385_s24 + $0x50] sm:$0xff]  }
 0xa82   : > { %v6577_v34 = vpop.f32.mrb[83].mxu0  ;;  %6601 = vmatmul.mubr.msk.bf16.vlgmr.msra.gmra.mrb[88].mxu0 %vm2219_vm1, %v4702_v29  ;;  %6621 = vmatpush3.bf16.msra.mxu1 %v6845_v23  ;;  %v6871_v23 = vld [vmem:[%s8383_s22 + $0x74] ss:$8 sps:$4 sm:$0xff]   ;;  %v6874_v29 = vld [vmem:[%s8385_s24 + $0x48] sm:$0xff]  }
 0xa83   : > { %6613 = vmatpush3.bf16.msra.mxu0 %v6844_v28  ;;  %6622 = vmatprep.subr.bf16.mxu1 %v6935_v1  ;;  %v6873_v28 = vld [vmem:[%s8385_s24] sm:$0xff]   ;;  %v6877_v32 = vld [vmem:[%s8385_s24 + $0x10] sm:$0xff]   ;;  %v6878_v33 = vld [vmem:[%s8385_s24 + $0x58] sm:$0xff]  }
 0xa84   : > { %6614 = vmatprep.subr.bf16.mxu0 %v6935_v1  ;;  %6616 = vmatprep.mubr.msk.bf16.mxu0 %vm6936_vm0, %v6935_v1  ;;  %v6879_v34 = vld [vmem:[%s8385_s24 + $0x18] sm:$0xff]  }
 0xa85   : > { %6624 = vmatprep.mubr.msk.bf16.mxu1 %vm6936_vm0, %v6935_v1 }
 0xa86   : > { %6623 = vmatpush3.bf16.msra.mxu1 %v6847_v35  ;;  %v6880_v35 = vld [vmem:[%s8385_s24 + $0x60] sm:$0xff]  }
 0xa87   : > { %6615 = vmatpush3.bf16.msra.mxu0 %v6846_v36  ;;  %5966 = vmatprep.subr.bf16.mxu1 %v6872_v26  ;;  %v6881_v36 = vld [vmem:[%s8385_s24 + $0x20] sm:$0xff]  }
 0xa88   : > { %5106 = vmatprep.subr.bf16.mxu0 %v6850_v8 }
 0xa9e   : > { %v4696_v37 = vpop.f32.mrb[84].mxu1 }
 0xa9f   : > { %v4650_v38 = vpop.f32.mrb[84].mxu0  ;;  %v4705_v39 = vpack.c.bf16 %v4696_v37, %v4696_v37  ;;  %v6594_v40 = vpop.f32.mrb[85].mxu1  ;;  %v6882_v37 = vld [vmem:[%s8385_s24 + $0x68] sm:$0xff]  }
 0xaa0   : > { %v4704_v41 = vpack.c.bf16 %v4650_v38, %v4650_v38  ;;  %v6588_v42 = vpop.f32.mrb[85].mxu0  ;;  %v4699_v43 = vpop.f32.mrb[86].mxu1  ;;  %v6883_v38 = vld [vmem:[%s8385_s24 + $0x28] sm:$0xff]  }
 0xaa1   : > { %v4653_v44 = vpop.f32.mrb[86].mxu0  ;;  %v6595_v45 = vpop.f32.mrb[87].mxu1  ;;  %6625 = vmatmul.mubr.msk.bf16.vlgmr.msra.gmra.mrb[92].mxu1 %vm2219_vm1, %v4705_v39  ;;  %v5655_v43 = vld [vmem:[%s8381_s20] ss:$0 sm:$0xff] }
 0xaa2   : > { %v6589_v46 = vpop.f32.mrb[87].mxu0  ;;  %6617 = vmatmul.mubr.msk.bf16.vlgmr.msra.gmra.mrb[92].mxu0 %vm2219_vm1, %v4704_v41  ;;  %5967 = vmatpush3.bf16.msra.mxu1 %v6873_v28  ;;  %v5656_v45 = vld [vmem:[%s8382_s21] ss:$0 sm:$0xff] }
 0xaa3   : > { %5107 = vmatpush1.bf16.msra.mxu0 %v6848_v7  ;;  %5138 = vmatprep.mubr.bf16.mxu0 %v6938_v25  ;;  %v5673_v7 = vld [vmem:[%s8386_s25] ss:$0 sm:$0xff] }
 0xaa4   : > { %5108 = vmatprep.subr.bf16.mxu0 %v6853_v9  ;;  %5968 = vmatprep.subr.bf16.mxu1 %v6874_v29 }
 0xaa6   : > { %5969 = vmatpush3.bf16.msra.mxu1 %v6875_v30 }
 0xaa7   : > { %5109 = vmatpush1.bf16.msra.mxu0 %v6851_v10  ;;  %5970 = vmatprep.subr.bf16.mxu1 %v6876_v31 }
 0xaaa   : > { %5971 = vmatpush3.bf16.msra.mxu1 %v6877_v32 }
 0xaab   : > { %5972 = vmatprep.subr.bf16.mxu1 %v6878_v33 }
 0xaae   : > { %5973 = vmatpush3.bf16.msra.mxu1 %v6879_v34 }
 0xaaf   : > { %5974 = vmatprep.subr.bf16.mxu1 %v6880_v35 }
 0xab2   : > { %5975 = vmatpush3.bf16.msra.mxu1 %v6881_v36 }
 0xab3   : > { %5976 = vmatprep.subr.bf16.mxu1 %v6882_v37 }
 0xab6   : > { %5977 = vmatpush3.bf16.msra.mxu1 %v6883_v38 }
 0xb54   : > { %v4810_v47 = vpop.f32.mrb[88].mxu1 }
 0xb55   : > { %v4755_v48 = vpop.f32.mrb[88].mxu0  ;;  %v6610_v49 = vpop.f32.mrb[89].mxu1 }
 0xb56   : > { %v4926_v1 = vadd.f32 %v4810_v47, %v4755_v48  ;;  %v6602_v51 = vpop.f32.mrb[89].mxu0  ;;  %v4813_v52 = vpop.f32.mrb[90].mxu1  ;;  %v6884_v49 = vld [vmem:[%s8385_s24 + $0x70] sm:$0xff]  }
 0xb57   : > { %v4758_v53 = vpop.f32.mrb[90].mxu0  ;;  %v6611_v54 = vpop.f32.mrb[91].mxu1  ;;  %5978 = vmatprep.subr.bf16.mxu1 %v6884_v49  ;;  %v6886_v51 = vld [vmem:[%s8385_s24 + $0x78] sm:$0xff]  }
 0xb58   : > { %v6603_v55 = vpop.f32.mrb[91].mxu0  ;;  %v6887_v52 = vld [vmem:[%s8385_s24 + $0x38] sm:$0xff]   ;;  %v5018_v53 = vsub.s32 0, %v7591_v58  ;;  %v4980_v54 = vld [vmem:[%s8384_s23] sm:$0x3] }
 0xb59   : > { %v5022_v55 = vsub.s32 1, %v7591_v58 }
 0xb74   : > { %v4920_v56 = vpop.f32.mrb[92].mxu1 }
 0xb75   : > { %v4865_v57 = vpop.f32.mrb[92].mxu0  ;;  %v6626_v59 = vpop.f32.mrb[93].mxu1 }
 0xb76   : > { %v4927_v60 = vadd.f32 %v4926_v1, %v4865_v57  ;;  %v6618_v61 = vpop.f32.mrb[93].mxu0  ;;  %v4923_v62 = vpop.f32.mrb[94].mxu1  ;;  %v6885_v1 = vld [vmem:[%s8385_s24 + $0x30] sm:$0xff]   ;;  %v5023_v57 = vrot.slane %v4980_v54, %v5022_v55 }
 0xb77   : > { %v4868_v0 = vpop.f32.mrb[94].mxu0  ;;  %v6627_v18 = vpop.f32.mrb[95].mxu1  ;;  %5979 = vmatpush3.bf16.msra.mxu1 %v6885_v1 }
 0xb78   : > { %v4928_v50 = vadd.f32 %v4927_v60, %v4920_v56  ;;  %v6619_v4 = vpop.f32.mrb[95].mxu0  ;;  %5980 = vmatprep.subr.bf16.mxu1 %v6886_v51  ;;  %v5019_v56 = vrot.slane %v4980_v54, %v5018_v53 }
 0xb7a   : > { %v4935_v5 = vadd.f32 %v5654_v63, %v4928_v50 }
 0xb7b   : > { %5981 = vmatpush3.bf16.msra.mxu1 %v6887_v52 }
 0xb7c   : > { %v4938_v6 = vadd.f32 %v4935_v5, %v7744_v27  ;;  %v6856_v27 = vld [vmem:[%s8383_s22 + $0x24] ss:$8 sps:$4 sm:$0xff]  }
 0xb7d   : > { %5110 = vmatprep.subr.bf16.mxu0 %v6856_v27 }
 0xb7e   : > { %4939 = vadd.xlane.f32.xlu0 %v4938_v6  ;;  %5111 = vmatpush1.bf16.msra.mxu0 %v6854_v2 }
 0xb7f   : > { %5112 = vmatprep.subr.bf16.mxu0 %v6859_v14 }
 0xb82   : > { %5113 = vmatpush1.bf16.msra.mxu0 %v6857_v15 }
 0xb83   : > { %5114 = vmatprep.subr.bf16.mxu0 %v6862_v16 }
 0xb86   : > { %5115 = vmatpush1.bf16.msra.mxu0 %v6860_v17 }
 0xb87   : > { %5116 = vmatprep.subr.bf16.mxu0 %v6865_v19  ;;  %v5690_v19 = vld [vmem:[%s8387_s26] ss:$0 sm:$0xff] }
 0xb8a   : > { %5117 = vmatpush1.bf16.msra.mxu0 %v6863_v20 }
 0xb8b   : > { %5118 = vmatprep.subr.bf16.mxu0 %v6868_v21  ;;  %v5691_v21 = vld [vmem:[%s8388_s27] ss:$0 sm:$0xff] }
 0xb8e   : > { %5119 = vmatpush1.bf16.msra.mxu0 %v6866_v22 }
 0xb8f   : > { %5120 = vmatprep.subr.bf16.mxu0 %v6871_v23 }
 0xb92   : > { %5121 = vmatpush1.bf16.msra.mxu0 %v6869_v24 }
 0xc0b   : > { %v4940_v3 = vpop.xlane.xlu0 %4939 }
 0xc0c   : > { %v4941_v11 = vmul.f32 0.0078125, %v4940_v3 }
 0xc0e   : > { %v4942_v12 = vsub.f32 %v4938_v6, %v4941_v11 }
 0xc10   : > { %v4943_v13 = vmul.f32 %v4942_v12, %v4942_v12 }
 0xc12   : > { %4944 = vadd.xlane.f32.xlu1 %v4943_v13 }
 0xc9f   : > { %v4945_v39 = vpop.xlane.xlu1 %4944 }
 0xca0   : > { %v4946_v40 = vmul.f32 0.0078125, %v4945_v39 }
 0xca2   : > { %v4947_v41 = vadd.f32 1e-05, %v4946_v40 }
 0xca4   : > { %6922 = vrsqrt.f32 %v4947_v41 }
 0xcae   : > { %v6923_v42 = vpop.eup %6922 }
 0xcaf   : > { %v4949_v44 = vmul.f32 %v6923_v42, %v4942_v12 }
 0xcb1   : > { %v4956_v46 = vmul.f32 %v5655_v43, %v4949_v44 }
 0xcb3   : > { %v4963_v47 = vadd.f32 %v5656_v45, %v4956_v46 }
 0xcb5   : > { %v5014_v48 = vpack.c.bf16 %v4963_v47, %v4963_v47 }
 0xcb7   : > { %5139 = vmatmul.mubr.bf16.vlgmr.msra.gmra.mrb[96].mxu0 %v5014_v48 }
 0xd8a   : > { %v5140_v59 = vpop.f32.mrb[96].mxu0 }
 0xd8b   : > { %v5141_v60 = vadd.f32 %v5140_v59, %v5019_v56  ;;  %v5142_v61 = vpop.f32.mrb[97].mxu0 }
 0xd8c   : > { %v5143_v62 = vadd.f32 %v5142_v61, %v5023_v57  ;;  %v5144_v63 = vpop.f32.mrb[98].mxu0 }
 0xd8d   : > { %v5147_v0 = vmax.f32 %v5141_v60, 0.0  ;;  %v5145_v18 = vpop.f32.mrb[99].mxu0 }
 0xd8e   : > { %v5148_v50 = vmax.f32 %v5143_v62, 0.0 }
 0xd8f   : > { %v5149_v5 = vpack.c.bf16 %v5147_v0, %v5147_v0 }
 0xd90   : > { %v5150_v4 = vpack.c.bf16 %v5148_v50, %v5148_v50 }
 0xd92   : > { %5285 = vmatprep.mubr.bf16.mxu1 %v5150_v4 }
 0xd93   : > { %5286 = vmatmul.mubr.bf16.vlgmr.msra.gmra.mrb[96].mxu1 %v5149_v5 }
 0xe66   : > { %v5982_v6 = vpop.f32.mrb[96].mxu1 }
 0xe67   : > { %v5983_v58 = vpop.f32.mrb[97].mxu1 }
 0xe68   : > { %v5984_v8 = vadd.f32 %v5983_v58, %v5982_v6  ;;  %v5985_v9 = vpop.f32.mrb[98].mxu1 }
 0xe69   : > { %v5986_v10 = vpop.f32.mrb[99].mxu1 }
 0xe6a   : > { %v5288_v27 = vadd.f32 %v5984_v8, %v5673_v7 }
 0xe6c   : > { %v5295_v2 = vadd.f32 %v5288_v27, %v4963_v47 }
 0xe6e   : > { %5296 = vadd.xlane.f32.xlu0 %v5295_v2 }
 0xefb   : > { %v5297_v3 = vpop.xlane.xlu0 %5296 }
 0xefc   : > { %v5298_v11 = vmul.f32 0.0078125, %v5297_v3 }
 0xefe   : > { %v5299_v12 = vsub.f32 %v5295_v2, %v5298_v11 }
 0xf00   : > { %v5300_v13 = vmul.f32 %v5299_v12, %v5299_v12 }
 0xf02   : > { %5301 = vadd.xlane.f32.xlu1 %v5300_v13 }
 0xf8f   : > { %v5302_v14 = vpop.xlane.xlu1 %5301 }
 0xf90   : > { %v5303_v15 = vmul.f32 0.0078125, %v5302_v14 }
 0xf92   : > { %v5304_v16 = vadd.f32 1e-05, %v5303_v15 }
 0xf94   : > { %6924 = vrsqrt.f32 %v5304_v16 }
 0xf9e   : > { %v6925_v17 = vpop.eup %6924 }
 0xf9f   : > { %v5306_v20 = vmul.f32 %v6925_v17, %v5299_v12 }
 0xfa1   : > { %v5313_v22 = vmul.f32 %v5690_v19, %v5306_v20 }
 0xfa3   : > { %v5320_v23 = vadd.f32 %v5691_v21, %v5313_v22 }
 0xfa5   : > { %5321 = vst [vmem:[%s857_s4] sm:$0xff] %v5320_v23 }
 0xfa6 PF: > { %s38_s8 = sadd.s32 1, %s6933_s8  }
 0xfa7   : > { %p35_p4 = scmp.ge.s32.totalorder %s38_s8, 4  }
 0xfa9   :  { %37 = sbr.rel (!%p35_p4) target bundleno = 14 (0xe), region = 165 }

</bundles_post_ra>
